<compile_context>
chip_gen: v6e
topology: v6e:2x2x1
jax: 0.10.0
libtpu: 0.0.40
codegen_flags: <defaults>
</compile_context>

<pallas_src>
import numpy as np
import jax
import jax.numpy as jnp
from jax.experimental import pallas as pl
from jax.experimental.pallas import tpu as pltpu

# SMPL kinematic tree (smpl_type='smpl'); parent index is always < child index.
KTREE_PARENTS = np.array(
    [-1, 0, 0, 0, 1, 2, 3, 4, 5, 6, 7, 8, 9, 9, 9, 12, 13, 14, 16, 17, 18,
     19, 20, 21], dtype=np.int32)

NUM_JOINTS = 24
DIM_PER_JOINT = 6
DIM_FEAT = 13 + DIM_PER_JOINT      # 19
REL_JOINTS = False                 # module default
# out_dim <= 0 => out_layer is Identity, n_output_dims = J * dim_per_joint


def _round_up(x, m):
    return ((x + m - 1) // m) * m


def _level_runs(parents):
    """Contiguous runs of joints sharing the same kinematic-tree depth."""
    J = len(parents)
    depth = [0] * J
    for j in range(J):
        p = int(parents[j])
        depth[j] = 0 if p < 0 else depth[p] + 1
    runs, s = [], 0
    for j in range(1, J + 1):
        if j == J or depth[j] != depth[j - 1]:
            runs.append((s, j))
            s = j
    return runs


def init_params(key, num_joints=NUM_JOINTS, dim_per_joint=DIM_PER_JOINT):
    """Deterministic synthetic init matching nn.Linear shapes (pre-transposed)."""
    dim_feat = 13 + dim_per_joint
    in0 = 12 * num_joints            # 9*J + 3*J
    ks = jax.random.split(key, 6)

    def u(k, shape, fan_in):
        bound = 1.0 / np.sqrt(fan_in)
        return jax.random.uniform(k, shape, jnp.float32, -bound, bound)

    return dict(
        w0=u(ks[0], (in0, dim_per_joint), in0),               # layer_0.weight.T
        b0=u(ks[1], (1, dim_per_joint), in0),                 # layer_0.bias
        w1=u(ks[2], (num_joints, dim_feat, dim_feat), dim_feat),
        b1=u(ks[3], (num_joints, 1, dim_feat), dim_feat),
        w2=u(ks[4], (num_joints, dim_feat, dim_per_joint), dim_feat),
        b2=u(ks[5], (num_joints, 1, dim_per_joint), dim_feat),
    )


def pack_params(params, parents=KTREE_PARENTS):
    """Repack per-joint weights into block matrices used by the kernel.

    All packing is exact (element-wise broadcasting multiplies with 0/1
    masks, no matmuls), and is done once, outside the per-call path.
    """
    J, D, F = NUM_JOINTS, DIM_PER_JOINT, DIM_FEAT
    w0, b0 = params['w0'], params['b0']
    w1, b1 = params['w1'], params['b1']          # (J, F, F), (J, 1, F)
    w2, b2 = params['w2'], params['b2']          # (J, F, D), (J, 1, D)

    eye = jnp.eye(J, dtype=jnp.float32)

    def block_diag(w):                           # (J, f, k) -> (J*f, J*k)
        Jj, f, k = w.shape
        blk = w[:, :, None, :] * eye[:, None, :, None]     # exact
        return blk.reshape(Jj * f, Jj * k)

    # scatter of each joint's "prev-feature" rows of layer_1 onto its parent's
    # output columns: w1_prev[p*D+a, j*F+b] = W1[j, 13+a, b] iff parent[j]==p.
    par_oh = np.zeros((J, J), np.float32)
    for j in range(J):
        if int(parents[j]) >= 0:
            par_oh[j, int(parents[j])] = 1.0
    par_oh_T = jnp.asarray(par_oh.T)                        # (p, j)
    w1_prev = w1[:, 13:, :]                                 # (J, D, F)
    w1_prev_sc = (par_oh_T[:, None, :, None] *
                  jnp.transpose(w1_prev, (1, 0, 2))[None, :, :, :])
    w1_prev_sc = w1_prev_sc.reshape(J * D, J * F)

    # bone-length helpers: d = jtrs_flat @ dmat gives child - parent offsets
    # (root unchanged); (d*d) @ rmat sums the 3 components per joint.
    dmat = np.zeros((3 * J, 3 * J), np.float32)
    rmat = np.zeros((3 * J, J), np.float32)
    for j in range(J):
        p = int(parents[j])
        for a in range(3):
            dmat[3 * j + a, 3 * j + a] = 1.0
            if p >= 0:
                dmat[3 * p + a, 3 * j + a] = -1.0
            rmat[3 * j + a, j] = 1.0

    return dict(
        w0_rot=w0[:9 * J], w0_jtr=w0[9 * J:], b0=b0,
        w1_rot=block_diag(w1[:, 0:9, :]),        # (9J, FJ)
        w1_jtr=block_diag(w1[:, 9:12, :]),       # (3J, FJ)
        w1_bone=block_diag(w1[:, 12:13, :]),     # (J,  FJ)
        b1=b1.reshape(1, J * F),
        w1_prev_root=w1[0, 13:, :],              # (D, F)
        w1_prev=w1_prev_sc,                      # (DJ, FJ)
        w2=block_diag(w2),                       # (FJ, DJ)
        b2=b2.reshape(1, J * D),
        dmat=jnp.asarray(dmat),
        rmat=jnp.asarray(rmat),
    )


def _make_kernel(parents, rel_joints, dim_per_joint=DIM_PER_JOINT):
    J = len(parents)
    D = dim_per_joint
    F = 13 + D
    runs = _level_runs(parents)
    assert runs[0] == (0, 1) and int(parents[0]) == -1

    def kernel(rots_ref, jtrs_ref,
               w0r_ref, w0j_ref, b0_ref,
               w1r_ref, w1j_ref, w1b_ref, b1_ref,
               w1p0_ref, w1p_ref, w2_ref, b2_ref,
               dmat_ref, rmat_ref,
               out_ref):
        f32 = jnp.float32
        rots = rots_ref[...]                            # (Bt, 9*J)
        jtrs = jtrs_ref[...]                            # (Bt, 3*J)

        # ---- all bone lengths in one shot --------------------------------
        d = jnp.dot(jtrs, dmat_ref[...], preferred_element_type=f32)
        bones = jnp.sqrt(jnp.dot(d * d, rmat_ref[...],
                                 preferred_element_type=f32))   # (Bt, J)
        jt = d if rel_joints else jtrs

        # ---- global feature (layer_0), no duplicated gin input -----------
        gfeat = (jnp.dot(rots, w0r_ref[...], preferred_element_type=f32)
                 + jnp.dot(jt, w0j_ref[...], preferred_element_type=f32)
                 + b0_ref[...])                                  # (Bt, D)

        # ---- static (rot, jtr, bone) part of every joint's layer_1 + bias,
        #      all joints at once -----------------------------------------
        pre = (jnp.dot(rots, w1r_ref[...], preferred_element_type=f32)
               + jnp.dot(jt, w1j_ref[...], preferred_element_type=f32)
               + jnp.dot(bones, w1b_ref[...], preferred_element_type=f32)
               + b1_ref[...])                                    # (Bt, J*F)

        # ---- root joint ---------------------------------------------------
        h = jnp.maximum(
            jnp.dot(gfeat, w1p0_ref[...], preferred_element_type=f32)
            + pre[:, 0:F], 0.0)
        out_ref[:, 0:D] = (jnp.dot(h, w2_ref[0:F, 0:D],
                                   preferred_element_type=f32)
                           + b2_ref[:, 0:D])

        # ---- remaining joints, one tree level (contiguous run) at a time;
        #      parent gather is folded into the packed w1_prev weight and the
        #      results are written straight into out_ref slices -------------
        for start, end in runs[1:]:
            ps = [int(parents[j]) for j in range(start, end)]
            p0, p1 = min(ps), max(ps) + 1
            prev = out_ref[:, p0 * D:p1 * D]          # parents already written
            h = jnp.maximum(
                jnp.dot(prev, w1p_ref[p0 * D:p1 * D, start * F:end * F],
                        preferred_element_type=f32)
                + pre[:, start * F:end * F], 0.0)
            out_ref[:, start * D:end * D] = (
                jnp.dot(h, w2_ref[start * F:end * F, start * D:end * D],
                        preferred_element_type=f32)
                + b2_ref[:, start * D:end * D])

    return kernel


def hierarchical_pose_encoder(rots, jtrs, packed, *, block_b=512,
                              parents=KTREE_PARENTS, rel_joints=REL_JOINTS):
    """rots (B, J, 9), jtrs (B, J, 3) -> (B, J*dim_per_joint)."""
    B, J, _ = rots.shape
    D = DIM_PER_JOINT
    assert block_b % 8 == 0

    rots_flat = rots.reshape(B, J * 9)          # contiguous reshape, no copy
    jtrs_flat = jtrs.reshape(B, J * 3)

    bt = min(block_b, _round_up(B, 8))          # batch tile (multiple of 8)
    bp = _round_up(B, bt)
    if bp != B:
        rots_flat = jnp.pad(rots_flat, ((0, bp - B), (0, 0)))
        jtrs_flat = jnp.pad(jtrs_flat, ((0, bp - B), (0, 0)))

    kernel = _make_kernel(parents, rel_joints, D)

    def tile(x):
        return pl.BlockSpec((bt, x.shape[1]), lambda i: (i, 0))

    def whole(x):
        return pl.BlockSpec(x.shape, lambda i: (0, 0))

    weights = [packed[k] for k in (
        'w0_rot', 'w0_jtr', 'b0',
        'w1_rot', 'w1_jtr', 'w1_bone', 'b1',
        'w1_prev_root', 'w1_prev', 'w2', 'b2',
        'dmat', 'rmat')]

    out = pl.pallas_call(
        kernel,
        out_shape=jax.ShapeDtypeStruct((bp, J * D), jnp.float32),
        grid=(bp // bt,),
        in_specs=[tile(rots_flat), tile(jtrs_flat)] + [whole(w) for w in weights],
        out_specs=pl.BlockSpec((bt, J * D), lambda i: (i, 0)),
        compiler_params=pltpu.CompilerParams(
            dimension_semantics=("parallel",)),
    )(rots_flat, jtrs_flat, *weights)
    # TODO(synk): optional bf16 input/weight cast (f32 accumulate) for large-B
    # HBM-bound deployments was left out to keep bit-for-bit f32 semantics.
    return out[:B]


def reference(rots, jtrs, params):
    """Pure-JAX reference mirroring the PyTorch forward."""
    B = rots.shape[0]
    gin = jnp.concatenate([rots.reshape(B, -1), jtrs.reshape(B, -1)], axis=-1)
    gf = gin @ params['w0'] + params['b0']
    outs = []
    for j in range(NUM_JOINTS):
        rot = rots[:, j, :]
        jtr = jtrs[:, j, :]
        parent = int(KTREE_PARENTS[j])
        if parent == -1:
            bone = jnp.linalg.norm(jtr, axis=-1, keepdims=True)
            prev = gf
        else:
            prev = outs[parent]
            dlt = jtr if REL_JOINTS else (jtr - jtrs[:, parent, :])
            bone = jnp.linalg.norm(dlt, axis=-1, keepdims=True)
        in_feat = jnp.concatenate([rot, jtr, bone, prev], axis=-1)
        h = jnp.maximum(in_feat @ params['w1'][j] + params['b1'][j], 0.0)
        outs.append(h @ params['w2'][j] + params['b2'][j])
    return jnp.concatenate(outs, axis=-1)


if __name__ == "__main__":
    key = jax.random.PRNGKey(0)
    k_rot, k_jtr, k_par = jax.random.split(key, 3)

    B = 16
    rots = jax.random.normal(k_rot, (B, NUM_JOINTS, 9), jnp.float32)
    jtrs = jax.random.normal(k_jtr, (B, NUM_JOINTS, 3), jnp.float32)
    params = init_params(k_par)
    packed = pack_params(params)

    out = hierarchical_pose_encoder(rots, jtrs, packed, block_b=8)  # grid of 2
    out = jax.block_until_ready(out)

    ref = jax.block_until_ready(reference(rots, jtrs, params))
    assert out.shape == (B, NUM_JOINTS * DIM_PER_JOINT), out.shape
    np.testing.assert_allclose(np.asarray(out), np.asarray(ref),
                               rtol=5e-3, atol=5e-3)
    print("KERNEL_OK")
</pallas_src>

<mosaic_0001>
module attributes {stable_mosaic.version = 11 : i64} {
  func.func @kernel(%arg0: i32, %arg1: memref<8x216xf32, #tpu.memory_space<vmem>>, %arg2: memref<8x72xf32, #tpu.memory_space<vmem>>, %arg3: memref<216x6xf32, #tpu.memory_space<vmem>>, %arg4: memref<72x6xf32, #tpu.memory_space<vmem>>, %arg5: memref<1x6xf32, #tpu.memory_space<vmem>>, %arg6: memref<216x456xf32, #tpu.memory_space<vmem>>, %arg7: memref<72x456xf32, #tpu.memory_space<vmem>>, %arg8: memref<24x456xf32, #tpu.memory_space<vmem>>, %arg9: memref<1x456xf32, #tpu.memory_space<vmem>>, %arg10: memref<6x19xf32, #tpu.memory_space<vmem>>, %arg11: memref<144x456xf32, #tpu.memory_space<vmem>>, %arg12: memref<456x144xf32, #tpu.memory_space<vmem>>, %arg13: memref<1x144xf32, #tpu.memory_space<vmem>>, %arg14: memref<72x72xf32, #tpu.memory_space<vmem>>, %arg15: memref<72x24xf32, #tpu.memory_space<vmem>>, %arg16: memref<8x144xf32, #tpu.memory_space<vmem>>) attributes {dimension_semantics = [#tpu.dimension_semantics<parallel>], iteration_bounds = array<i64: 2>, scalar_prefetch = 0 : i64, scratch_operands = 0 : i64, tpu.core_type = #tpu.core_type<tc>, window_params = [{transform_indices = @transform_0, window_bounds = array<i64: 8, 216>}, {transform_indices = @transform_1, window_bounds = array<i64: 8, 72>}, {pipeline_mode = #tpu.pipeline_mode<synchronous>, transform_indices = @transform_2, window_bounds = array<i64: 216, 6>}, {pipeline_mode = #tpu.pipeline_mode<synchronous>, transform_indices = @transform_3, window_bounds = array<i64: 72, 6>}, {pipeline_mode = #tpu.pipeline_mode<synchronous>, transform_indices = @transform_4, window_bounds = array<i64: 1, 6>}, {pipeline_mode = #tpu.pipeline_mode<synchronous>, transform_indices = @transform_5, window_bounds = array<i64: 216, 456>}, {pipeline_mode = #tpu.pipeline_mode<synchronous>, transform_indices = @transform_6, window_bounds = array<i64: 72, 456>}, {pipeline_mode = #tpu.pipeline_mode<synchronous>, transform_indices = @transform_7, window_bounds = array<i64: 24, 456>}, {pipeline_mode = #tpu.pipeline_mode<synchronous>, transform_indices = @transform_8, window_bounds = array<i64: 1, 456>}, {pipeline_mode = #tpu.pipeline_mode<synchronous>, transform_indices = @transform_9, window_bounds = array<i64: 6, 19>}, {pipeline_mode = #tpu.pipeline_mode<synchronous>, transform_indices = @transform_10, window_bounds = array<i64: 144, 456>}, {pipeline_mode = #tpu.pipeline_mode<synchronous>, transform_indices = @transform_11, window_bounds = array<i64: 456, 144>}, {pipeline_mode = #tpu.pipeline_mode<synchronous>, transform_indices = @transform_12, window_bounds = array<i64: 1, 144>}, {pipeline_mode = #tpu.pipeline_mode<synchronous>, transform_indices = @transform_13, window_bounds = array<i64: 72, 72>}, {pipeline_mode = #tpu.pipeline_mode<synchronous>, transform_indices = @transform_14, window_bounds = array<i64: 72, 24>}, {transform_indices = @transform_15, window_bounds = array<i64: 8, 144>}]} {
    %c0 = arith.constant 0 : index
    %c0_0 = arith.constant 0 : index
    %0 = vector.load %arg1[%c0, %c0_0] : memref<8x216xf32, #tpu.memory_space<vmem>>, vector<8x216xf32>
    %c0_1 = arith.constant 0 : index
    %c0_2 = arith.constant 0 : index
    %1 = vector.load %arg2[%c0_1, %c0_2] : memref<8x72xf32, #tpu.memory_space<vmem>>, vector<8x72xf32>
    %c0_3 = arith.constant 0 : index
    %c0_4 = arith.constant 0 : index
    %2 = vector.load %arg14[%c0_3, %c0_4] : memref<72x72xf32, #tpu.memory_space<vmem>>, vector<72x72xf32>
    %cst = arith.constant dense<0.000000e+00> : vector<8x72xf32>
    %3 = tpu.matmul %1, %2, %cst {dimension_numbers = #tpu.dot_dimension_numbers<[1], [0], [0], [1], [0, 0, 1, 1], [], []>} : vector<8x72xf32>, vector<72x72xf32>, vector<8x72xf32> -> vector<8x72xf32>
    %4 = arith.mulf %3, %3 : vector<8x72xf32>
    %c0_5 = arith.constant 0 : index
    %c0_6 = arith.constant 0 : index
    %5 = vector.load %arg15[%c0_5, %c0_6] : memref<72x24xf32, #tpu.memory_space<vmem>>, vector<72x24xf32>
    %cst_7 = arith.constant dense<0.000000e+00> : vector<8x24xf32>
    %6 = tpu.matmul %4, %5, %cst_7 {dimension_numbers = #tpu.dot_dimension_numbers<[1], [0], [0], [1], [0, 0, 1, 1], [], []>} : vector<8x72xf32>, vector<72x24xf32>, vector<8x24xf32> -> vector<8x24xf32>
    %7 = math.sqrt %6 : vector<8x24xf32>
    %c0_8 = arith.constant 0 : index
    %c0_9 = arith.constant 0 : index
    %8 = vector.load %arg3[%c0_8, %c0_9] : memref<216x6xf32, #tpu.memory_space<vmem>>, vector<216x6xf32>
    %cst_10 = arith.constant dense<0.000000e+00> : vector<8x6xf32>
    %9 = tpu.matmul %0, %8, %cst_10 {dimension_numbers = #tpu.dot_dimension_numbers<[1], [0], [0], [1], [0, 0, 1, 1], [], []>} : vector<8x216xf32>, vector<216x6xf32>, vector<8x6xf32> -> vector<8x6xf32>
    %c0_11 = arith.constant 0 : index
    %c0_12 = arith.constant 0 : index
    %10 = vector.load %arg4[%c0_11, %c0_12] : memref<72x6xf32, #tpu.memory_space<vmem>>, vector<72x6xf32>
    %cst_13 = arith.constant dense<0.000000e+00> : vector<8x6xf32>
    %11 = tpu.matmul %1, %10, %cst_13 {dimension_numbers = #tpu.dot_dimension_numbers<[1], [0], [0], [1], [0, 0, 1, 1], [], []>} : vector<8x72xf32>, vector<72x6xf32>, vector<8x6xf32> -> vector<8x6xf32>
    %12 = arith.addf %9, %11 : vector<8x6xf32>
    %c0_14 = arith.constant 0 : index
    %c0_15 = arith.constant 0 : index
    %13 = vector.load %arg5[%c0_14, %c0_15] : memref<1x6xf32, #tpu.memory_space<vmem>>, vector<1x6xf32>
    %14 = vector.broadcast %13 : vector<1x6xf32> to vector<8x6xf32>
    %15 = arith.addf %12, %14 : vector<8x6xf32>
    %c0_16 = arith.constant 0 : index
    %c0_17 = arith.constant 0 : index
    %16 = vector.load %arg6[%c0_16, %c0_17] : memref<216x456xf32, #tpu.memory_space<vmem>>, vector<216x456xf32>
    %cst_18 = arith.constant dense<0.000000e+00> : vector<8x456xf32>
    %17 = tpu.matmul %0, %16, %cst_18 {dimension_numbers = #tpu.dot_dimension_numbers<[1], [0], [0], [1], [0, 0, 1, 1], [], []>} : vector<8x216xf32>, vector<216x456xf32>, vector<8x456xf32> -> vector<8x456xf32>
    %c0_19 = arith.constant 0 : index
    %c0_20 = arith.constant 0 : index
    %18 = vector.load %arg7[%c0_19, %c0_20] : memref<72x456xf32, #tpu.memory_space<vmem>>, vector<72x456xf32>
    %cst_21 = arith.constant dense<0.000000e+00> : vector<8x456xf32>
    %19 = tpu.matmul %1, %18, %cst_21 {dimension_numbers = #tpu.dot_dimension_numbers<[1], [0], [0], [1], [0, 0, 1, 1], [], []>} : vector<8x72xf32>, vector<72x456xf32>, vector<8x456xf32> -> vector<8x456xf32>
    %20 = arith.addf %17, %19 : vector<8x456xf32>
    %c0_22 = arith.constant 0 : index
    %c0_23 = arith.constant 0 : index
    %21 = vector.load %arg8[%c0_22, %c0_23] : memref<24x456xf32, #tpu.memory_space<vmem>>, vector<24x456xf32>
    %cst_24 = arith.constant dense<0.000000e+00> : vector<8x456xf32>
    %22 = tpu.matmul %7, %21, %cst_24 {dimension_numbers = #tpu.dot_dimension_numbers<[1], [0], [0], [1], [0, 0, 1, 1], [], []>} : vector<8x24xf32>, vector<24x456xf32>, vector<8x456xf32> -> vector<8x456xf32>
    %23 = arith.addf %20, %22 : vector<8x456xf32>
    %c0_25 = arith.constant 0 : index
    %c0_26 = arith.constant 0 : index
    %24 = vector.load %arg9[%c0_25, %c0_26] : memref<1x456xf32, #tpu.memory_space<vmem>>, vector<1x456xf32>
    %25 = vector.broadcast %24 : vector<1x456xf32> to vector<8x456xf32>
    %26 = arith.addf %23, %25 : vector<8x456xf32>
    %c0_27 = arith.constant 0 : index
    %c0_28 = arith.constant 0 : index
    %27 = vector.load %arg10[%c0_27, %c0_28] : memref<6x19xf32, #tpu.memory_space<vmem>>, vector<6x19xf32>
    %cst_29 = arith.constant dense<0.000000e+00> : vector<8x19xf32>
    %28 = tpu.matmul %15, %27, %cst_29 {dimension_numbers = #tpu.dot_dimension_numbers<[1], [0], [0], [1], [0, 0, 1, 1], [], []>} : vector<8x6xf32>, vector<6x19xf32>, vector<8x19xf32> -> vector<8x19xf32>
    %29 = vector.extract_strided_slice %26 {offsets = [0, 0], sizes = [8, 19], strides = [1, 1]} : vector<8x456xf32> to vector<8x19xf32>
    %30 = arith.addf %28, %29 : vector<8x19xf32>
    %cst_30 = arith.constant 0.000000e+00 : f32
    %31 = vector.broadcast %cst_30 : f32 to vector<8x19xf32>
    %32 = arith.maximumf %30, %31 : vector<8x19xf32>
    %c0_31 = arith.constant 0 : index
    %c0_32 = arith.constant 0 : index
    %33 = vector.load %arg12[%c0_31, %c0_32] : memref<456x144xf32, #tpu.memory_space<vmem>>, vector<19x6xf32>
    %cst_33 = arith.constant dense<0.000000e+00> : vector<8x6xf32>
    %34 = tpu.matmul %32, %33, %cst_33 {dimension_numbers = #tpu.dot_dimension_numbers<[1], [0], [0], [1], [0, 0, 1, 1], [], []>} : vector<8x19xf32>, vector<19x6xf32>, vector<8x6xf32> -> vector<8x6xf32>
    %c0_34 = arith.constant 0 : index
    %c0_35 = arith.constant 0 : index
    %35 = vector.load %arg13[%c0_34, %c0_35] : memref<1x144xf32, #tpu.memory_space<vmem>>, vector<1x6xf32>
    %36 = vector.broadcast %35 : vector<1x6xf32> to vector<8x6xf32>
    %37 = arith.addf %34, %36 : vector<8x6xf32>
    %c0_36 = arith.constant 0 : index
    %c0_37 = arith.constant 0 : index
    %38 = vector.load %arg16[%c0_36, %c0_37] : memref<8x144xf32, #tpu.memory_space<vmem>>, vector<8x6xf32>
    tpu.vector_store %arg16[%c0_36, %c0_37], %37 {strides = array<i32>} : memref<8x144xf32, #tpu.memory_space<vmem>>, vector<8x6xf32>,
    %c0_38 = arith.constant 0 : index
    %c0_39 = arith.constant 0 : index
    %39 = vector.load %arg16[%c0_38, %c0_39] : memref<8x144xf32, #tpu.memory_space<vmem>>, vector<8x6xf32>
    %c0_40 = arith.constant 0 : index
    %c19 = arith.constant 19 : index
    %40 = vector.load %arg11[%c0_40, %c19] : memref<144x456xf32, #tpu.memory_space<vmem>>, vector<6x57xf32>
    %cst_41 = arith.constant dense<0.000000e+00> : vector<8x57xf32>
    %41 = tpu.matmul %39, %40, %cst_41 {dimension_numbers = #tpu.dot_dimension_numbers<[1], [0], [0], [1], [0, 0, 1, 1], [], []>} : vector<8x6xf32>, vector<6x57xf32>, vector<8x57xf32> -> vector<8x57xf32>
    %42 = vector.extract_strided_slice %26 {offsets = [0, 19], sizes = [8, 57], strides = [1, 1]} : vector<8x456xf32> to vector<8x57xf32>
    %43 = arith.addf %41, %42 : vector<8x57xf32>
    %cst_42 = arith.constant 0.000000e+00 : f32
    %44 = vector.broadcast %cst_42 : f32 to vector<8x57xf32>
    %45 = arith.maximumf %43, %44 : vector<8x57xf32>
    %c19_43 = arith.constant 19 : index
    %c6 = arith.constant 6 : index
    %46 = vector.load %arg12[%c19_43, %c6] : memref<456x144xf32, #tpu.memory_space<vmem>>, vector<57x18xf32>
    %cst_44 = arith.constant dense<0.000000e+00> : vector<8x18xf32>
    %47 = tpu.matmul %45, %46, %cst_44 {dimension_numbers = #tpu.dot_dimension_numbers<[1], [0], [0], [1], [0, 0, 1, 1], [], []>} : vector<8x57xf32>, vector<57x18xf32>, vector<8x18xf32> -> vector<8x18xf32>
    %c0_45 = arith.constant 0 : index
    %c6_46 = arith.constant 6 : index
    %48 = vector.load %arg13[%c0_45, %c6_46] : memref<1x144xf32, #tpu.memory_space<vmem>>, vector<1x18xf32>
    %49 = vector.broadcast %48 : vector<1x18xf32> to vector<8x18xf32>
    %50 = arith.addf %47, %49 : vector<8x18xf32>
    %c0_47 = arith.constant 0 : index
    %c6_48 = arith.constant 6 : index
    %51 = vector.load %arg16[%c0_47, %c6_48] : memref<8x144xf32, #tpu.memory_space<vmem>>, vector<8x18xf32>
    tpu.vector_store %arg16[%c0_47, %c6_48], %50 {strides = array<i32>} : memref<8x144xf32, #tpu.memory_space<vmem>>, vector<8x18xf32>,
    %c0_49 = arith.constant 0 : index
    %c6_50 = arith.constant 6 : index
    %52 = vector.load %arg16[%c0_49, %c6_50] : memref<8x144xf32, #tpu.memory_space<vmem>>, vector<8x18xf32>
    %c6_51 = arith.constant 6 : index
    %c76 = arith.constant 76 : index
    %53 = vector.load %arg11[%c6_51, %c76] : memref<144x456xf32, #tpu.memory_space<vmem>>, vector<18x57xf32>
    %cst_52 = arith.constant dense<0.000000e+00> : vector<8x57xf32>
    %54 = tpu.matmul %52, %53, %cst_52 {dimension_numbers = #tpu.dot_dimension_numbers<[1], [0], [0], [1], [0, 0, 1, 1], [], []>} : vector<8x18xf32>, vector<18x57xf32>, vector<8x57xf32> -> vector<8x57xf32>
    %55 = vector.extract_strided_slice %26 {offsets = [0, 76], sizes = [8, 57], strides = [1, 1]} : vector<8x456xf32> to vector<8x57xf32>
    %56 = arith.addf %54, %55 : vector<8x57xf32>
    %cst_53 = arith.constant 0.000000e+00 : f32
    %57 = vector.broadcast %cst_53 : f32 to vector<8x57xf32>
    %58 = arith.maximumf %56, %57 : vector<8x57xf32>
    %c76_54 = arith.constant 76 : index
    %c24 = arith.constant 24 : index
    %59 = vector.load %arg12[%c76_54, %c24] : memref<456x144xf32, #tpu.memory_space<vmem>>, vector<57x18xf32>
    %cst_55 = arith.constant dense<0.000000e+00> : vector<8x18xf32>
    %60 = tpu.matmul %58, %59, %cst_55 {dimension_numbers = #tpu.dot_dimension_numbers<[1], [0], [0], [1], [0, 0, 1, 1], [], []>} : vector<8x57xf32>, vector<57x18xf32>, vector<8x18xf32> -> vector<8x18xf32>
    %c0_56 = arith.constant 0 : index
    %c24_57 = arith.constant 24 : index
    %61 = vector.load %arg13[%c0_56, %c24_57] : memref<1x144xf32, #tpu.memory_space<vmem>>, vector<1x18xf32>
    %62 = vector.broadcast %61 : vector<1x18xf32> to vector<8x18xf32>
    %63 = arith.addf %60, %62 : vector<8x18xf32>
    %c0_58 = arith.constant 0 : index
    %c24_59 = arith.constant 24 : index
    %64 = vector.load %arg16[%c0_58, %c24_59] : memref<8x144xf32, #tpu.memory_space<vmem>>, vector<8x18xf32>
    tpu.vector_store %arg16[%c0_58, %c24_59], %63 {strides = array<i32>} : memref<8x144xf32, #tpu.memory_space<vmem>>, vector<8x18xf32>,
    %c0_60 = arith.constant 0 : index
    %c24_61 = arith.constant 24 : index
    %65 = vector.load %arg16[%c0_60, %c24_61] : memref<8x144xf32, #tpu.memory_space<vmem>>, vector<8x18xf32>
    %c24_62 = arith.constant 24 : index
    %c133 = arith.constant 133 : index
    %66 = vector.load %arg11[%c24_62, %c133] : memref<144x456xf32, #tpu.memory_space<vmem>>, vector<18x57xf32>
    %cst_63 = arith.constant dense<0.000000e+00> : vector<8x57xf32>
    %67 = tpu.matmul %65, %66, %cst_63 {dimension_numbers = #tpu.dot_dimension_numbers<[1], [0], [0], [1], [0, 0, 1, 1], [], []>} : vector<8x18xf32>, vector<18x57xf32>, vector<8x57xf32> -> vector<8x57xf32>
    %68 = vector.extract_strided_slice %26 {offsets = [0, 133], sizes = [8, 57], strides = [1, 1]} : vector<8x456xf32> to vector<8x57xf32>
    %69 = arith.addf %67, %68 : vector<8x57xf32>
    %cst_64 = arith.constant 0.000000e+00 : f32
    %70 = vector.broadcast %cst_64 : f32 to vector<8x57xf32>
    %71 = arith.maximumf %69, %70 : vector<8x57xf32>
    %c133_65 = arith.constant 133 : index
    %c42 = arith.constant 42 : index
    %72 = vector.load %arg12[%c133_65, %c42] : memref<456x144xf32, #tpu.memory_space<vmem>>, vector<57x18xf32>
    %cst_66 = arith.constant dense<0.000000e+00> : vector<8x18xf32>
    %73 = tpu.matmul %71, %72, %cst_66 {dimension_numbers = #tpu.dot_dimension_numbers<[1], [0], [0], [1], [0, 0, 1, 1], [], []>} : vector<8x57xf32>, vector<57x18xf32>, vector<8x18xf32> -> vector<8x18xf32>
    %c0_67 = arith.constant 0 : index
    %c42_68 = arith.constant 42 : index
    %74 = vector.load %arg13[%c0_67, %c42_68] : memref<1x144xf32, #tpu.memory_space<vmem>>, vector<1x18xf32>
    %75 = vector.broadcast %74 : vector<1x18xf32> to vector<8x18xf32>
    %76 = arith.addf %73, %75 : vector<8x18xf32>
    %c0_69 = arith.constant 0 : index
    %c42_70 = arith.constant 42 : index
    %77 = vector.load %arg16[%c0_69, %c42_70] : memref<8x144xf32, #tpu.memory_space<vmem>>, vector<8x18xf32>
    tpu.vector_store %arg16[%c0_69, %c42_70], %76 {strides = array<i32>} : memref<8x144xf32, #tpu.memory_space<vmem>>, vector<8x18xf32>,
    %c0_71 = arith.constant 0 : index
    %c42_72 = arith.constant 42 : index
    %78 = vector.load %arg16[%c0_71, %c42_72] : memref<8x144xf32, #tpu.memory_space<vmem>>, vector<8x18xf32>
    %c42_73 = arith.constant 42 : index
    %c190 = arith.constant 190 : index
    %79 = vector.load %arg11[%c42_73, %c190] : memref<144x456xf32, #tpu.memory_space<vmem>>, vector<18x95xf32>
    %cst_74 = arith.constant dense<0.000000e+00> : vector<8x95xf32>
    %80 = tpu.matmul %78, %79, %cst_74 {dimension_numbers = #tpu.dot_dimension_numbers<[1], [0], [0], [1], [0, 0, 1, 1], [], []>} : vector<8x18xf32>, vector<18x95xf32>, vector<8x95xf32> -> vector<8x95xf32>
    %81 = vector.extract_strided_slice %26 {offsets = [0, 190], sizes = [8, 95], strides = [1, 1]} : vector<8x456xf32> to vector<8x95xf32>
    %82 = arith.addf %80, %81 : vector<8x95xf32>
    %cst_75 = arith.constant 0.000000e+00 : f32
    %83 = vector.broadcast %cst_75 : f32 to vector<8x95xf32>
    %84 = arith.maximumf %82, %83 : vector<8x95xf32>
    %c190_76 = arith.constant 190 : index
    %c60 = arith.constant 60 : index
    %85 = vector.load %arg12[%c190_76, %c60] : memref<456x144xf32, #tpu.memory_space<vmem>>, vector<95x30xf32>
    %cst_77 = arith.constant dense<0.000000e+00> : vector<8x30xf32>
    %86 = tpu.matmul %84, %85, %cst_77 {dimension_numbers = #tpu.dot_dimension_numbers<[1], [0], [0], [1], [0, 0, 1, 1], [], []>} : vector<8x95xf32>, vector<95x30xf32>, vector<8x30xf32> -> vector<8x30xf32>
    %c0_78 = arith.constant 0 : index
    %c60_79 = arith.constant 60 : index
    %87 = vector.load %arg13[%c0_78, %c60_79] : memref<1x144xf32, #tpu.memory_space<vmem>>, vector<1x30xf32>
    %88 = vector.broadcast %87 : vector<1x30xf32> to vector<8x30xf32>
    %89 = arith.addf %86, %88 : vector<8x30xf32>
    %c0_80 = arith.constant 0 : index
    %c60_81 = arith.constant 60 : index
    %90 = vector.load %arg16[%c0_80, %c60_81] : memref<8x144xf32, #tpu.memory_space<vmem>>, vector<8x30xf32>
    tpu.vector_store %arg16[%c0_80, %c60_81], %89 {strides = array<i32>} : memref<8x144xf32, #tpu.memory_space<vmem>>, vector<8x30xf32>,
    %c0_82 = arith.constant 0 : index
    %c72 = arith.constant 72 : index
    %91 = vector.load %arg16[%c0_82, %c72] : memref<8x144xf32, #tpu.memory_space<vmem>>, vector<8x18xf32>
    %c72_83 = arith.constant 72 : index
    %c285 = arith.constant 285 : index
    %92 = vector.load %arg11[%c72_83, %c285] : memref<144x456xf32, #tpu.memory_space<vmem>>, vector<18x57xf32>
    %cst_84 = arith.constant dense<0.000000e+00> : vector<8x57xf32>
    %93 = tpu.matmul %91, %92, %cst_84 {dimension_numbers = #tpu.dot_dimension_numbers<[1], [0], [0], [1], [0, 0, 1, 1], [], []>} : vector<8x18xf32>, vector<18x57xf32>, vector<8x57xf32> -> vector<8x57xf32>
    %94 = vector.extract_strided_slice %26 {offsets = [0, 285], sizes = [8, 57], strides = [1, 1]} : vector<8x456xf32> to vector<8x57xf32>
    %95 = arith.addf %93, %94 : vector<8x57xf32>
    %cst_85 = arith.constant 0.000000e+00 : f32
    %96 = vector.broadcast %cst_85 : f32 to vector<8x57xf32>
    %97 = arith.maximumf %95, %96 : vector<8x57xf32>
    %c285_86 = arith.constant 285 : index
    %c90 = arith.constant 90 : index
    %98 = vector.load %arg12[%c285_86, %c90] : memref<456x144xf32, #tpu.memory_space<vmem>>, vector<57x18xf32>
    %cst_87 = arith.constant dense<0.000000e+00> : vector<8x18xf32>
    %99 = tpu.matmul %97, %98, %cst_87 {dimension_numbers = #tpu.dot_dimension_numbers<[1], [0], [0], [1], [0, 0, 1, 1], [], []>} : vector<8x57xf32>, vector<57x18xf32>, vector<8x18xf32> -> vector<8x18xf32>
    %c0_88 = arith.constant 0 : index
    %c90_89 = arith.constant 90 : index
    %100 = vector.load %arg13[%c0_88, %c90_89] : memref<1x144xf32, #tpu.memory_space<vmem>>, vector<1x18xf32>
    %101 = vector.broadcast %100 : vector<1x18xf32> to vector<8x18xf32>
    %102 = arith.addf %99, %101 : vector<8x18xf32>
    %c0_90 = arith.constant 0 : index
    %c90_91 = arith.constant 90 : index
    %103 = vector.load %arg16[%c0_90, %c90_91] : memref<8x144xf32, #tpu.memory_space<vmem>>, vector<8x18xf32>
    tpu.vector_store %arg16[%c0_90, %c90_91], %102 {strides = array<i32>} : memref<8x144xf32, #tpu.memory_space<vmem>>, vector<8x18xf32>,
    %c0_92 = arith.constant 0 : index
    %c96 = arith.constant 96 : index
    %104 = vector.load %arg16[%c0_92, %c96] : memref<8x144xf32, #tpu.memory_space<vmem>>, vector<8x12xf32>
    %c96_93 = arith.constant 96 : index
    %c342 = arith.constant 342 : index
    %105 = vector.load %arg11[%c96_93, %c342] : memref<144x456xf32, #tpu.memory_space<vmem>>, vector<12x38xf32>
    %cst_94 = arith.constant dense<0.000000e+00> : vector<8x38xf32>
    %106 = tpu.matmul %104, %105, %cst_94 {dimension_numbers = #tpu.dot_dimension_numbers<[1], [0], [0], [1], [0, 0, 1, 1], [], []>} : vector<8x12xf32>, vector<12x38xf32>, vector<8x38xf32> -> vector<8x38xf32>
    %107 = vector.extract_strided_slice %26 {offsets = [0, 342], sizes = [8, 38], strides = [1, 1]} : vector<8x456xf32> to vector<8x38xf32>
    %108 = arith.addf %106, %107 : vector<8x38xf32>
    %cst_95 = arith.constant 0.000000e+00 : f32
    %109 = vector.broadcast %cst_95 : f32 to vector<8x38xf32>
    %110 = arith.maximumf %108, %109 : vector<8x38xf32>
    %c342_96 = arith.constant 342 : index
    %c108 = arith.constant 108 : index
    %111 = vector.load %arg12[%c342_96, %c108] : memref<456x144xf32, #tpu.memory_space<vmem>>, vector<38x12xf32>
    %cst_97 = arith.constant dense<0.000000e+00> : vector<8x12xf32>
    %112 = tpu.matmul %110, %111, %cst_97 {dimension_numbers = #tpu.dot_dimension_numbers<[1], [0], [0], [1], [0, 0, 1, 1], [], []>} : vector<8x38xf32>, vector<38x12xf32>, vector<8x12xf32> -> vector<8x12xf32>
    %c0_98 = arith.constant 0 : index
    %c108_99 = arith.constant 108 : index
    %113 = vector.load %arg13[%c0_98, %c108_99] : memref<1x144xf32, #tpu.memory_space<vmem>>, vector<1x12xf32>
    %114 = vector.broadcast %113 : vector<1x12xf32> to vector<8x12xf32>
    %115 = arith.addf %112, %114 : vector<8x12xf32>
    %c0_100 = arith.constant 0 : index
    %c108_101 = arith.constant 108 : index
    %116 = vector.load %arg16[%c0_100, %c108_101] : memref<8x144xf32, #tpu.memory_space<vmem>>, vector<8x12xf32>
    tpu.vector_store %arg16[%c0_100, %c108_101], %115 {strides = array<i32>} : memref<8x144xf32, #tpu.memory_space<vmem>>, vector<8x12xf32>,
    %c0_102 = arith.constant 0 : index
    %c108_103 = arith.constant 108 : index
    %117 = vector.load %arg16[%c0_102, %c108_103] : memref<8x144xf32, #tpu.memory_space<vmem>>, vector<8x12xf32>
    %c108_104 = arith.constant 108 : index
    %c380 = arith.constant 380 : index
    %118 = vector.load %arg11[%c108_104, %c380] : memref<144x456xf32, #tpu.memory_space<vmem>>, vector<12x38xf32>
    %cst_105 = arith.constant dense<0.000000e+00> : vector<8x38xf32>
    %119 = tpu.matmul %117, %118, %cst_105 {dimension_numbers = #tpu.dot_dimension_numbers<[1], [0], [0], [1], [0, 0, 1, 1], [], []>} : vector<8x12xf32>, vector<12x38xf32>, vector<8x38xf32> -> vector<8x38xf32>
    %120 = vector.extract_strided_slice %26 {offsets = [0, 380], sizes = [8, 38], strides = [1, 1]} : vector<8x456xf32> to vector<8x38xf32>
    %121 = arith.addf %119, %120 : vector<8x38xf32>
    %cst_106 = arith.constant 0.000000e+00 : f32
    %122 = vector.broadcast %cst_106 : f32 to vector<8x38xf32>
    %123 = arith.maximumf %121, %122 : vector<8x38xf32>
    %c380_107 = arith.constant 380 : index
    %c120 = arith.constant 120 : index
    %124 = vector.load %arg12[%c380_107, %c120] : memref<456x144xf32, #tpu.memory_space<vmem>>, vector<38x12xf32>
    %cst_108 = arith.constant dense<0.000000e+00> : vector<8x12xf32>
    %125 = tpu.matmul %123, %124, %cst_108 {dimension_numbers = #tpu.dot_dimension_numbers<[1], [0], [0], [1], [0, 0, 1, 1], [], []>} : vector<8x38xf32>, vector<38x12xf32>, vector<8x12xf32> -> vector<8x12xf32>
    %c0_109 = arith.constant 0 : index
    %c120_110 = arith.constant 120 : index
    %126 = vector.load %arg13[%c0_109, %c120_110] : memref<1x144xf32, #tpu.memory_space<vmem>>, vector<1x12xf32>
    %127 = vector.broadcast %126 : vector<1x12xf32> to vector<8x12xf32>
    %128 = arith.addf %125, %127 : vector<8x12xf32>
    %c0_111 = arith.constant 0 : index
    %c120_112 = arith.constant 120 : index
    %129 = vector.load %arg16[%c0_111, %c120_112] : memref<8x144xf32, #tpu.memory_space<vmem>>, vector<8x12xf32>
    tpu.vector_store %arg16[%c0_111, %c120_112], %128 {strides = array<i32>} : memref<8x144xf32, #tpu.memory_space<vmem>>, vector<8x12xf32>,
    %c0_113 = arith.constant 0 : index
    %c120_114 = arith.constant 120 : index
    %130 = vector.load %arg16[%c0_113, %c120_114] : memref<8x144xf32, #tpu.memory_space<vmem>>, vector<8x12xf32>
    %c120_115 = arith.constant 120 : index
    %c418 = arith.constant 418 : index
    %131 = vector.load %arg11[%c120_115, %c418] : memref<144x456xf32, #tpu.memory_space<vmem>>, vector<12x38xf32>
    %cst_116 = arith.constant dense<0.000000e+00> : vector<8x38xf32>
    %132 = tpu.matmul %130, %131, %cst_116 {dimension_numbers = #tpu.dot_dimension_numbers<[1], [0], [0], [1], [0, 0, 1, 1], [], []>} : vector<8x12xf32>, vector<12x38xf32>, vector<8x38xf32> -> vector<8x38xf32>
    %133 = vector.extract_strided_slice %26 {offsets = [0, 418], sizes = [8, 38], strides = [1, 1]} : vector<8x456xf32> to vector<8x38xf32>
    %134 = arith.addf %132, %133 : vector<8x38xf32>
    %cst_117 = arith.constant 0.000000e+00 : f32
    %135 = vector.broadcast %cst_117 : f32 to vector<8x38xf32>
    %136 = arith.maximumf %134, %135 : vector<8x38xf32>
    %c418_118 = arith.constant 418 : index
    %c132 = arith.constant 132 : index
    %137 = vector.load %arg12[%c418_118, %c132] : memref<456x144xf32, #tpu.memory_space<vmem>>, vector<38x12xf32>
    %cst_119 = arith.constant dense<0.000000e+00> : vector<8x12xf32>
    %138 = tpu.matmul %136, %137, %cst_119 {dimension_numbers = #tpu.dot_dimension_numbers<[1], [0], [0], [1], [0, 0, 1, 1], [], []>} : vector<8x38xf32>, vector<38x12xf32>, vector<8x12xf32> -> vector<8x12xf32>
    %c0_120 = arith.constant 0 : index
    %c132_121 = arith.constant 132 : index
    %139 = vector.load %arg13[%c0_120, %c132_121] : memref<1x144xf32, #tpu.memory_space<vmem>>, vector<1x12xf32>
    %140 = vector.broadcast %139 : vector<1x12xf32> to vector<8x12xf32>
    %141 = arith.addf %138, %140 : vector<8x12xf32>
    %c0_122 = arith.constant 0 : index
    %c132_123 = arith.constant 132 : index
    %142 = vector.load %arg16[%c0_122, %c132_123] : memref<8x144xf32, #tpu.memory_space<vmem>>, vector<8x12xf32>
    tpu.vector_store %arg16[%c0_122, %c132_123], %141 {strides = array<i32>} : memref<8x144xf32, #tpu.memory_space<vmem>>, vector<8x12xf32>,
    return
  }
  func.func @transform_0(%arg0: i32) -> (i32, i32) {
    %c0_i32 = arith.constant 0 : i32
    %c0_i32_0 = arith.constant 0 : i32
    return %arg0, %c0_i32 : i32, i32
  }
  func.func @transform_1(%arg0: i32) -> (i32, i32) {
    %c0_i32 = arith.constant 0 : i32
    %c0_i32_0 = arith.constant 0 : i32
    return %arg0, %c0_i32 : i32, i32
  }
  func.func @transform_2(%arg0: i32) -> (i32, i32) {
    %c0_i32 = arith.constant 0 : i32
    %c0_i32_0 = arith.constant 0 : i32
    %c0_i32_1 = arith.constant 0 : i32
    return %c0_i32, %c0_i32_0 : i32, i32
  }
  func.func @transform_3(%arg0: i32) -> (i32, i32) {
    %c0_i32 = arith.constant 0 : i32
    %c0_i32_0 = arith.constant 0 : i32
    %c0_i32_1 = arith.constant 0 : i32
    return %c0_i32, %c0_i32_0 : i32, i32
  }
  func.func @transform_4(%arg0: i32) -> (i32, i32) {
    %c0_i32 = arith.constant 0 : i32
    %c0_i32_0 = arith.constant 0 : i32
    %c0_i32_1 = arith.constant 0 : i32
    return %c0_i32, %c0_i32_0 : i32, i32
  }
  func.func @transform_5(%arg0: i32) -> (i32, i32) {
    %c0_i32 = arith.constant 0 : i32
    %c0_i32_0 = arith.constant 0 : i32
    %c0_i32_1 = arith.constant 0 : i32
    return %c0_i32, %c0_i32_0 : i32, i32
  }
  func.func @transform_6(%arg0: i32) -> (i32, i32) {
    %c0_i32 = arith.constant 0 : i32
    %c0_i32_0 = arith.constant 0 : i32
    %c0_i32_1 = arith.constant 0 : i32
    return %c0_i32, %c0_i32_0 : i32, i32
  }
  func.func @transform_7(%arg0: i32) -> (i32, i32) {
    %c0_i32 = arith.constant 0 : i32
    %c0_i32_0 = arith.constant 0 : i32
    %c0_i32_1 = arith.constant 0 : i32
    return %c0_i32, %c0_i32_0 : i32, i32
  }
  func.func @transform_8(%arg0: i32) -> (i32, i32) {
    %c0_i32 = arith.constant 0 : i32
    %c0_i32_0 = arith.constant 0 : i32
    %c0_i32_1 = arith.constant 0 : i32
    return %c0_i32, %c0_i32_0 : i32, i32
  }
  func.func @transform_9(%arg0: i32) -> (i32, i32) {
    %c0_i32 = arith.constant 0 : i32
    %c0_i32_0 = arith.constant 0 : i32
    %c0_i32_1 = arith.constant 0 : i32
    return %c0_i32, %c0_i32_0 : i32, i32
  }
  func.func @transform_10(%arg0: i32) -> (i32, i32) {
    %c0_i32 = arith.constant 0 : i32
    %c0_i32_0 = arith.constant 0 : i32
    %c0_i32_1 = arith.constant 0 : i32
    return %c0_i32, %c0_i32_0 : i32, i32
  }
  func.func @transform_11(%arg0: i32) -> (i32, i32) {
    %c0_i32 = arith.constant 0 : i32
    %c0_i32_0 = arith.constant 0 : i32
    %c0_i32_1 = arith.constant 0 : i32
    return %c0_i32, %c0_i32_0 : i32, i32
  }
  func.func @transform_12(%arg0: i32) -> (i32, i32) {
    %c0_i32 = arith.constant 0 : i32
    %c0_i32_0 = arith.constant 0 : i32
    %c0_i32_1 = arith.constant 0 : i32
    return %c0_i32, %c0_i32_0 : i32, i32
  }
  func.func @transform_13(%arg0: i32) -> (i32, i32) {
    %c0_i32 = arith.constant 0 : i32
    %c0_i32_0 = arith.constant 0 : i32
    %c0_i32_1 = arith.constant 0 : i32
    return %c0_i32, %c0_i32_0 : i32, i32
  }
  func.func @transform_14(%arg0: i32) -> (i32, i32) {
    %c0_i32 = arith.constant 0 : i32
    %c0_i32_0 = arith.constant 0 : i32
    %c0_i32_1 = arith.constant 0 : i32
    return %c0_i32, %c0_i32_0 : i32, i32
  }
  func.func @transform_15(%arg0: i32) -> (i32, i32) {
    %c0_i32 = arith.constant 0 : i32
    %c0_i32_0 = arith.constant 0 : i32
    return %arg0, %c0_i32 : i32, i32
  }
}

</mosaic_0001>

<bundles_post_ra>
// kernel: tpu_custom_call.1
= control target key start
LH: loop header
LB: loop body
LE: loop exit
PB: predicated region body
PF: predicated region fallthrough
CT: control target
= control target key end

     0   :  { %s6774_s0 = inlined_call_operand.hbm [shape: f32[16,216], index: 0, kind: input, shape index: {}]   ;;  %s6775_s1 = inlined_call_operand.hbm [shape: f32[16,72], index: 1, kind: input, shape index: {}]   ;;  %s6776_s2 = inlined_call_operand.vmem [shape: f32[216,6], index: 2, kind: input, shape index: {}]   ;;  %s6777_s3 = inlined_call_operand.vmem [shape: f32[72,6], index: 3, kind: input, shape index: {}]   ;;  %s6778_s4 = inlined_call_operand.hbm [shape: f32[1,6], index: 4, kind: input, shape index: {}]   ;;  %s6779_s5 = inlined_call_operand.vmem [shape: f32[216,456], index: 5, kind: input, shape index: {}]   ;;  %s6780_s6 = inlined_call_operand.vmem [shape: f32[72,456], index: 6, kind: input, shape index: {}]   ;;  %s6781_s7 = inlined_call_operand.vmem [shape: f32[24,456], index: 7, kind: input, shape index: {}]   ;;  %s6782_s8 = inlined_call_operand.hbm [shape: f32[1,456], index: 8, kind: input, shape index: {}]   ;;  %s6783_s9 = inlined_call_operand.hbm [shape: f32[6,19], index: 9, kind: input, shape index: {}]   ;;  %s6784_s10 = inlined_call_operand.vmem [shape: f32[144,456], index: 10, kind: input, shape index: {}]   ;;  %s6785_s11 = inlined_call_operand.vmem [shape: f32[456,144], index: 11, kind: input, shape index: {}]   ;;  %s6786_s12 = inlined_call_operand.hbm [shape: f32[1,144], index: 12, kind: input, shape index: {}]   ;;  %s6787_s13 = inlined_call_operand.vmem [shape: f32[72,72], index: 13, kind: input, shape index: {}]   ;;  %s6788_s14 = inlined_call_operand.vmem [shape: f32[72,24], index: 14, kind: input, shape index: {}]   ;;  %s6789_s15 = inlined_call_operand.hbm [shape: f32[16,144], index: 15, kind: output, shape index: {}]  }
   0x1   :  { %6800 = sst [smem:[#allocation25_spill]] %s6774_s0 }
   0x2   :  { %6801 = sst [smem:[#allocation26_spill]] %s6778_s4 }
   0x3   :  { %6802 = sst [smem:[#allocation27_spill]] %s6782_s8 }
   0x4   :  { %6803 = sst [smem:[#allocation28_spill]] %s6783_s9 }
   0x5   :  { %6804 = sst [smem:[#allocation29_spill]] %s6786_s12 }
   0x6   :  { %6805 = sst [smem:[#allocation30_spill]] %s6789_s15 }
   0x7   :  { %20 = vsyncpa [#allocation3], 0 }
   0x8   :  { %22 = vsyncpa [#allocation3 + $0x1], 0 }
   0x9   :  { %23 = vsyncpa [#allocation6], 0 }
   0xa   :  { %25 = vsyncpa [#allocation6 + $0x1], 0 }
   0xb   :  { %26 = vsyncpa [#allocation9], 0 }
   0xc   :  { %27 = vsyncpa [#allocation12], 0 }
   0xd   :  { %28 = vsyncpa [#allocation4], 0 }
   0xe   :  { %30 = vsyncpa [#allocation4 + $0x1], 0  ;;  %s4875_s18 = smov 0   ;;  %s4877_s19 = smov 0  }
   0xf   :  { %s4879_s20 = smov 0   ;;  %s4881_s21 = smov 0  }
  0x10 LB: > { %6806 = sst [smem:[#allocation20_spill]] %s4748_s18  ;;  %s4762_s22 = smov [#allocation7]   ;;  %s4760_s21 = sphi %s4881_s21, %s6840_s21   ;;  %s4756_s20 = sphi %s4879_s20, %s6842_s20   ;;  %s4752_s19 = sphi %s4877_s19, %s6844_s19   ;;  %s4748_s18 = sphi %s4875_s18, %s6843_s18  }
  0x11   : > { %6807 = sst [smem:[#allocation21_spill]] %s4756_s20  ;;  %s411_s23 = sshll.u32 %s4762_s22, 4  ;;  %s412_s23 = int_to_ptr.vmem [resolvable:$true] %s411_s23 }
  0x12   : > { %s4896_s24 = sadd.s32 4294967295, %s4760_s21   ;;  %p3908_p0 = scmp.ge.s32.totalorder %s4760_s21, 1 }
  0x13   : > { %p6791_p1 = scmp.eq.s32.totalorder %s4896_s24, 0  ;;  %p392_p2 = scmp.lt.s32.totalorder %s4760_s21, 3 }
  0x14   : > { %s4763_s26 = smov [#allocation8]   ;;  %s4764_s28 = smov [#allocation10]  }
  0x15   : > { %p4901_p3 = pnand %p3908_p0, %p392_p2  ;;  %s431_s27 = sshll.u32 %s4763_s26, 4  ;;  %s432_s27 = int_to_ptr.vmem [resolvable:$true] %s431_s27 }
  0x16   : > { %s442_s29 = sshll.u32 %s4764_s28, 4  ;;  %s4765_s16 = smov [#allocation11]   ;;  %s4914_s29 = int_to_ptr.vmem [resolvable:$true] %s442_s29 }
  0x17   : > { %s6808_s25 = scalar_select %p4901_p3, 1, 0 }
  0x18   : > { %p4422_p5 = pneg %p4901_p3  ;;  %s4916_s17 = sshll.u32 %s4765_s16, 4  ;;  %s460_s17 = int_to_ptr.vmem [resolvable:$true] %s4916_s17 }
  0x19   : > { %s4531_s22 = scalar_lea.vmem %s412_s23, 16  ;;  %s4538_s26 = scalar_lea.vmem %s412_s23, 32 }
  0x1a   : > { %p4910_p6 = pnand %p4422_p5, %p6791_p1  ;;  %p4532_p8 = scmp.ne.s32.totalorder %s412_s23, %s4531_s22 }
  0x1b   : > { %p4539_p11 = scmp.lt.s32.totalorder %s412_s23, %s412_s23  ;;  %p4540_p12 = scmp.lt.s32.totalorder %s4538_s26, %s4531_s22 }
  0x1c   : > { %p4522_p7 = pneg %p4910_p6 }
  0x1d   : > { %p4541_p13 = por %p4540_p12, %p4539_p11 }
  0x1e   : > { %p4534_p9 = pnand %p4532_p8, %p4522_p7 }
  0x20   : > { %p4535_p10 = pneg %p4534_p9 }
  0x22   : > { %p4542_p0 = pnand %p4541_p13, %p4535_p10 }
  0x24   : > { %4545 = shalt.err (!%p4542_p0)
}
  0x25   : > { %s6810_s4 = sld [smem:[#allocation26_spill]]  ;;  %s4557_s16 = scalar_lea.vmem %s432_s27, 64 }
  0x26   : > { %p4558_p2 = scmp.ne.s32.totalorder %s432_s27, %s4557_s16  ;;  %p4565_p9 = scmp.lt.s32.totalorder %s432_s27, %s432_s27 }
  0x27   : > { %p4566_p4 = scmp.lt.s32.totalorder %s4557_s16, %s4557_s16 }
  0x28   : > { %p4560_p5 = pnand %p4558_p2, %p4522_p7 }
  0x29   : > { %p4567_p1 = por %p4566_p4, %p4565_p9 }
  0x2a   : > { %p4561_p8 = pneg %p4560_p5 }
  0x2b   : > { %4425 = dma.hbm_to_vmem [thread:$0]  (!%p4910_p6), %s6810_s4, 16, %s412_s23, [#allocation6]  }
  0x2c   : > { %p4568_p3 = pnand %p4567_p1, %p4561_p8 }
  0x2e   : > { %4571 = shalt.err (!%p4568_p3)
}
  0x2f   : > { %s6811_s8 = sld [smem:[#allocation27_spill]]  ;;  %s4583_s15 = scalar_lea.vmem %s4914_s29, 128 }
  0x30   : > { %p4584_p10 = scmp.ne.s32.totalorder %s4914_s29, %s4583_s15  ;;  %p4591_p4 = scmp.lt.s32.totalorder %s4914_s29, %s4914_s29 }
  0x31   : > { %p4592_p1 = scmp.lt.s32.totalorder %s4583_s15, %s4583_s15 }
  0x32   : > { %p4586_p11 = pnand %p4584_p10, %p4522_p7 }
  0x33   : > { %p4593_p3 = por %p4592_p1, %p4591_p4 }
  0x34   : > { %p4587_p12 = pneg %p4586_p11 }
  0x35   : > { %4428 = dma.hbm_to_vmem [thread:$0]  (!%p4910_p6), %s6811_s8, 64, %s432_s27, [#allocation9]  }
  0x36   : > { %p4594_p13 = pnand %p4593_p3, %p4587_p12 }
  0x38   : > { %4597 = shalt.err (!%p4594_p13)
}
  0x39   : > { %s6812_s9 = sld [smem:[#allocation28_spill]]  ;;  %s4609_s27 = scalar_lea.vmem %s460_s17, 32 }
  0x3a   : > { %p4610_p0 = scmp.ne.s32.totalorder %s460_s17, %s4609_s27  ;;  %p4617_p8 = scmp.lt.s32.totalorder %s460_s17, %s460_s17 }
  0x3b   : > { %p4618_p9 = scmp.lt.s32.totalorder %s4609_s27, %s4609_s27 }
  0x3c   : > { %p4612_p2 = pnand %p4610_p0, %p4522_p7 }
  0x3d   : > { %p4619_p10 = por %p4618_p9, %p4617_p8 }
  0x3e   : > { %p4613_p5 = pneg %p4612_p2 }
  0x3f   : > { %4431 = dma.hbm_to_vmem [thread:$0]  (!%p4910_p6), %s6812_s9, 128, %s4914_s29, [#allocation9]  }
  0x40   : > { %p4620_p11 = pnand %p4619_p10, %p4613_p5 }
  0x42   : > { %4623 = shalt.err (!%p4620_p11)
}
  0x43   : > { %s6813_s12 = sld [smem:[#allocation29_spill]]  ;;  %s3907_s29 = sadd.s32 4294967294, %s4760_s21  }
  0x44   : > { %s4960_s30 = sadd.s32 1, %s4760_s21   ;;  %s43_s15 = sadd.s32 1, %s4756_s20 }
  0x45   : > { %6814 = sst [smem:[#allocation22_spill]] %s4960_s30  ;;  %s40_s26 = ssub.s32 %s4760_s21, %s4960_s30 }
  0x46   : > { %p41_p7 = scmp.eq.s32.totalorder %s40_s26, 0  ;;  %p50_p12 = scmp.ne.s32.totalorder %s4756_s20, %s4752_s19 }
  0x47   : > { %p51_p4 = scmp.eq.s32.totalorder %s4760_s21, 0  ;;  %p56_p1 = scmp.ne.s32.totalorder %s4752_s19, %s4748_s18 }
  0x48   : > { %s4971_s23 = scalar_select %p41_p7, %s4756_s20, %s43_s15  }
  0x49   : > { %4434 = dma.hbm_to_vmem [thread:$0]  (!%p4910_p6), %s6813_s12, 32, %s460_s17, [#allocation12]  }
  0x4a   : > { %6815 = sst [smem:[#allocation23_spill]] %s4971_s23  ;;  %p4973_p3 = por %p51_p4, %p50_p12 }
  0x4b   : > { %p6817_p13 = scmp.eq.s32.totalorder %s4896_s24, 0  ;;  %p379_p0 = scmp.eq.s32.totalorder %s4896_s24, 1 }
  0x4c   : > { %p385_p2 = scmp.eq.s32.totalorder %s3907_s29, 1  ;;  %p4450_p5 = scmp.lt.s32.totalorder %s4760_s21, 2 }
  0x4d   : > { %p4979_p6 = por %p6817_p13, %p56_p1  ;;  %s4986_s27 = sand.u32 1, %s4756_s20  }
  0x4e   : > { %p4988_p8 = por %p379_p0, %p50_p12  ;;  %p4992_p9 = por %p385_p2, %p56_p1 }
  0x4f   : > { %s6818_s17 = scalar_select %p4979_p6, 1, 0 }
  0x50   : > { %s6819_s16 = scalar_select %p4988_p8, 1, 0 }
  0x51   : > { %s6820_s22 = scalar_select %p4992_p9, 1, 0 }
  0x52   : > { %s3914_s26 = sshll.u32 %s4986_s27, 4  ;;  %s3987_s15 = sshll.u32 %s4760_s21, 8 }
  0x53   : > { %6821 = sst [smem:[#allocation24_spill]] %s6820_s22  ;;  %s480_s9 = scalar_lea.vmem [#allocation2], %s3914_s26 }
  0x54   : > { %s6822_s0 = sld [smem:[#allocation25_spill]]  ;;  %s488_s12 = sshll.u32 %s480_s9, 4  ;;  %s5003_s12 = int_to_ptr.vmem [resolvable:$true] %s488_s12 }
  0x55   : > { %p5007_p10 = pnand %p4450_p5, %p4973_p3  ;;  %s477_s22 = scalar_lea.sflag [#allocation3], %s4986_s27 }
  0x57   : > { %p4626_p7 = pneg %p5007_p10 }
  0x5a   : > { %s5001_s29 = scalar_lea.hbm %s6822_s0, %s3987_s15  ;;  %s4629_s28 = scalar_lea.hbm %s6822_s0, 512 }
  0x5b   : > { %s4624_s4 = scalar_lea.hbm %s5001_s29, 256  ;;  %p4630_p1 = scmp.lt.s32.totalorder %s5001_s29, %s6822_s0 }
  0x5c   : > { %p4625_p11 = scmp.ne.s32.totalorder %s5001_s29, %s4624_s4  ;;  %p4631_p3 = scmp.lt.s32.totalorder %s4629_s28, %s4624_s4 }
  0x5e   : > { %p4627_p12 = pnand %p4626_p7, %p4625_p11  ;;  %p4632_p13 = por %p4631_p3, %p4630_p1 }
  0x60   : > { %p4628_p4 = pneg %p4627_p12 }
  0x62   : > { %p4633_p0 = pnand %p4632_p13, %p4628_p4 }
  0x64   : > { %4636 = shalt.err (!%p4633_p0)
}
  0x65   : > { %s4637_s20 = scalar_lea.vmem %s5003_s12, 256  ;;  %s4766_s8 = smov [#allocation2]  }
  0x66   : > { %p4638_p2 = scmp.ne.s32.totalorder %s5003_s12, %s4637_s20  ;;  %s4642_s9 = sshll.u32 %s4766_s8, 4  ;;  %s4643_s9 = int_to_ptr.vmem [resolvable:$false] %s4642_s9 }
  0x67   : > { %s4644_s30 = scalar_lea.vmem %s4643_s9, 512  ;;  %p4645_p12 = scmp.lt.s32.totalorder %s5003_s12, %s4643_s9 }
  0x68   : > { %p4640_p5 = pnand %p4638_p2, %p4626_p7  ;;  %p4646_p9 = scmp.lt.s32.totalorder %s4644_s30, %s4637_s20 }
  0x6a   : > { %p4641_p11 = pneg %p4640_p5  ;;  %p4647_p8 = por %p4646_p9, %p4645_p12 }
  0x6c   : > { %p4648_p1 = pnand %p4647_p8, %p4641_p11 }
  0x6e   : > { %4651 = shalt.err (!%p4648_p1)
}
  0x6f   : > { %4438 = dma.hbm_to_vmem [thread:$0]  (!%p5007_p10), %s5001_s29, 256, %s5003_s12, %s477_s22  }
  0x70   : > { %s3918_s4 = sshll.u32 %s4760_s21, 7  ;;  %s6824_s8 = sshll.u32 %s4986_s27, 3 }
  0x71   : > { %s5042_s15 = scalar_lea.hbm %s6775_s1, %s3918_s4  ;;  %s499_s20 = scalar_lea.vmem [#allocation5], %s6824_s8 }
  0x72   : > { %s506_s30 = sshll.u32 %s499_s20, 4  ;;  %s6825_s9 = sand.u32 1, %s4760_s21   ;;  %s507_s30 = int_to_ptr.vmem [resolvable:$true] %s506_s30 }
  0x73   : > { %s496_s0 = scalar_lea.sflag [#allocation6], %s6825_s9  ;;  %s4652_s18 = scalar_lea.hbm %s5042_s15, 128 }
  0x74   : > { %p4653_p8 = scmp.ne.s32.totalorder %s5042_s15, %s4652_s18  ;;  %s4657_s29 = scalar_lea.hbm %s6775_s1, 256 }
  0x75   : > { %p4658_p3 = scmp.lt.s32.totalorder %s5042_s15, %s6775_s1  ;;  %p4659_p13 = scmp.lt.s32.totalorder %s4657_s29, %s4652_s18 }
  0x76   : > { %p4655_p9 = pnand %p4653_p8, %p4626_p7 }
  0x77   : > { %p4660_p0 = por %p4659_p13, %p4658_p3 }
  0x78   : > { %p4656_p4 = pneg %p4655_p9 }
  0x7a   : > { %p4661_p2 = pnand %p4660_p0, %p4656_p4 }
  0x7c   : > { %4664 = shalt.err (!%p4661_p2)
}
  0x7d   : > { %s4665_s28 = scalar_lea.vmem %s507_s30, 128  ;;  %s4767_s26 = smov [#allocation5]  }
  0x7e   : > { %p4666_p5 = scmp.ne.s32.totalorder %s507_s30, %s4665_s28  ;;  %s4670_s8 = sshll.u32 %s4767_s26, 4  ;;  %s4671_s8 = int_to_ptr.vmem [resolvable:$false] %s4670_s8 }
  0x7f   : > { %s4672_s20 = scalar_lea.vmem %s4671_s8, 256  ;;  %p4673_p1 = scmp.lt.s32.totalorder %s507_s30, %s4671_s8 }
  0x80   : > { %p4668_p11 = pnand %p4666_p5, %p4626_p7  ;;  %p4674_p8 = scmp.lt.s32.totalorder %s4672_s20, %s4665_s28 }
  0x82   : > { %p4669_p12 = pneg %p4668_p11  ;;  %p4675_p9 = por %p4674_p8, %p4673_p1 }
  0x84   : > { %p4676_p6 = pnand %p4675_p9, %p4669_p12 }
  0x86   : > { %4679 = shalt.err (!%p4676_p6)
}
  0x87   : > { %4441 = dma.hbm_to_vmem [thread:$0]  (!%p5007_p10), %s5042_s15, 128, %s507_s30, %s496_s0  }
  0x88   : > { %p6826_p4 = scmp.ne.s32.totalorder %s6808_s25, 0 }
  0x89   : > { %s5069_s18 = sand.u32 (!%p6826_p4), 1, %s4752_s19   ;;  %p6827_p6 = scmp.ne.s32.totalorder (!%p6826_p4), %s6818_s17, 0 }
  0x8a   : > { %515 = sbr.rel (%p6826_p4) target bundleno = 5958 (0x1746), region = 80  ;;  %s3920_s9 = sshll.u32 (!%p6826_p4), %s5069_s18, 4 }
  0x8b   : > { %s518_s12 = scalar_lea.sflag (!%p6826_p4), [#allocation3], %s5069_s18  ;;  %s5075_s22 = scalar_lea.vmem (!%p6826_p4), [#allocation2], %s3920_s9 }
  0x8f   : > { %4723 = dma.done.wait (%p6827_p6), %s518_s12, 256  }
  0x90   : > { %4725 = vsyncadd (%p6827_p6), %s518_s12, 4294967040  ;;  %s526_s0 = sand.u32 1, %s4896_s24   ;;  %s3921_s25 = sshll.u32 %s5069_s18, 3 }
  0x91   : > { %s527_s23 = scalar_lea.sflag [#allocation6], %s526_s0  ;;  %s5083_s15 = scalar_lea.vmem [#allocation5], %s3921_s25 }
  0x92   : > { %4727 = dma.done.wait (%p6827_p6), %s527_s23, 128  }
  0x93   : > { %4729 = vsyncadd (%p6827_p6), %s527_s23, 4294967168  ;;  %p6828_p10 = scmp.eq.s32.totalorder %s4896_s24, 0 }
  0x95   : > { %4731 = dma.done.wait (%p6828_p10), [#allocation6], 16   ;;  %p6829_p7 = pmov %p6828_p10 }
  0x97   : > { %4733 = vsyncadd (%p6829_p7), [#allocation6], 4294967280  ;;  %p6830_p3 = pmov %p6829_p7 }
  0x99   : > { %4735 = dma.done.wait (%p6830_p3), [#allocation9], 192   ;;  %p6831_p13 = pmov %p6830_p3 }
  0x9a   : > { %p6832_p0 = pmov %p6830_p3 }
  0x9b   : > { %4737 = vsyncadd (%p6831_p13), [#allocation9], 4294967104 }
  0x9c   : > { %4739 = dma.done.wait (%p6832_p0), [#allocation12], 32   ;;  %p6833_p2 = pmov %p6832_p0 }
  0x9d   : > { %v4768_v0 = vmov 0.0   ;;  %vm4769_vm0 = vmmov 0   ;;  %v609_v1 = vld [vmem:[%s6787_s13 + $0x40] sm:$0xff]  ;;  %v608_v2 = vld [vmem:[%s6787_s13 + $0x38] sm:$0xff]  ;;  %v607_v3 = vld [vmem:[%s6787_s13 + $0x30] sm:$0xff]  ;;  %vm610_vm1 = vcmask 588800  }
  0x9e   : > { %4741 = vsyncadd (%p6833_p2), [#allocation12], 4294967264  ;;  %4119 = vmatprep.subr.mxu0 %v4768_v0  ;;  %4137 = vmatprep.mubr.msk.f32.mxu0 %vm4769_vm0, %v4768_v0  ;;  %v693_v4 = vld [vmem:[%s6788_s14 + $0x40] sm:$0xff]  ;;  %v692_v5 = vld [vmem:[%s6788_s14 + $0x38] sm:$0xff]  ;;  %vm880_vm2 = vcmask 719872   ;;  %vm1854_vm3 = vcmask 1044480  }
  0x9f   : > { %4140 = vmatprep.subr.mxu1 %v4768_v0  ;;  %4158 = vmatprep.mubr.msk.f32.mxu1 %vm4769_vm0, %v4768_v0  ;;  %v606_v6 = vld [vmem:[%s6787_s13 + $0x28] sm:$0xff]  ;;  %v691_v7 = vld [vmem:[%s6788_s14 + $0x30] sm:$0xff]  ;;  %v605_v8 = vld [vmem:[%s6787_s13 + $0x20] sm:$0xff]  ;;  %s4770_s12 = smov 122   ;;  %vm1402_vm5 = vcmask 195584   ;;  %vm1583_vm7 = vcmask 1045504  }
  0xa0   : > { %4120 = vmatpush3.msra.mxu0 %v609_v1  ;;  %4141 = vmatpush3.msra.mxu1 %v693_v4  ;;  %v690_v9 = vld [vmem:[%s6788_s14 + $0x28] sm:$0xff]  ;;  %v604_v10 = vld [vmem:[%s6787_s13 + $0x18] sm:$0xff]  ;;  %v689_v11 = vld [vmem:[%s6788_s14 + $0x20] sm:$0xff]  ;;  %vm1579_vm8 = vcmask 48128   ;;  %vm1672_vm9 = vcmask 1042432   ;;  %vm1668_vm10 = vcmask 154624  }
  0xa1   : > { %4121 = vmatprep.subr.mxu0 %v4768_v0  ;;  %4142 = vmatprep.subr.mxu1 %v4768_v0  ;;  %v603_v12 = vld [vmem:[%s6787_s13 + $0x10] sm:$0xff]  ;;  %v688_v13 = vld [vmem:[%s6788_s14 + $0x18] sm:$0xff]  ;;  %v602_v14 = vld [vmem:[%s6787_s13 + $0x8] sm:$0xff]  ;;  %vm1900_vm11 = vcmask 1040384   ;;  %s5953_s29 = scalar_lea.vmem [#allocation13], %s3920_s9  ;;  %vm1896_vm12 = vcmask 465920  }
  0xa2   : > { %4122 = vmatpush3.msra.mxu0 %v608_v2  ;;  %4143 = vmatpush3.msra.mxu1 %v692_v5  ;;  %v687_v15 = vld [vmem:[%s6788_s14 + $0x10] sm:$0xff]  ;;  %v601_v16 = vld [vmem:[%s6787_s13] sm:$0xff]  ;;  %v686_v18 = vld [vmem:[%s6788_s14 + $0x8] sm:$0xff]  ;;  %s4772_s27 = smov 52   ;;  %vm1995_vm13 = vcmask 1041408   ;;  %s4773_s23 = smov 6  }
  0xa3   : > { %4123 = vmatprep.subr.mxu0 %v4768_v0  ;;  %4144 = vmatprep.subr.mxu1 %v4768_v0  ;;  %v5168_v17 = vld [vmem:[%s5083_s15] sm:$0xff]  ;;  %v808_v21 = vld [vmem:[%s6777_s3 + $0x38] sm:$0xff]  ;;  %v807_v22 = vld [vmem:[%s6777_s3 + $0x30] sm:$0xff]  ;;  %s4771_s15 = smov 109   ;;  %vm2129_vm14 = vcmask 1043456   ;;  %s4775_s8 = smov 123  }
  0xa4   : > { %4124 = vmatpush3.msra.mxu0 %v607_v3  ;;  %4145 = vmatpush3.msra.mxu1 %v691_v7  ;;  %v685_v19 = vld [vmem:[%s6788_s14] sm:$0xff]  ;;  %v806_v23 = vld [vmem:[%s6777_s3 + $0x28] sm:$0xff]  ;;  %v804_v25 = vld [vmem:[%s6777_s3 + $0x18] sm:$0xff]  ;;  %vm1977_vm15 = vcmask 195632   ;;  %s4779_s4 = smov 42   ;;  %s4782_s17 = smov 38  }
  0xa5   : > { %4125 = vmatprep.subr.mxu0 %v4768_v0  ;;  %4146 = vmatprep.subr.mxu1 %v4768_v0  ;;  %v809_v20 = vld [vmem:[%s6777_s3 + $0x40] sm:$0xff]  ;;  %v803_v26 = vld [vmem:[%s6777_s3 + $0x10] sm:$0xff]  ;;  %v802_v27 = vld [vmem:[%s6777_s3 + $0x8] sm:$0xff]  ;;  %s4788_s9 = smov 4   ;;  %s4789_s0 = smov 108  }
  0xa6   : > { %4126 = vmatpush3.msra.mxu0 %v606_v6  ;;  %4147 = vmatpush3.msra.mxu1 %v690_v9  ;;  %v805_v24 = vld [vmem:[%s6777_s3 + $0x20] sm:$0xff]  ;;  %v1103_v29 = vld [vmem:[%s6780_s6 + $0x108] sm:$0xff]  ;;  %v1105_v47 = vld [vmem:[%s6780_s6 + $0x118] sm:$0xff]  ;;  %s4790_s26 = smov 8   ;;  %s4792_s30 = smov 120  }
  0xa7   : > { %4127 = vmatprep.subr.mxu0 %v4768_v0  ;;  %4148 = vmatprep.subr.mxu1 %v4768_v0  ;;  %v801_v28 = vld [vmem:[%s6777_s3] sm:$0xff]  ;;  %v1099_v31 = vld [vmem:[%s6780_s6 + $0xe8] sm:$0xff]  ;;  %v1104_v48 = vld [vmem:[%s6780_s6 + $0x110] sm:$0xff]  ;;  %s4793_s25 = smov 124   ;;  %p6835_p11 = scmp.ne.s32.totalorder %s6819_s16, 0 }
  0xa8   : > { %4128 = vmatpush3.msra.mxu0 %v605_v8  ;;  %4149 = vmatpush3.msra.mxu1 %v689_v11  ;;  %v1102_v30 = vld [vmem:[%s6780_s6 + $0x100] sm:$0xff]  ;;  %v1095_v33 = vld [vmem:[%s6780_s6 + $0xc8] sm:$0xff]  ;;  %v1101_v49 = vld [vmem:[%s6780_s6 + $0xf8] sm:$0xff] }
  0xa9   : > { %4129 = vmatprep.subr.mxu0 %v4768_v0  ;;  %4150 = vmatprep.subr.mxu1 %v4768_v0  ;;  %v1098_v32 = vld [vmem:[%s6780_s6 + $0xe0] sm:$0xff]  ;;  %v1091_v35 = vld [vmem:[%s6780_s6 + $0xa8] sm:$0xff]  ;;  %v1100_v50 = vld [vmem:[%s6780_s6 + $0xf0] sm:$0xff] }
  0xaa   : > { %4130 = vmatpush3.msra.mxu0 %v604_v10  ;;  %4151 = vmatpush3.msra.mxu1 %v688_v13  ;;  %v1094_v34 = vld [vmem:[%s6780_s6 + $0xc0] sm:$0xff]  ;;  %v1087_v37 = vld [vmem:[%s6780_s6 + $0x88] sm:$0xff]  ;;  %v1097_v51 = vld [vmem:[%s6780_s6 + $0xd8] sm:$0xff] }
  0xab   : > { %4131 = vmatprep.subr.mxu0 %v4768_v0  ;;  %4152 = vmatprep.subr.mxu1 %v4768_v0  ;;  %v1090_v36 = vld [vmem:[%s6780_s6 + $0xa0] sm:$0xff]  ;;  %v1083_v39 = vld [vmem:[%s6780_s6 + $0x68] sm:$0xff]  ;;  %v1096_v52 = vld [vmem:[%s6780_s6 + $0xd0] sm:$0xff] }
  0xac   : > { %4132 = vmatpush3.msra.mxu0 %v603_v12  ;;  %4153 = vmatpush3.msra.mxu1 %v687_v15  ;;  %v1086_v38 = vld [vmem:[%s6780_s6 + $0x80] sm:$0xff]  ;;  %v1079_v41 = vld [vmem:[%s6780_s6 + $0x48] sm:$0xff]  ;;  %v1093_v53 = vld [vmem:[%s6780_s6 + $0xb8] sm:$0xff] }
  0xad   : > { %4133 = vmatprep.subr.mxu0 %v4768_v0  ;;  %4154 = vmatprep.subr.mxu1 %v4768_v0  ;;  %v1082_v40 = vld [vmem:[%s6780_s6 + $0x60] sm:$0xff]  ;;  %v1075_v43 = vld [vmem:[%s6780_s6 + $0x28] sm:$0xff]  ;;  %v1092_v54 = vld [vmem:[%s6780_s6 + $0xb0] sm:$0xff] }
  0xae   : > { %4134 = vmatpush3.msra.mxu0 %v602_v14  ;;  %4155 = vmatpush3.msra.mxu1 %v686_v18  ;;  %v1078_v42 = vld [vmem:[%s6780_s6 + $0x40] sm:$0xff]  ;;  %v1071_v45 = vld [vmem:[%s6780_s6 + $0x8] sm:$0xff]  ;;  %v1089_v55 = vld [vmem:[%s6780_s6 + $0x98] sm:$0xff] }
  0xaf   : > { %4135 = vmatprep.subr.mxu0 %v4768_v0  ;;  %4156 = vmatprep.subr.mxu1 %v4768_v0  ;;  %v1074_v44 = vld [vmem:[%s6780_s6 + $0x20] sm:$0xff]  ;;  %v1088_v56 = vld [vmem:[%s6780_s6 + $0x90] sm:$0xff]  ;;  %v1085_v57 = vld [vmem:[%s6780_s6 + $0x78] sm:$0xff] }
  0xb0   : > { %4136 = vmatpush3.msra.mxu0 %v601_v16  ;;  %4157 = vmatpush3.msra.mxu1 %v685_v19  ;;  %v1070_v46 = vld [vmem:[%s6780_s6] sm:$0xff]  ;;  %v1084_v58 = vld [vmem:[%s6780_s6 + $0x70] sm:$0xff]  ;;  %v1081_v59 = vld [vmem:[%s6780_s6 + $0x58] sm:$0xff] }
  0xb1   : > { %4138 = vmatmul.mubr.msk.f32.vlgmr.msra.gmra.mxu0 %vm610_vm1, %v5168_v17  ;;  %4161 = vmatprep.subr.mxu0 %v4768_v0  ;;  %v1080_v60 = vld [vmem:[%s6780_s6 + $0x50] sm:$0xff]  ;;  %v1077_v61 = vld [vmem:[%s6780_s6 + $0x38] sm:$0xff]  ;;  %v1023_v2 = vld [vmem:[%s6779_s5 + $0x1e8] sm:$0xff] }
  0xb2   : > { %4179 = vmatprep.mubr.msk.f32.mxu0 %vm4769_vm0, %v4768_v0  ;;  %884 = vmatprep.subr.mxu1 %v4768_v0  ;;  %v1076_v62 = vld [vmem:[%s6780_s6 + $0x30] sm:$0xff]  ;;  %v1073_v63 = vld [vmem:[%s6780_s6 + $0x18] sm:$0xff]  ;;  %v1022_v3 = vld [vmem:[%s6779_s5 + $0x1e0] sm:$0xff] }
  0xb3   : > { %4162 = vmatpush3.msra.mxu0 %v809_v20  ;;  %v1072_v1 = vld [vmem:[%s6780_s6 + $0x10] sm:$0xff]  ;;  %v1019_v4 = vld [vmem:[%s6779_s5 + $0x1c8] sm:$0xff]  ;;  %v1018_v6 = vld [vmem:[%s6779_s5 + $0x1c0] sm:$0xff] }
  0xb4   : > { %4163 = vmatprep.subr.mxu0 %v4768_v0  ;;  %v5345_v5 = vld [vmem:[%s5075_s22 + $0x8] sm:$0xff]  ;;  %v1014_v8 = vld [vmem:[%s6779_s5 + $0x1a0] sm:$0xff] }
  0xb5   : > { %4164 = vmatpush3.msra.mxu0 %v808_v21  ;;  %v1015_v7 = vld [vmem:[%s6779_s5 + $0x1a8] sm:$0xff]  ;;  %v1010_v10 = vld [vmem:[%s6779_s5 + $0x180] sm:$0xff] }
  0xb6   : > { %4165 = vmatprep.subr.mxu0 %v4768_v0  ;;  %v1011_v9 = vld [vmem:[%s6779_s5 + $0x188] sm:$0xff]  ;;  %v1006_v12 = vld [vmem:[%s6779_s5 + $0x160] sm:$0xff] }
  0xb7   : > { %4166 = vmatpush3.msra.mxu0 %v807_v22  ;;  %v1007_v11 = vld [vmem:[%s6779_s5 + $0x168] sm:$0xff]  ;;  %v1002_v14 = vld [vmem:[%s6779_s5 + $0x140] sm:$0xff] }
  0xb8   : > { %4167 = vmatprep.subr.mxu0 %v4768_v0  ;;  %v1003_v13 = vld [vmem:[%s6779_s5 + $0x148] sm:$0xff]  ;;  %v998_v16 = vld [vmem:[%s6779_s5 + $0x120] sm:$0xff] }
  0xb9   : > { %4168 = vmatpush3.msra.mxu0 %v806_v23  ;;  %v999_v15 = vld [vmem:[%s6779_s5 + $0x128] sm:$0xff]  ;;  %v994_v18 = vld [vmem:[%s6779_s5 + $0x100] sm:$0xff] }
  0xba   : > { %4169 = vmatprep.subr.mxu0 %v4768_v0  ;;  %v991_v19 = vld [vmem:[%s6779_s5 + $0xe8] sm:$0xff]  ;;  %v990_v20 = vld [vmem:[%s6779_s5 + $0xe0] sm:$0xff] }
  0xbb   : > { %4170 = vmatpush3.msra.mxu0 %v805_v24  ;;  %v987_v21 = vld [vmem:[%s6779_s5 + $0xc8] sm:$0xff]  ;;  %v986_v22 = vld [vmem:[%s6779_s5 + $0xc0] sm:$0xff] }
  0xbc   : > { %4171 = vmatprep.subr.mxu0 %v4768_v0  ;;  %v983_v23 = vld [vmem:[%s6779_s5 + $0xa8] sm:$0xff]  ;;  %v982_v24 = vld [vmem:[%s6779_s5 + $0xa0] sm:$0xff] }
  0xbd   : > { %4172 = vmatpush3.msra.mxu0 %v804_v25  ;;  %v979_v25 = vld [vmem:[%s6779_s5 + $0x88] sm:$0xff] }
  0xbe   : > { %4173 = vmatprep.subr.mxu0 %v4768_v0 }
  0xbf   : > { %4174 = vmatpush3.msra.mxu0 %v803_v26  ;;  %v978_v26 = vld [vmem:[%s6779_s5 + $0x80] sm:$0xff] }
  0xc0   : > { %4175 = vmatprep.subr.mxu0 %v4768_v0 }
  0xc1   : > { %4176 = vmatpush3.msra.mxu0 %v802_v27  ;;  %v975_v27 = vld [vmem:[%s6779_s5 + $0x68] sm:$0xff] }
  0xc2   : > { %4177 = vmatprep.subr.mxu0 %v4768_v0 }
  0xc3   : > { %4178 = vmatpush3.msra.mxu0 %v801_v28  ;;  %v974_v28 = vld [vmem:[%s6779_s5 + $0x60] sm:$0xff] }
  0xc4   : > { %4180 = vmatmul.mubr.msk.f32.vlgmr.msra.gmra.mxu0 %vm610_vm1, %v5168_v17  ;;  %1120 = vmatprep.subr.mxu0 %v1103_v29  ;;  %v971_v29 = vld [vmem:[%s6779_s5 + $0x48] sm:$0xff] }
  0xc5   : > { %1170 = vmatprep.mubr.f32.mxu0 %v4768_v0  ;;  %1121 = vmatpush1.msra.mxu0 %v1102_v30  ;;  %v970_v30 = vld [vmem:[%s6779_s5 + $0x40] sm:$0xff] }
  0xc6   : > { %1122 = vmatprep.subr.mxu0 %v1099_v31  ;;  %v967_v31 = vld [vmem:[%s6779_s5 + $0x28] sm:$0xff] }
  0xc7   : > { %1123 = vmatpush1.msra.mxu0 %v1098_v32  ;;  %v966_v32 = vld [vmem:[%s6779_s5 + $0x20] sm:$0xff] }
  0xc8   : > { %1124 = vmatprep.subr.mxu0 %v1095_v33  ;;  %v963_v33 = vld [vmem:[%s6779_s5 + $0x8] sm:$0xff] }
  0xc9   : > { %1125 = vmatpush1.msra.mxu0 %v1094_v34  ;;  %v962_v34 = vld [vmem:[%s6779_s5] sm:$0xff] }
  0xca   : > { %1126 = vmatprep.subr.mxu0 %v1091_v35  ;;  %v1067_v35 = vld [vmem:[%s6779_s5 + $0x348] sm:$0xff] }
  0xcb   : > { %1127 = vmatpush1.msra.mxu0 %v1090_v36  ;;  %v1066_v36 = vld [vmem:[%s6779_s5 + $0x340] sm:$0xff] }
  0xcc   : > { %1128 = vmatprep.subr.mxu0 %v1087_v37  ;;  %v1063_v37 = vld [vmem:[%s6779_s5 + $0x328] sm:$0xff] }
  0xcd   : > { %1129 = vmatpush1.msra.mxu0 %v1086_v38  ;;  %v1062_v38 = vld [vmem:[%s6779_s5 + $0x320] sm:$0xff] }
  0xce   : > { %1130 = vmatprep.subr.mxu0 %v1083_v39  ;;  %v1059_v39 = vld [vmem:[%s6779_s5 + $0x308] sm:$0xff] }
  0xcf   : > { %1131 = vmatpush1.msra.mxu0 %v1082_v40 }
  0xd0   : > { %1132 = vmatprep.subr.mxu0 %v1079_v41  ;;  %v1058_v41 = vld [vmem:[%s6779_s5 + $0x300] sm:$0xff] }
  0xd1   : > { %1133 = vmatpush1.msra.mxu0 %v1078_v42 }
  0xd2   : > { %1134 = vmatprep.subr.mxu0 %v1075_v43  ;;  %v789_v43 = vld [vmem:[%s6776_s2 + $0x78] sm:$0xff] }
  0xd3   : > { %1135 = vmatpush1.msra.mxu0 %v1074_v44 }
  0xd4   : > { %1136 = vmatprep.subr.mxu0 %v1071_v45  ;;  %v1055_v45 = vld [vmem:[%s6779_s5 + $0x2e8] sm:$0xff] }
  0xd5   : > { %1137 = vmatpush1.msra.mxu0 %v1070_v46  ;;  %v788_v46 = vld [vmem:[%s6776_s2 + $0x70] sm:$0xff] }
  0xd6   : > { %1191 = vmatprep.subr.mxu0 %v1105_v47  ;;  %3932 = vmatmul.mubr.msk.f32.vlgmr.msra.gmra.mxu0 %vm610_vm1, %v5168_v17  ;;  %v1054_v47 = vld [vmem:[%s6779_s5 + $0x2e0] sm:$0xff] }
  0xd7   : > { %1192 = vmatpush1.msra.mxu0 %v1104_v48  ;;  %1241 = vmatprep.mubr.f32.mxu0 %v4768_v0  ;;  %v1051_v48 = vld [vmem:[%s6779_s5 + $0x2c8] sm:$0xff] }
  0xd8   : > { %1193 = vmatprep.subr.mxu0 %v1101_v49  ;;  %v787_v49 = vld [vmem:[%s6776_s2 + $0x68] sm:$0xff] }
  0xd9   : > { %1194 = vmatpush1.msra.mxu0 %v1100_v50  ;;  %v1050_v50 = vld [vmem:[%s6779_s5 + $0x2c0] sm:$0xff] }
  0xda   : > { %1195 = vmatprep.subr.mxu0 %v1097_v51  ;;  %v1047_v51 = vld [vmem:[%s6779_s5 + $0x2a8] sm:$0xff] }
  0xdb   : > { %1196 = vmatpush1.msra.mxu0 %v1096_v52  ;;  %v786_v52 = vld [vmem:[%s6776_s2 + $0x60] sm:$0xff] }
  0xdc   : > { %1197 = vmatprep.subr.mxu0 %v1093_v53  ;;  %v1046_v53 = vld [vmem:[%s6779_s5 + $0x2a0] sm:$0xff] }
  0xdd   : > { %1198 = vmatpush1.msra.mxu0 %v1092_v54  ;;  %v1043_v54 = vld [vmem:[%s6779_s5 + $0x288] sm:$0xff] }
  0xde   : > { %1199 = vmatprep.subr.mxu0 %v1089_v55  ;;  %v785_v55 = vld [vmem:[%s6776_s2 + $0x58] sm:$0xff] }
  0xdf   : > { %1200 = vmatpush1.msra.mxu0 %v1088_v56  ;;  %v1042_v56 = vld [vmem:[%s6779_s5 + $0x280] sm:$0xff] }
  0xe0   : > { %1201 = vmatprep.subr.mxu0 %v1085_v57  ;;  %v1039_v57 = vld [vmem:[%s6779_s5 + $0x268] sm:$0xff] }
  0xe1   : > { %1202 = vmatpush1.msra.mxu0 %v1084_v58  ;;  %v784_v58 = vld [vmem:[%s6776_s2 + $0x50] sm:$0xff] }
  0xe2   : > { %1203 = vmatprep.subr.mxu0 %v1081_v59  ;;  %v1038_v59 = vld [vmem:[%s6779_s5 + $0x260] sm:$0xff] }
  0xe3   : > { %1204 = vmatpush1.msra.mxu0 %v1080_v60  ;;  %v1035_v60 = vld [vmem:[%s6779_s5 + $0x248] sm:$0xff] }
  0xe4   : > { %1205 = vmatprep.subr.mxu0 %v1077_v61  ;;  %v783_v61 = vld [vmem:[%s6776_s2 + $0x48] sm:$0xff] }
  0xe5   : > { %1206 = vmatpush1.msra.mxu0 %v1076_v62  ;;  %v1034_v62 = vld [vmem:[%s6779_s5 + $0x240] sm:$0xff] }
  0xe6   : > { %1207 = vmatprep.subr.mxu0 %v1073_v63  ;;  %v1031_v63 = vld [vmem:[%s6779_s5 + $0x228] sm:$0xff] }
  0xe7   : > { %1208 = vmatpush1.msra.mxu0 %v1072_v1  ;;  %v782_v1 = vld [vmem:[%s6776_s2 + $0x40] sm:$0xff] }
  0xe8   : > { %1248 = vmatprep.subr.mxu0 %v1023_v2  ;;  %3933 = vmatmul.mubr.msk.f32.vlgmr.msra.gmra.mxu0 %vm610_vm1, %v5168_v17  ;;  %v995_v17 = vld [vmem:[%s6779_s5 + $0x108] sm:$0xff]  ;;  %v1030_v2 = vld [vmem:[%s6779_s5 + $0x220] sm:$0xff] }
  0xe9   : > { %1249 = vmatpush1.msra.mxu0 %v1022_v3  ;;  %3934 = vmatprep.mubr.msk.f32.mxu0 %vm880_vm2, %v5345_v5  ;;  %v1027_v3 = vld [vmem:[%s6779_s5 + $0x208] sm:$0xff] }
  0xea   : > { %1250 = vmatprep.subr.mxu0 %v1019_v4  ;;  %v781_v4 = vld [vmem:[%s6776_s2 + $0x38] sm:$0xff] }
  0xeb   : > { %1251 = vmatpush1.msra.mxu0 %v1018_v6  ;;  %v1026_v6 = vld [vmem:[%s6779_s5 + $0x200] sm:$0xff] }
  0xec   : > { %1252 = vmatprep.subr.mxu0 %v1015_v7  ;;  %v780_v7 = vld [vmem:[%s6776_s2 + $0x30] sm:$0xff] }
  0xed   : > { %1253 = vmatpush1.msra.mxu0 %v1014_v8  ;;  %v5546_v8 = vld [vmem:[%s5075_s22] sm:$0xff]  ;;  %s4778_s22 = smov 66  }
  0xee   : > { %1254 = vmatprep.subr.mxu0 %v1011_v9  ;;  %v779_v9 = vld [vmem:[%s6776_s2 + $0x28] sm:$0xff] }
  0xef   : > { %1255 = vmatpush1.msra.mxu0 %v1010_v10  ;;  %v778_v10 = vld [vmem:[%s6776_s2 + $0x20] sm:$0xff] }
  0xf0   : > { %1256 = vmatprep.subr.mxu0 %v1007_v11  ;;  %v777_v11 = vld [vmem:[%s6776_s2 + $0x18] sm:$0xff] }
  0xf1   : > { %1257 = vmatpush1.msra.mxu0 %v1006_v12  ;;  %v776_v12 = vld [vmem:[%s6776_s2 + $0x10] sm:$0xff] }
  0xf2   : > { %1258 = vmatprep.subr.mxu0 %v1003_v13  ;;  %v775_v13 = vld [vmem:[%s6776_s2 + $0x8] sm:$0xff] }
  0xf3   : > { %1259 = vmatpush1.msra.mxu0 %v1002_v14  ;;  %v774_v14 = vld [vmem:[%s6776_s2] sm:$0xff] }
  0xf4   : > { %1260 = vmatprep.subr.mxu0 %v999_v15  ;;  %v800_v15 = vld [vmem:[%s6776_s2 + $0xd0] sm:$0xff] }
  0xf5   : > { %1261 = vmatpush1.msra.mxu0 %v998_v16  ;;  %v799_v16 = vld [vmem:[%s6776_s2 + $0xc8] sm:$0xff] }
  0xf6   : > { %1262 = vmatprep.subr.mxu0 %v995_v17  ;;  %v798_v17 = vld [vmem:[%s6776_s2 + $0xc0] sm:$0xff] }
  0xf7   : > { %1263 = vmatpush1.msra.mxu0 %v994_v18  ;;  %v797_v18 = vld [vmem:[%s6776_s2 + $0xb8] sm:$0xff] }
  0xf8   : > { %1264 = vmatprep.subr.mxu0 %v991_v19  ;;  %v796_v19 = vld [vmem:[%s6776_s2 + $0xb0] sm:$0xff] }
  0xf9   : > { %1265 = vmatpush1.msra.mxu0 %v990_v20  ;;  %v795_v20 = vld [vmem:[%s6776_s2 + $0xa8] sm:$0xff] }
  0xfa   : > { %1266 = vmatprep.subr.mxu0 %v987_v21  ;;  %v794_v21 = vld [vmem:[%s6776_s2 + $0xa0] sm:$0xff] }
  0xfb   : > { %1267 = vmatpush1.msra.mxu0 %v986_v22  ;;  %v793_v22 = vld [vmem:[%s6776_s2 + $0x98] sm:$0xff] }
  0xfc   : > { %1268 = vmatprep.subr.mxu0 %v983_v23  ;;  %v792_v23 = vld [vmem:[%s6776_s2 + $0x90] sm:$0xff] }
  0xfd   : > { %1269 = vmatpush1.msra.mxu0 %v982_v24  ;;  %v791_v24 = vld [vmem:[%s6776_s2 + $0x88] sm:$0xff] }
  0xfe   : > { %1270 = vmatprep.subr.mxu0 %v979_v25  ;;  %v790_v25 = vld [vmem:[%s6776_s2 + $0x80] sm:$0xff] }
  0xff   : > { %1271 = vmatpush1.msra.mxu0 %v978_v26  ;;  %v1025_v26 = vld [vmem:[%s6779_s5 + $0x1f8] sm:$0xff] }
 0x100   : > { %1272 = vmatprep.subr.mxu0 %v975_v27  ;;  %v1024_v27 = vld [vmem:[%s6779_s5 + $0x1f0] sm:$0xff] }
 0x101   : > { %1273 = vmatpush1.msra.mxu0 %v974_v28  ;;  %v1021_v28 = vld [vmem:[%s6779_s5 + $0x1d8] sm:$0xff] }
 0x102   : > { %1274 = vmatprep.subr.mxu0 %v971_v29  ;;  %v1020_v29 = vld [vmem:[%s6779_s5 + $0x1d0] sm:$0xff] }
 0x103   : > { %1275 = vmatpush1.msra.mxu0 %v970_v30  ;;  %v1017_v30 = vld [vmem:[%s6779_s5 + $0x1b8] sm:$0xff] }
 0x104   : > { %1276 = vmatprep.subr.mxu0 %v967_v31  ;;  %v1016_v31 = vld [vmem:[%s6779_s5 + $0x1b0] sm:$0xff] }
 0x105   : > { %1277 = vmatpush1.msra.mxu0 %v966_v32  ;;  %v1013_v32 = vld [vmem:[%s6779_s5 + $0x198] sm:$0xff] }
 0x106   : > { %1278 = vmatprep.subr.mxu0 %v963_v33  ;;  %v1012_v33 = vld [vmem:[%s6779_s5 + $0x190] sm:$0xff] }
 0x107   : > { %1279 = vmatpush1.msra.mxu0 %v962_v34  ;;  %v1008_v34 = vld [vmem:[%s6779_s5 + $0x170] sm:$0xff] }
 0x108   : > { %1290 = vmatprep.subr.mxu0 %v1067_v35  ;;  %v1005_v35 = vld [vmem:[%s6779_s5 + $0x158] sm:$0xff] }
 0x109   : > { %1291 = vmatpush2.msra.mxu0 %v1066_v36  ;;  %v1004_v36 = vld [vmem:[%s6779_s5 + $0x150] sm:$0xff] }
 0x10a   : > { %1292 = vmatprep.subr.mxu0 %v1063_v37  ;;  %v1001_v37 = vld [vmem:[%s6779_s5 + $0x138] sm:$0xff] }
 0x10b   : > { %1293 = vmatpush2.msra.mxu0 %v1062_v38  ;;  %v1000_v38 = vld [vmem:[%s6779_s5 + $0x130] sm:$0xff] }
 0x10c   : > { %1294 = vmatprep.subr.mxu0 %v1059_v39  ;;  %v997_v39 = vld [vmem:[%s6779_s5 + $0x118] sm:$0xff] }
 0x10d   : > { %1295 = vmatpush2.msra.mxu0 %v1058_v41  ;;  %v993_v41 = vld [vmem:[%s6779_s5 + $0xf8] sm:$0xff] }
 0x10e   : > { %1296 = vmatprep.subr.mxu0 %v1055_v45  ;;  %v985_v45 = vld [vmem:[%s6779_s5 + $0xb8] sm:$0xff] }
 0x10f   : > { %1297 = vmatpush2.msra.mxu0 %v1054_v47  ;;  %v981_v47 = vld [vmem:[%s6779_s5 + $0x98] sm:$0xff] }
 0x110   : > { %1298 = vmatprep.subr.mxu0 %v1051_v48  ;;  %v980_v48 = vld [vmem:[%s6779_s5 + $0x90] sm:$0xff] }
 0x111   : > { %1299 = vmatpush2.msra.mxu0 %v1050_v50  ;;  %v976_v50 = vld [vmem:[%s6779_s5 + $0x70] sm:$0xff] }
 0x112   : > { %1300 = vmatprep.subr.mxu0 %v1047_v51  ;;  %v973_v51 = vld [vmem:[%s6779_s5 + $0x58] sm:$0xff] }
 0x113   : > { %1301 = vmatpush2.msra.mxu0 %v1046_v53  ;;  %v972_v53 = vld [vmem:[%s6779_s5 + $0x50] sm:$0xff] }
 0x114   : > { %1302 = vmatprep.subr.mxu0 %v1043_v54  ;;  %v1398_v54 = vld [vmem:[%s6781_s7 + $0x40] sm:$0xff] }
 0x115   : > { %1303 = vmatpush2.msra.mxu0 %v1042_v56  ;;  %v1395_v56 = vld [vmem:[%s6781_s7 + $0x28] sm:$0xff] }
 0x116   : > { %1304 = vmatprep.subr.mxu0 %v1039_v57  ;;  %v1394_v57 = vld [vmem:[%s6781_s7 + $0x20] sm:$0xff] }
 0x117   : > { %1305 = vmatpush2.msra.mxu0 %v1038_v59  ;;  %v1391_v59 = vld [vmem:[%s6781_s7 + $0x8] sm:$0xff] }
 0x118   : > { %1306 = vmatprep.subr.mxu0 %v1035_v60  ;;  %v965_v60 = vld [vmem:[%s6779_s5 + $0x18] sm:$0xff] }
 0x119   : > { %1307 = vmatpush2.msra.mxu0 %v1034_v62  ;;  %v964_v62 = vld [vmem:[%s6779_s5 + $0x10] sm:$0xff] }
 0x11a   : > { %1308 = vmatprep.subr.mxu0 %v1031_v63  ;;  %v1069_v63 = vld [vmem:[%s6779_s5 + $0x358] sm:$0xff] }
 0x11b   : > { %1309 = vmatpush2.msra.mxu0 %v1030_v2  ;;  %v1065_v2 = vld [vmem:[%s6779_s5 + $0x338] sm:$0xff] }
 0x11c   : > { %1310 = vmatprep.subr.mxu0 %v1027_v3  ;;  %v1064_v3 = vld [vmem:[%s6779_s5 + $0x330] sm:$0xff] }
 0x11d   : > { %1311 = vmatpush2.msra.mxu0 %v1026_v6  ;;  %v1060_v6 = vld [vmem:[%s6779_s5 + $0x310] sm:$0xff] }
 0x11e   : > { %1313 = vmatmul.mubr.f32.vlgmr.msra.gmra.mxu0 %v5546_v8 }
 0x11f   : > { %1470 = vmatprep.mubr.f32.mxu0 %v4768_v0 }
 0x171   : > { %v680_v40 = vpop.f32.mrf.mxu0 }
 0x172   : > { %v684_v42 = vmul.f32 %v680_v40, %v680_v40  ;;  %v996_v40 = vld [vmem:[%s6779_s5 + $0x110] sm:$0xff] }
 0x173   : > { %v4139_v44 = vpop.f32.mrf.mxu0 }
 0x174   : > { %4159 = vmatmul.mubr.msk.f32.vlgmr.msra.gmra.mxu1 %vm610_vm1, %v684_v42  ;;  %v992_v42 = vld [vmem:[%s6779_s5 + $0xf0] sm:$0xff]  ;;  %vm2018_vm1 = vcmask 424960  }
 0x175   : > { %885 = vmatpush1.msra.mxu1 %v789_v43  ;;  %3930 = vmatprep.mubr.msk.f32.mxu1 %vm880_vm2, %v5345_v5  ;;  %v989_v43 = vld [vmem:[%s6779_s5 + $0xd8] sm:$0xff]  ;;  %v988_v44 = vld [vmem:[%s6779_s5 + $0xd0] sm:$0xff] }
 0x176   : > { %886 = vmatprep.subr.mxu1 %v4768_v0 }
 0x177   : > { %887 = vmatpush1.msra.mxu1 %v788_v46  ;;  %v984_v46 = vld [vmem:[%s6779_s5 + $0xb0] sm:$0xff] }
 0x178   : > { %888 = vmatprep.subr.mxu1 %v4768_v0 }
 0x179   : > { %889 = vmatpush1.msra.mxu1 %v787_v49  ;;  %v977_v49 = vld [vmem:[%s6779_s5 + $0x78] sm:$0xff] }
 0x17a   : > { %890 = vmatprep.subr.mxu1 %v4768_v0 }
 0x17b   : > { %891 = vmatpush1.msra.mxu1 %v786_v52  ;;  %v1399_v52 = vld [vmem:[%s6781_s7 + $0x48] sm:$0xff] }
 0x17c   : > { %892 = vmatprep.subr.mxu1 %v4768_v0  ;;  %1432 = vmatprep.subr.mxu0 %v1399_v52 }
 0x17d   : > { %893 = vmatpush1.msra.mxu1 %v785_v55  ;;  %v969_v55 = vld [vmem:[%s6779_s5 + $0x38] sm:$0xff]  ;;  %1433 = vmatpush1.msra.mxu0 %v1398_v54  ;;  %v5866_v54 = vld [vmem:[%s6785_s11 + $0x60] sm:$0xff] }
 0x17e   : > { %894 = vmatprep.subr.mxu1 %v4768_v0  ;;  %1434 = vmatprep.subr.mxu0 %v1395_v56  ;;  %v1862_v56 = vrot.slane %v5866_v54, 3 }
 0x17f   : > { %895 = vmatpush1.msra.mxu1 %v784_v58  ;;  %v968_v58 = vld [vmem:[%s6779_s5 + $0x30] sm:$0xff]  ;;  %1435 = vmatpush1.msra.mxu0 %v1394_v57 }
 0x180   : > { %896 = vmatprep.subr.mxu1 %v4768_v0  ;;  %1436 = vmatprep.subr.mxu0 %v1391_v59 }
 0x181   : > { %897 = vmatpush1.msra.mxu1 %v783_v61  ;;  %v1390_v61 = vld [vmem:[%s6781_s7] sm:$0xff] }
 0x182   : > { %898 = vmatprep.subr.mxu1 %v4768_v0  ;;  %1437 = vmatpush1.msra.mxu0 %v1390_v61 }
 0x183   : > { %899 = vmatpush1.msra.mxu1 %v782_v1  ;;  %v1068_v1 = vld [vmem:[%s6779_s5 + $0x350] sm:$0xff]  ;;  %4196 = vmatprep.subr.mxu0 %v4768_v0 }
 0x184   : > { %900 = vmatprep.subr.mxu1 %v4768_v0 }
 0x185   : > { %901 = vmatpush1.msra.mxu1 %v781_v4  ;;  %v1061_v4 = vld [vmem:[%s6779_s5 + $0x318] sm:$0xff] }
 0x186   : > { %902 = vmatprep.subr.mxu1 %v4768_v0 }
 0x187   : > { %903 = vmatpush1.msra.mxu1 %v780_v7  ;;  %v1057_v7 = vld [vmem:[%s6779_s5 + $0x2f8] sm:$0xff] }
 0x188   : > { %904 = vmatprep.subr.mxu1 %v4768_v0 }
 0x189   : > { %905 = vmatpush1.msra.mxu1 %v779_v9  ;;  %v1056_v9 = vld [vmem:[%s6779_s5 + $0x2f0] sm:$0xff] }
 0x18a   : > { %906 = vmatprep.subr.mxu1 %v4768_v0 }
 0x18b   : > { %907 = vmatpush1.msra.mxu1 %v778_v10  ;;  %v1053_v10 = vld [vmem:[%s6779_s5 + $0x2d8] sm:$0xff] }
 0x18c   : > { %908 = vmatprep.subr.mxu1 %v4768_v0 }
 0x18d   : > { %909 = vmatpush1.msra.mxu1 %v777_v11  ;;  %v1052_v11 = vld [vmem:[%s6779_s5 + $0x2d0] sm:$0xff] }
 0x18e   : > { %910 = vmatprep.subr.mxu1 %v4768_v0 }
 0x18f   : > { %911 = vmatpush1.msra.mxu1 %v776_v12  ;;  %v1049_v12 = vld [vmem:[%s6779_s5 + $0x2b8] sm:$0xff] }
 0x190   : > { %912 = vmatprep.subr.mxu1 %v4768_v0 }
 0x191   : > { %913 = vmatpush1.msra.mxu1 %v775_v13  ;;  %v1048_v13 = vld [vmem:[%s6779_s5 + $0x2b0] sm:$0xff] }
 0x192   : > { %914 = vmatprep.subr.mxu1 %v4768_v0 }
 0x193   : > { %915 = vmatpush1.msra.mxu1 %v774_v14  ;;  %v1045_v14 = vld [vmem:[%s6779_s5 + $0x298] sm:$0xff] }
 0x194   : > { %926 = vmatprep.subr.mxu1 %v4768_v0 }
 0x195   : > { %927 = vmatpush2.msra.mxu1 %v800_v15  ;;  %v1044_v15 = vld [vmem:[%s6779_s5 + $0x290] sm:$0xff] }
 0x196   : > { %928 = vmatprep.subr.mxu1 %v4768_v0 }
 0x197   : > { %929 = vmatpush2.msra.mxu1 %v799_v16  ;;  %v1041_v16 = vld [vmem:[%s6779_s5 + $0x278] sm:$0xff] }
 0x198   : > { %930 = vmatprep.subr.mxu1 %v4768_v0 }
 0x199   : > { %931 = vmatpush2.msra.mxu1 %v798_v17  ;;  %v1040_v17 = vld [vmem:[%s6779_s5 + $0x270] sm:$0xff] }
 0x19a   : > { %932 = vmatprep.subr.mxu1 %v4768_v0 }
 0x19b   : > { %933 = vmatpush2.msra.mxu1 %v797_v18  ;;  %v1037_v18 = vld [vmem:[%s6779_s5 + $0x258] sm:$0xff] }
 0x19c   : > { %934 = vmatprep.subr.mxu1 %v4768_v0 }
 0x19d   : > { %935 = vmatpush2.msra.mxu1 %v796_v19  ;;  %v1036_v19 = vld [vmem:[%s6779_s5 + $0x250] sm:$0xff] }
 0x19e   : > { %936 = vmatprep.subr.mxu1 %v4768_v0 }
 0x19f   : > { %937 = vmatpush2.msra.mxu1 %v795_v20  ;;  %v1033_v20 = vld [vmem:[%s6779_s5 + $0x238] sm:$0xff] }
 0x1a0   : > { %938 = vmatprep.subr.mxu1 %v4768_v0 }
 0x1a1   : > { %939 = vmatpush2.msra.mxu1 %v794_v21  ;;  %v1032_v21 = vld [vmem:[%s6779_s5 + $0x230] sm:$0xff] }
 0x1a2   : > { %940 = vmatprep.subr.mxu1 %v4768_v0 }
 0x1a3   : > { %941 = vmatpush2.msra.mxu1 %v793_v22  ;;  %v1029_v22 = vld [vmem:[%s6779_s5 + $0x218] sm:$0xff] }
 0x1a4   : > { %942 = vmatprep.subr.mxu1 %v4768_v0 }
 0x1a5   : > { %943 = vmatpush2.msra.mxu1 %v792_v23  ;;  %v1028_v23 = vld [vmem:[%s6779_s5 + $0x210] sm:$0xff] }
 0x1a6   : > { %944 = vmatprep.subr.mxu1 %v4768_v0 }
 0x1a7   : > { %945 = vmatpush2.msra.mxu1 %v791_v24  ;;  %v1401_v24 = vld [vmem:[%s6781_s7 + $0x58] sm:$0xff] }
 0x1a8   : > { %946 = vmatprep.subr.mxu1 %v4768_v0 }
 0x1a9   : > { %947 = vmatpush2.msra.mxu1 %v790_v25  ;;  %v1400_v25 = vld [vmem:[%s6781_s7 + $0x50] sm:$0xff] }
 0x1aa   : > { %949 = vmatmul.mubr.f32.vlgmr.msra.gmra.mxu1 %v5546_v8  ;;  %1319 = vmatprep.subr.mxu1 %v1025_v26  ;;  %v1397_v26 = vld [vmem:[%s6781_s7 + $0x38] sm:$0xff] }
 0x1ab   : > { %1320 = vmatpush1.msra.mxu1 %v1024_v27  ;;  %3935 = vmatprep.mubr.msk.f32.mxu1 %vm880_vm2, %v5345_v5  ;;  %v1009_v5 = vld [vmem:[%s6779_s5 + $0x178] sm:$0xff]  ;;  %v1396_v27 = vld [vmem:[%s6781_s7 + $0x30] sm:$0xff]  ;;  %vm2031_vm2 = vcmask 146432  }
 0x1ac   : > { %1321 = vmatprep.subr.mxu1 %v1021_v28  ;;  %v1393_v28 = vld [vmem:[%s6781_s7 + $0x18] sm:$0xff] }
 0x1ad   : > { %1322 = vmatpush1.msra.mxu1 %v1020_v29  ;;  %v1392_v29 = vld [vmem:[%s6781_s7 + $0x10] sm:$0xff] }
 0x1ae   : > { %1323 = vmatprep.subr.mxu1 %v1017_v30 }
 0x1af   : > { %1324 = vmatpush1.msra.mxu1 %v1016_v31  ;;  %v1838_v31 = vld [vmem:[%s6785_s11 + $0x80] sm:$0xff] }
 0x1b0   : > { %1325 = vmatprep.subr.mxu1 %v1013_v32  ;;  %v5830_v32 = vld [vmem:[%s6785_s11 + $0x90] sm:$0xf] }
 0x1b1   : > { %1326 = vmatpush1.msra.mxu1 %v1012_v33  ;;  %v5835_v33 = vld [vmem:[%s6785_s11 + $0x70] sm:$0xff] }
 0x1b2   : > { %1327 = vmatprep.subr.mxu1 %v1009_v5  ;;  %v1866_v5 = vrot.slane %v1838_v31, 3 }
 0x1b3   : > { %1328 = vmatpush1.msra.mxu1 %v1008_v34  ;;  %v1868_v34 = vrot.slane %v5830_v32, 3 }
 0x1b4   : > { %1329 = vmatprep.subr.mxu1 %v1005_v35  ;;  %v1864_v35 = vrot.slane %v5835_v33, 3 }
 0x1b5   : > { %1330 = vmatpush1.msra.mxu1 %v1004_v36  ;;  %v1869_v36 = vsel %vm1854_vm3, %v1866_v5, %v1868_v34 }
 0x1b6   : > { %1331 = vmatprep.subr.mxu1 %v1001_v37  ;;  %1882 = vrot.lane.b32.xlu1 %v1869_v36, %s4770_s12  ;;  %v1867_v37 = vsel %vm1854_vm3, %v1864_v35, %v1866_v5 }
 0x1b7   : > { %1332 = vmatpush1.msra.mxu1 %v1000_v38 }
 0x1b8   : > { %1333 = vmatprep.subr.mxu1 %v997_v39 }
 0x1b9   : > { %1334 = vmatpush1.msra.mxu1 %v996_v40 }
 0x1ba   : > { %1335 = vmatprep.subr.mxu1 %v993_v41  ;;  %1880 = vrot.lane.b32.xlu1 %v1867_v37, %s4770_s12 }
 0x1bb   : > { %1336 = vmatpush1.msra.mxu1 %v992_v42 }
 0x1bc   : > { %1337 = vmatprep.subr.mxu1 %v989_v43 }
 0x1bd   : > { %1338 = vmatpush1.msra.mxu1 %v988_v44  ;;  %v1578_v44 = vld [vmem:[#allocation10] sm:$0x3f] }
 0x1be   : > { %1339 = vmatprep.subr.mxu1 %v985_v45 }
 0x1bf   : > { %1340 = vmatpush1.msra.mxu1 %v984_v46 }
 0x1c0   : > { %1341 = vmatprep.subr.mxu1 %v981_v47  ;;  %v3931_v47 = vld [vmem:[#allocation7] ss:$0 sm:$0xff] }
 0x1c1   : > { %1342 = vmatpush1.msra.mxu1 %v980_v48 }
 0x1c2   : > { %1343 = vmatprep.subr.mxu1 %v977_v49 }
 0x1c3   : > { %1344 = vmatpush1.msra.mxu1 %v976_v50 }
 0x1c4   : > { %1345 = vmatprep.subr.mxu1 %v973_v51  ;;  %v1554_v51 = vlaneseq }
 0x1c5   : > { %1346 = vmatpush1.msra.mxu1 %v972_v53  ;;  %v5861_v53 = vld [vmem:[%s6785_s11 + $0x50] sm:$0xff] }
 0x1c6   : > { %1347 = vmatprep.subr.mxu1 %v969_v55  ;;  %v5856_v52 = vshrl.u32 %v1554_v51, 7  ;;  %v1860_v55 = vrot.slane %v5861_v53, 3 }
 0x1c7   : > { %1348 = vmatpush1.msra.mxu1 %v968_v58  ;;  %v1552_v58 = vld [vmem:[#allocation8] sm:$0xf] }
 0x1c8   : > { %1349 = vmatprep.subr.mxu1 %v965_v60  ;;  %v1564_v57 = vsub.s32 2, %v5856_v52  ;;  %v1863_v59 = vsel %vm1854_vm3, %v1860_v55, %v1862_v56  ;;  %v1568_v61 = vsub.s32 3, %v5856_v52 }
 0x1c9   : > { %1350 = vmatpush1.msra.mxu1 %v964_v62  ;;  %1876 = vrot.lane.b32.xlu1 %v1863_v59, %s4770_s12 }
 0x1ca   : > { %1361 = vmatprep.subr.mxu1 %v1069_v63  ;;  %v1565_v60 = vrot.slane %v1552_v58, %v1564_v57  ;;  %v1569_v62 = vrot.slane %v1552_v58, %v1568_v61  ;;  %v1660_v63 = vld [vmem:[%s6785_s11 + $0x20] sm:$0x7] }
 0x1cb   : > { %1362 = vmatpush2.msra.mxu1 %v1068_v1  ;;  %v1659_v1 = vld [vmem:[%s6785_s11 + $0x10] sm:$0xff] }
 0x1cc   : > { %1363 = vmatprep.subr.mxu1 %v1065_v2  ;;  %v1658_v2 = vld [vmem:[%s6785_s11] sm:$0xff] }
 0x1cd   : > { %1364 = vmatpush2.msra.mxu1 %v1064_v3 }
 0x1ce   : > { %1365 = vmatprep.subr.mxu1 %v1061_v4 }
 0x1cf   : > { %1366 = vmatpush2.msra.mxu1 %v1060_v6 }
 0x1d0   : > { %1367 = vmatprep.subr.mxu1 %v1057_v7 }
 0x1d1   : > { %1368 = vmatpush2.msra.mxu1 %v1056_v9  ;;  %v1748_v9 = vld [vmem:[%s6784_s10] sm:$0x3f] }
 0x1d2   : > { %1369 = vmatprep.subr.mxu1 %v1053_v10  ;;  %1750 = vrot.lane.b32.xlu0 %v1748_v9, %s4771_s15 }
 0x1d3   : > { %1370 = vmatpush2.msra.mxu1 %v1052_v11 }
 0x1d4   : > { %1371 = vmatprep.subr.mxu1 %v1049_v12  ;;  %v1556_v12 = vsub.s32 0, %v5856_v52 }
 0x1d5   : > { %1372 = vmatpush2.msra.mxu1 %v1048_v13 }
 0x1d6   : > { %1373 = vmatprep.subr.mxu1 %v1045_v14  ;;  %1884 = vrot.lane.b32.xlu0 %v1868_v34, %s4770_s12  ;;  %v1560_v14 = vsub.s32 1, %v5856_v52 }
 0x1d7   : > { %1374 = vmatpush2.msra.mxu1 %v1044_v15 }
 0x1d8   : > { %1375 = vmatprep.subr.mxu1 %v1041_v16 }
 0x1d9   : > { %1376 = vmatpush2.msra.mxu1 %v1040_v17 }
 0x1da   : > { %1377 = vmatprep.subr.mxu1 %v1037_v18  ;;  %v1557_v18 = vrot.slane %v1552_v58, %v1556_v12 }
 0x1db   : > { %1378 = vmatpush2.msra.mxu1 %v1036_v19 }
 0x1dc   : > { %1379 = vmatprep.subr.mxu1 %v1033_v20 }
 0x1dd   : > { %1380 = vmatpush2.msra.mxu1 %v1032_v21 }
 0x1de   : > { %1381 = vmatprep.subr.mxu1 %v1029_v22 }
 0x1df   : > { %1382 = vmatpush2.msra.mxu1 %v1028_v23 }
 0x1e0   : > { %1384 = vmatmul.mubr.f32.vlgmr.msra.gmra.mxu1 %v5546_v8  ;;  %1503 = vmatprep.subr.mxu1 %v1401_v24  ;;  %v876_v8 = vpop.f32.mrf.mxu0 }
 0x1e1   : > { %1504 = vmatpush1.msra.mxu1 %v1400_v25  ;;  %1541 = vmatprep.mubr.f32.mxu1 %v4768_v0  ;;  %v1561_v25 = vrot.slane %v1552_v58, %v1560_v14 }
 0x1e2   : > { %1505 = vmatprep.subr.mxu1 %v1397_v26  ;;  %v4181_v30 = vpop.f32.mrf.mxu0 }
 0x1e3   : > { %1506 = vmatpush1.msra.mxu1 %v1396_v27 }
 0x1e4   : > { %1507 = vmatprep.subr.mxu1 %v1393_v28  ;;  %v1172_v3 = vpop.f32.mrf.mxu0 }
 0x1e5   : > { %1508 = vmatpush1.msra.mxu1 %v1392_v29 }
 0x1e6   : > { %4182 = vmatprep.subr.mxu1 %v4768_v0  ;;  %v1174_v4 = vpop.f32.mrf.mxu0 }
 0x1e8   : > { %v1243_v6 = vpop.f32.mrf.mxu0 }
 0x1ea   : > { %v1245_v7 = vpop.f32.mrf.mxu0 }
 0x1ec   : > { %v1314_v10 = vpop.f32.mrf.mxu0 }
 0x1ed   : > { %v1315_v16 = vadd.f32 %v1314_v10, %v1172_v3  ;;  %v1984_v3 = vld [vmem:[%s6784_s10 + $0x40] sm:$0xff] }
 0x1ee   : > { %v1316_v13 = vpop.f32.mrf.mxu0  ;;  %v1980_v10 = vld [vmem:[%s6784_s10] sm:$0xc0] }
 0x1ef   : > { %v1317_v19 = vadd.f32 %v1316_v13, %v1174_v4  ;;  %v2002_v4 = vrot.slane %v1984_v3, 6 }
 0x234   : > { %v763_v38 = vpop.f32.mrf.mxu1 }
 0x235   : > { %4518 = vrsqrt.f32 %v763_v38  ;;  %vm769_vm4 = vcmp.eq.f32.partialorder %v763_v38, inf  ;;  %v772_v42 = vand.u32 2147483648, %v763_v38  ;;  %vm771_vm6 = vcmp.eq.f32.partialorder %v763_v38, 0.0 }
 0x236   : > { %v4160_v39 = vpop.f32.mrf.mxu1 }
 0x237   : > { %v1883_v39 = vpop.permute.xlu1 %1882 }
 0x242   : > { %v4519_v40 = vpop.eup %4518 }
 0x243   : > { %v768_v41 = vmul.f32 %v4519_v40, %v763_v38  ;;  %v1865_v40 = vsel %vm1854_vm3, %v1862_v56, %v1864_v35 }
 0x244   : > { %1878 = vrot.lane.b32.xlu0 %v1865_v40, %s4770_s12 }
 0x245   : > { %v770_v43 = vsel %vm769_vm4, %v763_v38, %v768_v41  ;;  %v1751_v38 = vpop.permute.xlu0 %1750  ;;  %v1834_v41 = vld [vmem:[%s6785_s11 + $0x40] sm:$0xff]  ;;  %vm2490_vm4 = vcmask 490832  }
 0x246   : > { %v773_v45 = vsel %vm771_vm6, %v772_v42, %v770_v43  ;;  %v1833_v42 = vld [vmem:[%s6785_s11 + $0x30] sm:$0xff]  ;;  %v1832_v43 = vld [vmem:[%s6785_s11 + $0x20] sm:$0xf8]  ;;  %v1858_v33 = vrot.slane %v1834_v41, 3  ;;  %vm2717_vm6 = vcmask 1046528  }
 0x247   : > { %3936 = vmatmul.mubr.msk.f32.vlgmr.msra.gmra.mxu0 %vm1402_vm5, %v773_v45  ;;  %3937 = vmatmul.mubr.msk.f32.vlgmr.msra.gmra.mxu1 %vm1402_vm5, %v773_v45  ;;  %v1856_v45 = vrot.slane %v1833_v42, 3  ;;  %vm2530_vm5 = vcmask 539648  }
 0x248   : > { %4183 = vmatpush3.msk.msra.mxu1 %vm1583_vm7, %v1578_v44  ;;  %4184 = vmatprep.mubr.msk.f32.mxu1 %vm4769_vm0, %v4768_v0  ;;  %v1861_v35 = vsel %vm1854_vm3, %v1858_v33, %v1860_v55 }
 0x249   : > { %4187 = vmatprep.subr.mxu1 %v4768_v0  ;;  %4198 = vmatprep.mubr.msk.f32.mxu0 %vm4769_vm0, %v4768_v0  ;;  %v1885_v44 = vpop.permute.xlu0 %1884 }
 0x24a   : > { %4197 = vmatpush3.msk.msra.mxu0 %vm1583_vm7, %v1751_v38  ;;  %1874 = vrot.lane.b32.xlu0 %v1861_v35, %s4770_s12  ;;  %v2111_v38 = vld [vmem:[%s6785_s11 + $0xd0] sm:$0xff]  ;;  %v2255_v35 = vld [vmem:[%s6784_s10 + $0xa8] sm:$0x3] }
 0x24b   : > { %4220 = vmatprep.subr.mxu0 %v4768_v0  ;;  %v2137_v41 = vrot.slane %v2111_v38, 4 }
 0x26a   : > { %v950_v46 = vpop.f32.mrf.mxu1 }
 0x26b   : > { %v951_v48 = vadd.f32 %v950_v46, %v876_v8  ;;  %v1855_v46 = vrot.slane %v1832_v43, 3  ;;  %v6030_v43 = vld [vmem:[%s6785_s11 + $0xa0] sm:$0xff] }
 0x26c   : > { %v952_v49 = vpop.f32.mrf.mxu1 }
 0x26d   : > { %v961_v50 = vadd.f32 %v3931_v47, %v951_v48  ;;  %v1857_v47 = vsel %vm1854_vm3, %v1855_v46, %v1856_v45  ;;  %v1881_v48 = vpop.permute.xlu1 %1880  ;;  %v1859_v49 = vsel %vm1854_vm3, %v1856_v45, %v1858_v33  ;;  %v2131_v33 = vrot.slane %v6030_v43, 4 }
 0x26e   : > { %1872 = vrot.lane.b32.xlu0 %v1859_v49, %s4770_s12  ;;  %v6058_v49 = vld [vmem:[%s6785_s11 + $0x150] sm:$0xff]  ;;  %vm2250_vm3 = vcmask 343232  }
 0x26f   : > { %4185 = vmatmul.mubr.msk.f32.vlgmr.msra.gmra.mxu1 %vm1579_vm8, %v961_v50  ;;  %v5944_v50 = vld [vmem:[#allocation11] ss:$0 sm:$0xff] }
 0x270   : > { %4193 = vmatprep.mubr.msk.f32.mxu1 %vm4769_vm0, %v4768_v0  ;;  %4188 = vmatpush3.msk.msra.mxu1 %vm1672_vm9, %v1660_v63 }
 0x271   : > { %4189 = vmatprep.subr.mxu1 %v4768_v0  ;;  %v1877_v53 = vpop.permute.xlu1 %1876 }
 0x272   : > { %4190 = vmatpush3.msra.mxu1 %v1659_v1  ;;  %1893 = vrot.lane.b32.xlu0 %v5944_v50, %s4770_s12 }
 0x273   : > { %4191 = vmatprep.subr.mxu1 %v4768_v0 }
 0x274   : > { %4192 = vmatpush3.msra.mxu1 %v1658_v2 }
 0x275   : > { %4201 = vmatprep.subr.mxu1 %v4768_v0 }
 0x276   : > { %2014 = vrot.lane.b32.xlu0 %v2002_v4, %s4772_s27 }
 0x2a0   : > { %v1385_v11 = vpop.f32.mrf.mxu1 }
 0x2a1   : > { %v1386_v17 = vadd.f32 %v1385_v11, %v1243_v6  ;;  %v1982_v6 = vld [vmem:[%s6784_s10 + $0x20] sm:$0xff]  ;;  %v1996_v11 = vrot.slane %v1980_v10, 6 }
 0x2a2   : > { %v1387_v15 = vpop.f32.mrf.mxu1 }
 0x2a3   : > { %v1388_v22 = vadd.f32 %v1387_v15, %v1245_v7  ;;  %v1997_v7 = vrot.slane %v1982_v6, 6 }
 0x2a5   : > { %v2003_v9 = vsel %vm1995_vm13, %v1997_v7, %v2002_v4  ;;  %v1998_v13 = vsel %vm1995_vm13, %v1996_v11, %v1997_v7 }
 0x2a6   : > { %2010 = vrot.lane.b32.xlu0 %v2003_v9, %s4772_s27 }
 0x2aa   : > { %2006 = vrot.lane.b32.xlu0 %v1998_v13, %s4772_s27 }
 0x2b6   : > { %v1879_v51 = vpop.permute.xlu0 %1878 }
 0x2bc   : > { %v1875_v57 = vpop.permute.xlu0 %1874 }
 0x307   : > { %v1472_v20 = vpop.f32.mrf.mxu0  ;;  %v1543_v21 = vpop.f32.mrf.mxu1 }
 0x308   : > { %v1548_v23 = vadd.f32 %v1472_v20, %v1315_v16  ;;  %v1550_v24 = vadd.f32 %v1543_v21, %v1386_v17  ;;  %v1985_v17 = vld [vmem:[%s6784_s10 + $0x48] sm:$0xff] }
 0x309   : > { %v1474_v26 = vpop.f32.mrf.mxu0  ;;  %v1545_v27 = vpop.f32.mrf.mxu1  ;;  %v2004_v21 = vrot.slane %v1985_v17, 6  ;;  %v2107_v17 = vld [vmem:[%s6785_s11 + $0x90] sm:$0xf0] }
 0x30a   : > { %v5903_v28 = vadd.f32 %v1557_v18, %v1548_v23  ;;  %v5905_v29 = vadd.f32 %v1565_v60, %v1550_v24  ;;  %v1549_v8 = vadd.f32 %v1474_v26, %v1317_v19  ;;  %v1551_v30 = vadd.f32 %v1545_v27, %v1388_v22  ;;  %v1873_v60 = vpop.permute.xlu0 %1872  ;;  %v1983_v19 = vld [vmem:[%s6784_s10 + $0x28] sm:$0xff]  ;;  %v5997_v27 = vld [vmem:[%s6785_s11 + $0x100] sm:$0x1f] }
 0x30b   : > { %v2000_v22 = vrot.slane %v1983_v19, 6  ;;  %v1981_v23 = vld [vmem:[%s6784_s10 + $0x8] sm:$0xc0] }
 0x30c   : > { %v5907_v31 = vadd.f32 %v1561_v25, %v1549_v8  ;;  %v5909_v32 = vadd.f32 %v1569_v62, %v1551_v30  ;;  %1753 = vrot.lane.b32.xlu1 %v5903_v28, %s4771_s15  ;;  %v1999_v25 = vrot.slane %v1981_v23, 6  ;;  %v6002_v8 = vld [vmem:[%s6785_s11 + $0xe0] sm:$0xff]  ;;  %v2113_v30 = vld [vmem:[%s6785_s11 + $0xf0] sm:$0xff]  ;;  %s4776_s15 = smov 86  }
 0x30d   : > { %v2005_v24 = vsel %vm1995_vm13, %v2000_v22, %v2004_v21 }
 0x30e   : > { %v1894_v15 = vpop.permute.xlu0 %1893  ;;  %v2001_v26 = vsel %vm1995_vm13, %v1999_v25, %v2000_v22 }
 0x310   : > { %1870 = vrot.lane.b32.xlu1 %v1857_v47, %s4770_s12  ;;  %v2253_v47 = vld [vmem:[%s6784_s10 + $0x68] sm:$0xff] }
 0x32f   : > { %v1653_v5 = vpop.f32.mrf.mxu1 }
 0x330   : > { %v1654_v34 = vadd.f32 %v1653_v5, %v5903_v28  ;;  %v2143_v5 = vrot.slane %v5997_v27, 4 }
 0x331   : > { %v4186_v36 = vpop.f32.mrf.mxu1 }
 0x332   : > { %v1657_v37 = vmax.f32 %v1654_v34, 0.0  ;;  %v2139_v34 = vrot.slane %v6002_v8, 4  ;;  %v2141_v36 = vrot.slane %v2113_v30, 4 }
 0x334   : > { %4194 = vmatmul.mubr.msk.f32.vlgmr.msra.gmra.mxu1 %vm1668_vm10, %v1657_v37  ;;  %v6013_v37 = vld [vmem:[%s6785_s11 + $0xc0] sm:$0xff]  ;;  %v2144_v9 = vsel %vm2129_vm14, %v2141_v36, %v2143_v5  ;;  %vm2794_vm10 = vcmask 736736  }
 0x335   : > { %4217 = vmatprep.mubr.msk.f32.mxu1 %vm4769_vm0, %v4768_v0  ;;  %4202 = vmatpush3.msk.msra.mxu1 %vm1900_vm11, %v1885_v44  ;;  %v2135_v40 = vrot.slane %v6013_v37, 4  ;;  %v2109_v44 = vld [vmem:[%s6785_s11 + $0xb0] sm:$0xff] }
 0x336   : > { %4203 = vmatprep.subr.mxu1 %v4768_v0  ;;  %v2133_v45 = vrot.slane %v2109_v44, 4  ;;  %v2254_v44 = vld [vmem:[%s6784_s10 + $0x88] sm:$0xff] }
 0x337   : > { %4204 = vmatpush3.msra.mxu1 %v1883_v39  ;;  %v2142_v39 = vsel %vm2129_vm14, %v2139_v34, %v2141_v36  ;;  %v2138_v42 = vsel %vm2129_vm14, %v2135_v40, %v2137_v41 }
 0x338   : > { %4205 = vmatprep.subr.mxu1 %v4768_v0  ;;  %v2134_v46 = vsel %vm2129_vm14, %v2131_v33, %v2133_v45  ;;  %v2136_v19 = vsel %vm2129_vm14, %v2133_v45, %v2135_v40  ;;  %v2348_v45 = vld [vmem:[%s6785_s11 + $0x100] sm:$0xe0] }
 0x339   : > { %4206 = vmatpush3.msra.mxu1 %v1881_v48  ;;  %v6053_v48 = vld [vmem:[%s6785_s11 + $0x170] sm:$0x3f] }
 0x33a   : > { %4207 = vmatprep.subr.mxu1 %v4768_v0 }
 0x33b   : > { %4208 = vmatpush3.msra.mxu1 %v1879_v51  ;;  %v6063_v51 = vld [vmem:[%s6785_s11 + $0x160] sm:$0xff] }
 0x33c   : > { %4209 = vmatprep.subr.mxu1 %v4768_v0 }
 0x33d   : > { %4210 = vmatpush3.msra.mxu1 %v1877_v53  ;;  %v2383_v53 = vrot.slane %v6053_v48, 5 }
 0x33e   : > { %4211 = vmatprep.subr.mxu1 %v4768_v0 }
 0x33f   : > { %4212 = vmatpush3.msra.mxu1 %v1875_v57  ;;  %v6077_v57 = vld [vmem:[%s6785_s11 + $0x140] sm:$0xff] }
 0x340   : > { %4213 = vmatprep.subr.mxu1 %v4768_v0 }
 0x341   : > { %4214 = vmatpush3.msra.mxu1 %v1873_v60  ;;  %v2377_v60 = vrot.slane %v6077_v57, 5 }
 0x342   : > { %4215 = vmatprep.subr.mxu1 %v4768_v0 }
 0x37e   : > { %v1754_v59 = vpop.permute.xlu1 %1753 }
 0x382   : > { %v1871_v61 = vpop.permute.xlu1 %1870 }
 0x383   : > { %4216 = vmatpush3.msra.mxu1 %v1871_v61 }
 0x384   : > { %4248 = vmatprep.subr.mxu1 %v4768_v0 }
 0x3f4   : > { %v1742_v54 = vpop.f32.mrf.mxu1 }
 0x3f5   : > { %v1743_v55 = vadd.f32 %v5944_v50, %v1742_v54  ;;  %v2379_v54 = vrot.slane %v6058_v49, 5 }
 0x3f6   : > { %v4195_v56 = vpop.f32.mrf.mxu1 }
 0x3f7   : > { %1746 = vst.msk [vmem:[%s5953_s29] sm:$0xff] %vm1579_vm8, %v1743_v55  ;;  %v2381_v55 = vrot.slane %v6063_v51, 5  ;;  %v6072_v56 = vld [vmem:[%s6785_s11 + $0x130] sm:$0xff] }
 0x3fe   : > { %v1747_v58 = vld [vmem:[%s5953_s29] sm:$0xff] }
 0x3ff   : > { %4199 = vmatmul.mubr.msk.f32.vlgmr.msra.gmra.mxu0 %vm1579_vm8, %v1747_v58  ;;  %v2382_v58 = vsel %vm1672_vm9, %v2379_v54, %v2381_v55  ;;  %vm2713_vm8 = vcmask 777216  }
 0x400   : > { %4226 = vmatprep.mubr.msk.f32.mxu0 %vm4769_vm0, %v4768_v0 }
 0x4bf   : > { %v1827_v62 = vpop.f32.mrf.mxu0 }
 0x4c0   : > { %v1828_v63 = vadd.f32 %v1827_v62, %v1754_v59  ;;  %v2375_v59 = vrot.slane %v6072_v56, 5  ;;  %v2015_v62 = vpop.permute.xlu0 %2014 }
 0x4c1   : > { %v4200_v1 = vpop.f32.mrf.mxu0 }
 0x4c2   : > { %v1831_v2 = vmax.f32 %v1828_v63, 0.0  ;;  %v2378_v61 = vsel %vm1672_vm9, %v2375_v59, %v2377_v60 }
 0x4c4   : > { %4218 = vmatmul.mubr.msk.f32.vlgmr.msra.gmra.mxu1 %vm1896_vm12, %v1831_v2  ;;  %v2011_v2 = vpop.permute.xlu0 %2010 }
 0x4c5   : > { %4254 = vmatprep.mubr.msk.f32.mxu1 %vm4769_vm0, %v4768_v0 }
 0x4c8   : > { %v2007_v10 = vpop.permute.xlu0 %2006 }
 0x584   : > { %v1969_v16 = vpop.f32.mrf.mxu1 }
 0x585   : > { %v1970_v18 = vadd.f32 %v1969_v16, %v1894_v15  ;;  %v2140_v15 = vsel %vm2129_vm14, %v2137_v41, %v2139_v34 }
 0x586   : > { %v4219_v20 = vpop.f32.mrf.mxu1 }
 0x587   : > { %1974 = vrot.lane.b32.xlu1 %v1970_v18, %s4773_s23  ;;  %s4774_s23 = smov 104   ;;  %v2130_v20 = vrot.slane %v2107_v17, 4  ;;  %v2495_v17 = vld [vmem:[%s6784_s10 + $0xc8] sm:$0xff] }
 0x589   : > { %v2132_v22 = vsel %vm2129_vm14, %v2130_v20, %v2131_v33  ;;  %v2349_v33 = vld [vmem:[%s6785_s11 + $0x110] sm:$0xff]  ;;  %v2493_v20 = vld [vmem:[%s6784_s10 + $0xa8] sm:$0xfc] }
 0x58b   : > { %2016 = vrot.lane.b32.xlu1 %v2004_v21, %s4772_s27 }
 0x58f   : > { %2012 = vrot.lane.b32.xlu1 %v2005_v24, %s4772_s27 }
 0x593   : > { %2008 = vrot.lane.b32.xlu1 %v2001_v26, %s4772_s27 }
 0x597   : > { %2159 = vrot.lane.b32.xlu1 %v2143_v5, %s4774_s23 }
 0x59b   : > { %2155 = vrot.lane.b32.xlu1 %v2142_v39, %s4774_s23 }
 0x59f   : > { %2151 = vrot.lane.b32.xlu1 %v2138_v42, %s4774_s23 }
 0x5a3   : > { %2027 = vrot.lane.b32.xlu1 %v5907_v31, %s4772_s27 }
 0x5a7   : > { %2147 = vrot.lane.b32.xlu1 %v2134_v46, %s4774_s23  ;;  %v2371_v46 = vrot.slane %v2349_v33, 5 }
 0x5ab   : > { %2168 = vrot.lane.b32.xlu1 %v5944_v50, %s4774_s23 }
 0x5af   : > { %2266 = vrot.lane.b32.xlu1 %v2255_v35, %s4775_s8  ;;  %v2370_v35 = vrot.slane %v2348_v45, 5 }
 0x5b3   : > { %2262 = vrot.lane.b32.xlu1 %v2253_v47, %s4775_s8  ;;  %v2372_v47 = vsel %vm1672_vm9, %v2370_v35, %v2371_v46  ;;  %v6259_v35 = vld [vmem:[%s6785_s11 + $0x1f0] sm:$0xff] }
 0x5b7   : > { %2399 = vrot.lane.b32.xlu1 %v2383_v53, %s4776_s15 }
 0x5bb   : > { %2395 = vrot.lane.b32.xlu1 %v2382_v58, %s4776_s15 }
 0x5bf   : > { %2391 = vrot.lane.b32.xlu1 %v2378_v61, %s4776_s15 }
 0x5c3   : > { %2270 = vrot.lane.b32.xlu1 %v5907_v31, %s4775_s8 }
 0x5c7   : > { %2385 = vrot.lane.b32.xlu1 %v2372_v47, %s4776_s15 }
 0x5f9   : > { %v1975_v63 = vpop.permute.xlu1 %1974 }
 0x5fa   : > { %1978 = vst.msk [vmem:[%s5953_s29] sm:$0xff] %vm1977_vm15, %v1975_v63  ;;  %vm3282_vm15 = vcmask 31744  }
 0x5fd   : > { %v2017_v1 = vpop.permute.xlu1 %2016 }
 0x5fe   : > { %v2021_v3 = vsel %vm2018_vm1, %v2015_v62, %v2017_v1  ;;  %v2384_v1 = vsel %vm1672_vm9, %v2381_v55, %v2383_v53 }
 0x5ff   : > { %4221 = vmatpush3.msk.msra.mxu0 %vm1995_vm13, %v2021_v3  ;;  %v2380_v3 = vsel %vm1672_vm9, %v2377_v60, %v2379_v54 }
 0x600   : > { %4222 = vmatprep.subr.mxu0 %v4768_v0 }
 0x601   : > { %v2013_v4 = vpop.permute.xlu1 %2012  ;;  %v1979_v6 = vld [vmem:[%s5953_s29] sm:$0xff] }
 0x602   : > { %1987 = vrot.lane.b32.xlu0 %v1979_v6, %s4770_s12  ;;  %v2020_v7 = vsel %vm2018_vm1, %v2011_v2, %v2013_v4  ;;  %v2350_v2 = vld [vmem:[%s6785_s11 + $0x120] sm:$0xff] }
 0x603   : > { %4223 = vmatpush3.msra.mxu0 %v2020_v7  ;;  %v2373_v4 = vrot.slane %v2350_v2, 5 }
 0x604   : > { %4224 = vmatprep.subr.mxu0 %v4768_v0 }
 0x605   : > { %v2009_v11 = vpop.permute.xlu1 %2008  ;;  %v2376_v48 = vsel %vm1672_vm9, %v2373_v4, %v2375_v59  ;;  %v2374_v51 = vsel %vm1672_vm9, %v2371_v46, %v2373_v4  ;;  %v6254_v46 = vld [vmem:[%s6785_s11 + $0x1e0] sm:$0xff] }
 0x606   : > { %2157 = vrot.lane.b32.xlu0 %v2144_v9, %s4774_s23  ;;  %v2019_v13 = vsel %vm2018_vm1, %v2007_v10, %v2009_v11  ;;  %v6290_v4 = vld [vmem:[%s6785_s11 + $0x1a0] sm:$0xff] }
 0x607   : > { %4225 = vmatpush3.msra.mxu0 %v2019_v13 }
 0x608   : > { %4229 = vmatprep.subr.mxu0 %v4768_v0 }
 0x609   : > { %v2160_v16 = vpop.permute.xlu1 %2159 }
 0x60a   : > { %2153 = vrot.lane.b32.xlu0 %v2140_v15, %s4774_s23  ;;  %v2497_v15 = vld [vmem:[%s6784_s10 + $0xe8] sm:$0xf] }
 0x60d   : > { %v2156_v18 = vpop.permute.xlu1 %2155 }
 0x60e   : > { %2025 = vrot.lane.b32.xlu0 %v5903_v28, %s4772_s27  ;;  %s4777_s27 = smov 24  }
 0x611   : > { %v2152_v21 = vpop.permute.xlu1 %2151 }
 0x612   : > { %2149 = vrot.lane.b32.xlu0 %v2136_v19, %s4774_s23 }
 0x615   : > { %v2028_v23 = vpop.permute.xlu1 %2027 }
 0x616   : > { %2145 = vrot.lane.b32.xlu0 %v2132_v22, %s4774_s23 }
 0x619   : > { %v2148_v24 = vpop.permute.xlu1 %2147 }
 0x61d   : > { %v2169_v25 = vpop.permute.xlu1 %2168 }
 0x621   : > { %v2267_v26 = vpop.permute.xlu1 %2266 }
 0x622   : > { %4249 = vmatpush3.msk.msra.mxu1 %vm1995_vm13, %v2267_v26 }
 0x623   : > { %4250 = vmatprep.subr.mxu1 %v4768_v0 }
 0x625   : > { %v2263_v62 = vpop.permute.xlu1 %2262 }
 0x629   : > { %v2400_v49 = vpop.permute.xlu1 %2399 }
 0x62d   : > { %v2396_v54 = vpop.permute.xlu1 %2395 }
 0x631   : > { %v2392_v57 = vpop.permute.xlu1 %2391 }
 0x635   : > { %v2271_v60 = vpop.permute.xlu1 %2270 }
 0x639   : > { %v2386_v7 = vpop.permute.xlu1 %2385 }
 0x674   : > { %v1988_v28 = vpop.permute.xlu0 %1987 }
 0x675   : > { %4227 = vmatmul.mubr.msk.f32.vlgmr.msra.gmra.mxu0 %vm2031_vm2, %v1988_v28  ;;  %v2496_v28 = vld [vmem:[%s6784_s10 + $0xd0] sm:$0xff] }
 0x676   : > { %4230 = vmatpush3.msk.msra.mxu0 %vm1900_vm11, %v2160_v16  ;;  %4245 = vmatprep.mubr.msk.f32.mxu0 %vm4769_vm0, %v4768_v0  ;;  %v2514_v16 = vrot.slane %v2497_v15, 2 }
 0x677   : > { %4231 = vmatprep.subr.mxu0 %v4768_v0 }
 0x678   : > { %v2158_v27 = vpop.permute.xlu0 %2157 }
 0x679   : > { %4232 = vmatpush3.msra.mxu0 %v2158_v27 }
 0x67a   : > { %4233 = vmatprep.subr.mxu0 %v4768_v0 }
 0x67b   : > { %4234 = vmatpush3.msra.mxu0 %v2156_v18  ;;  %v2509_v18 = vrot.slane %v2495_v17, 2  ;;  %v6368_v17 = vld [vmem:[%s6785_s11 + $0x270] sm:$0xff] }
 0x67c   : > { %v2154_v8 = vpop.permute.xlu0 %2153  ;;  %4235 = vmatprep.subr.mxu0 %v4768_v0 }
 0x67d   : > { %4236 = vmatpush3.msra.mxu0 %v2154_v8  ;;  %v2515_v19 = vsel %vm1583_vm7, %v2509_v18, %v2514_v16 }
 0x67e   : > { %4237 = vmatprep.subr.mxu0 %v4768_v0 }
 0x67f   : > { %4238 = vmatpush3.msra.mxu0 %v2152_v21  ;;  %v2508_v21 = vrot.slane %v2493_v20, 2  ;;  %v2921_v20 = vrot.slane %v6368_v17, 5 }
 0x680   : > { %v2026_v30 = vpop.permute.xlu0 %2025  ;;  %4239 = vmatprep.subr.mxu0 %v4768_v0 }
 0x681   : > { %v2029_v36 = vsel %vm2018_vm1, %v2026_v30, %v2028_v23  ;;  %v2510_v22 = vsel %vm1583_vm7, %v2508_v21, %v2509_v18  ;;  %v2512_v30 = vrot.slane %v2496_v28, 2  ;;  %vm3444_vm1 = vcmask 64512  }
 0x684   : > { %v2150_v5 = vpop.permute.xlu0 %2149 }
 0x685   : > { %4240 = vmatpush3.msra.mxu0 %v2150_v5  ;;  %v2494_v5 = vld [vmem:[%s6784_s10 + $0xb0] sm:$0xfc] }
 0x686   : > { %4241 = vmatprep.subr.mxu0 %v4768_v0 }
 0x687   : > { %4242 = vmatpush3.msra.mxu0 %v2148_v24 }
 0x688   : > { %4243 = vmatprep.subr.mxu0 %v4768_v0  ;;  %v2146_v34 = vpop.permute.xlu0 %2145 }
 0x689   : > { %4244 = vmatpush3.msra.mxu0 %v2146_v34 }
 0x68a   : > { %4276 = vmatprep.subr.mxu0 %v4768_v0 }
 0x735   : > { %v2102_v37 = vpop.f32.mrf.mxu0 }
 0x736   : > { %v2103_v38 = vadd.f32 %v2102_v37, %v2029_v36  ;;  %v2511_v36 = vrot.slane %v2494_v5, 2  ;;  %v6227_v37 = vld [vmem:[%s6785_s11 + $0x220] sm:$0xff] }
 0x737   : > { %v4228_v39 = vpop.f32.mrf.mxu0 }
 0x738   : > { %v2106_v40 = vmax.f32 %v2103_v38, 0.0  ;;  %v2630_v38 = vld [vmem:[%s6785_s11 + $0x230] sm:$0x1f]  ;;  %v2513_v39 = vsel %vm1583_vm7, %v2511_v36, %v2512_v30 }
 0x73a   : > { %4246 = vmatmul.mubr.msk.f32.vlgmr.msra.gmra.mxu0 %vm1896_vm12, %v2106_v40  ;;  %v2671_v40 = vrot.slane %v6227_v37, 6 }
 0x73b   : > { %4282 = vmatprep.mubr.msk.f32.mxu0 %vm4769_vm0, %v4768_v0 }
 0x7fa   : > { %v2242_v41 = vpop.f32.mrf.mxu0 }
 0x7fb   : > { %v2243_v42 = vadd.f32 %v2242_v41, %v2169_v25  ;;  %v2498_v25 = vld [vmem:[%s6784_s10 + $0xf0] sm:$0xf]  ;;  %v2673_v41 = vrot.slane %v2630_v38, 6 }
 0x7fc   : > { %v4247_v43 = vpop.f32.mrf.mxu0  ;;  %v2516_v8 = vrot.slane %v2498_v25, 2 }
 0x7fd   : > { %2247 = vrot.lane.b32.xlu0 %v2243_v42, %s4777_s27  ;;  %v6238_v42 = vld [vmem:[%s6785_s11 + $0x200] sm:$0xff]  ;;  %v6243_v43 = vld [vmem:[%s6785_s11 + $0x210] sm:$0xff]  ;;  %s4781_s27 = smov 99  }
 0x7fe   : > { %v2517_v34 = vsel %vm1583_vm7, %v2512_v30, %v2516_v8  ;;  %v2667_v33 = vrot.slane %v6238_v42, 6  ;;  %v2669_v45 = vrot.slane %v6243_v43, 6  ;;  %v2618_v43 = vld [vmem:[%s6785_s11 + $0x170] sm:$0xc0] }
 0x800   : > { %v2670_v47 = vsel %vm1995_vm13, %v2667_v33, %v2669_v45  ;;  %v2672_v30 = vsel %vm1995_vm13, %v2669_v45, %v2671_v40  ;;  %v2650_v45 = vrot.slane %v2618_v43, 6 }
 0x801   : > { %2264 = vrot.lane.b32.xlu0 %v2254_v44, %s4775_s8  ;;  %v2674_v44 = vsel %vm1995_vm13, %v2671_v40, %v2673_v41  ;;  %s6834_s8 = sld [smem:[#allocation30_spill]] }
 0x86f   : > { %v2248_v58 = vpop.permute.xlu0 %2247 }
 0x870   : > { %2251 = vst.msk [vmem:[%s5953_s29] sm:$0xff] %vm2250_vm3, %v2248_v58  ;;  %v2663_v58 = vrot.slane %v6254_v46, 6 }
 0x873   : > { %v2265_v61 = vpop.permute.xlu0 %2264 }
 0x874   : > { %4251 = vmatpush3.msra.mxu1 %v2265_v61  ;;  %v2665_v61 = vrot.slane %v6259_v35, 6 }
 0x875   : > { %4252 = vmatprep.subr.mxu1 %v4768_v0 }
 0x876   : > { %4253 = vmatpush3.msra.mxu1 %v2263_v62  ;;  %v6272_v62 = vld [vmem:[%s6785_s11 + $0x1c0] sm:$0xff]  ;;  %v2668_v38 = vsel %vm1995_vm13, %v2665_v61, %v2667_v33 }
 0x877   : > { %v2252_v63 = vld [vmem:[%s5953_s29] sm:$0xff]  ;;  %4257 = vmatprep.subr.mxu1 %v4768_v0  ;;  %v2659_v2 = vrot.slane %v6272_v62, 6 }
 0x878   : > { %2257 = vrot.lane.b32.xlu0 %v2252_v63, %s4774_s23  ;;  %s4780_s23 = smov 68   ;;  %v6277_v63 = vld [vmem:[%s6785_s11 + $0x1d0] sm:$0xff] }
 0x87c   : > { %2397 = vrot.lane.b32.xlu0 %v2384_v1, %s4776_s15  ;;  %v2666_v1 = vsel %vm1995_vm13, %v2663_v58, %v2665_v61 }
 0x880   : > { %2393 = vrot.lane.b32.xlu0 %v2380_v3, %s4776_s15  ;;  %v2661_v3 = vrot.slane %v6277_v63, 6 }
 0x884   : > { %2389 = vrot.lane.b32.xlu0 %v2376_v48, %s4776_s15  ;;  %v6295_v48 = vld [vmem:[%s6785_s11 + $0x1b0] sm:$0xff] }
 0x888   : > { %2387 = vrot.lane.b32.xlu0 %v2374_v51, %s4776_s15  ;;  %v2662_v51 = vsel %vm1995_vm13, %v2659_v2, %v2661_v3 }
 0x88c   : > { %2408 = vrot.lane.b32.xlu0 %v5944_v50, %s4776_s15 }
 0x890   : > { %2526 = vrot.lane.b32.xlu0 %v2514_v16, %s4778_s22  ;;  %v6363_v16 = vld [vmem:[%s6785_s11 + $0x260] sm:$0xff] }
 0x894   : > { %2522 = vrot.lane.b32.xlu0 %v2515_v19, %s4778_s22  ;;  %v2919_v19 = vrot.slane %v6363_v16, 5 }
 0x896   : > { %v2922_v21 = vsel %vm1672_vm9, %v2919_v19, %v2921_v20 }
 0x898   : > { %2518 = vrot.lane.b32.xlu0 %v2510_v22, %s4778_s22 }
 0x8ea   : > { %v2258_v53 = vpop.permute.xlu0 %2257 }
 0x8eb   : > { %4255 = vmatmul.mubr.msk.f32.vlgmr.msra.gmra.mxu1 %vm2031_vm2, %v2258_v53  ;;  %v2657_v53 = vrot.slane %v6295_v48, 6 }
 0x8ec   : > { %4258 = vmatpush3.msk.msra.mxu1 %vm1900_vm11, %v2400_v49  ;;  %4273 = vmatprep.mubr.msk.f32.mxu1 %vm4769_vm0, %v4768_v0  ;;  %v2655_v49 = vrot.slane %v6290_v4, 6 }
 0x8ed   : > { %4259 = vmatprep.subr.mxu1 %v4768_v0  ;;  %v2660_v41 = vsel %vm1995_vm13, %v2657_v53, %v2659_v2 }
 0x8ee   : > { %v2398_v55 = vpop.permute.xlu0 %2397 }
 0x8ef   : > { %4260 = vmatpush3.msra.mxu1 %v2398_v55  ;;  %v6314_v55 = vld [vmem:[%s6785_s11 + $0x180] sm:$0xff] }
 0x8f0   : > { %4261 = vmatprep.subr.mxu1 %v4768_v0 }
 0x8f1   : > { %4262 = vmatpush3.msra.mxu1 %v2396_v54  ;;  %v2658_v54 = vsel %vm1995_vm13, %v2655_v49, %v2657_v53 }
 0x8f2   : > { %v2394_v56 = vpop.permute.xlu0 %2393  ;;  %4263 = vmatprep.subr.mxu1 %v4768_v0 }
 0x8f3   : > { %4264 = vmatpush3.msra.mxu1 %v2394_v56  ;;  %v6319_v56 = vld [vmem:[%s6785_s11 + $0x190] sm:$0xff] }
 0x8f4   : > { %4265 = vmatprep.subr.mxu1 %v4768_v0 }
 0x8f5   : > { %4266 = vmatpush3.msra.mxu1 %v2392_v57  ;;  %v2651_v57 = vrot.slane %v6314_v55, 6 }
 0x8f6   : > { %v2390_v59 = vpop.permute.xlu0 %2389  ;;  %4267 = vmatprep.subr.mxu1 %v4768_v0 }
 0x8f7   : > { %4268 = vmatpush3.msra.mxu1 %v2390_v59  ;;  %v2653_v59 = vrot.slane %v6319_v56, 6  ;;  %v2652_v35 = vsel %vm1995_vm13, %v2650_v45, %v2651_v57 }
 0x8f8   : > { %4269 = vmatprep.subr.mxu1 %v4768_v0 }
 0x8f9   : > { %v2656_v33 = vsel %vm1995_vm13, %v2653_v59, %v2655_v49 }
 0x8fa   : > { %v2388_v6 = vpop.permute.xlu0 %2387 }
 0x8fb   : > { %4270 = vmatpush3.msra.mxu1 %v2388_v6  ;;  %v2799_v6 = vld [vmem:[%s6784_s10 + $0x170] sm:$0x3] }
 0x8fc   : > { %4271 = vmatprep.subr.mxu1 %v4768_v0 }
 0x8fd   : > { %4272 = vmatpush3.msra.mxu1 %v2386_v7  ;;  %v2797_v7 = vld [vmem:[%s6784_s10 + $0x130] sm:$0xff] }
 0x8fe   : > { %4312 = vmatprep.subr.mxu1 %v4768_v0  ;;  %v2409_v23 = vpop.permute.xlu0 %2408 }
 0x902   : > { %v2527_v22 = vpop.permute.xlu0 %2526 }
 0x906   : > { %v2523_v25 = vpop.permute.xlu0 %2522 }
 0x90a   : > { %v2519_v5 = vpop.permute.xlu0 %2518 }
 0x9ab   : > { %v2343_v9 = vpop.f32.mrf.mxu1 }
 0x9ac   : > { %v2344_v10 = vadd.f32 %v2343_v9, %v2271_v60  ;;  %v2654_v60 = vsel %vm1995_vm13, %v2651_v57, %v2653_v59  ;;  %v6344_v9 = vld [vmem:[%s6785_s11 + $0x2a0] sm:$0x3f] }
 0x9ad   : > { %v4256_v11 = vpop.f32.mrf.mxu1 }
 0x9ae   : > { %v2347_v13 = vmax.f32 %v2344_v10, 0.0  ;;  %v6354_v10 = vld [vmem:[%s6785_s11 + $0x290] sm:$0xff]  ;;  %v2927_v11 = vrot.slane %v6344_v9, 5 }
 0x9af   : > { %v2925_v15 = vrot.slane %v6354_v10, 5 }
 0x9b0   : > { %4274 = vmatmul.mubr.msk.f32.vlgmr.msra.gmra.mxu1 %vm1896_vm12, %v2347_v13 }
 0x9b1   : > { %4318 = vmatprep.mubr.msk.f32.mxu1 %vm4769_vm0, %v4768_v0 }
 0xa70   : > { %v2482_v24 = vpop.f32.mrf.mxu1 }
 0xa71   : > { %v2483_v26 = vadd.f32 %v2482_v24, %v2409_v23 }
 0xa72   : > { %v4275_v27 = vpop.f32.mrf.mxu1 }
 0xa73   : > { %2487 = vrot.lane.b32.xlu1 %v2483_v26, %s4779_s4 }
 0xa77   : > { %2528 = vrot.lane.b32.xlu1 %v2516_v8, %s4778_s22 }
 0xa7b   : > { %2524 = vrot.lane.b32.xlu1 %v2517_v34, %s4778_s22 }
 0xa7f   : > { %2520 = vrot.lane.b32.xlu1 %v2513_v39, %s4778_s22  ;;  %v2664_v39 = vsel %vm1995_vm13, %v2661_v3, %v2663_v58 }
 0xa83   : > { %2697 = vrot.lane.b32.xlu1 %v2674_v44, %s4780_s23 }
 0xa87   : > { %2693 = vrot.lane.b32.xlu1 %v2670_v47, %s4780_s23 }
 0xa8b   : > { %2689 = vrot.lane.b32.xlu1 %v2666_v1, %s4780_s23 }
 0xa8f   : > { %2685 = vrot.lane.b32.xlu1 %v2662_v51, %s4780_s23 }
 0xa93   : > { %2681 = vrot.lane.b32.xlu1 %v2658_v54, %s4780_s23 }
 0xa97   : > { %2539 = vrot.lane.b32.xlu1 %v5905_v29, %s4778_s22 }
 0xa9b   : > { %2677 = vrot.lane.b32.xlu1 %v2654_v60, %s4780_s23 }
 0xa9f   : > { %2710 = vrot.lane.b32.xlu1 %v5944_v50, %s4780_s23  ;;  %v6349_v50 = vld [vmem:[%s6785_s11 + $0x280] sm:$0xff] }
 0xaa0   : > { %v2923_v13 = vrot.slane %v6349_v50, 5 }
 0xaa2   : > { %v2926_v18 = vsel %vm1672_vm9, %v2923_v13, %v2925_v15 }
 0xaa3   : > { %2810 = vrot.lane.b32.xlu1 %v2799_v6, %s4781_s27  ;;  %v2798_v6 = vld [vmem:[%s6784_s10 + $0x150] sm:$0xff] }
 0xaa7   : > { %2806 = vrot.lane.b32.xlu1 %v2797_v7, %s4781_s27  ;;  %v2893_v7 = vld [vmem:[%s6785_s11 + $0x240] sm:$0xff] }
 0xaab   : > { %2943 = vrot.lane.b32.xlu1 %v2927_v11, %s4782_s17 }
 0xaaf   : > { %2939 = vrot.lane.b32.xlu1 %v2926_v18, %s4782_s17  ;;  %v2892_v18 = vld [vmem:[%s6785_s11 + $0x230] sm:$0xe0] }
 0xab3   : > { %2935 = vrot.lane.b32.xlu1 %v2922_v21, %s4782_s17  ;;  %v2915_v21 = vrot.slane %v2893_v7, 5 }
 0xab7   : > { %2814 = vrot.lane.b32.xlu1 %v5905_v29, %s4781_s27 }
 0xae5   : > { %v2488_v23 = vpop.permute.xlu1 %2487 }
 0xae6   : > { %2491 = vst.msk [vmem:[%s5953_s29] sm:$0xff] %vm2490_vm4, %v2488_v23 }
 0xae9   : > { %v2529_v24 = vpop.permute.xlu1 %2528 }
 0xaea   : > { %v2533_v26 = vsel %vm2530_vm5, %v2527_v22, %v2529_v24  ;;  %v2914_v22 = vrot.slane %v2892_v18, 5 }
 0xaeb   : > { %4277 = vmatpush3.msk.msra.mxu0 %vm1995_vm13, %v2533_v26 }
 0xaec   : > { %4278 = vmatprep.subr.mxu0 %v4768_v0  ;;  %v2916_v23 = vsel %vm1672_vm9, %v2914_v22, %v2915_v21 }
 0xaed   : > { %v2525_v28 = vpop.permute.xlu1 %2524  ;;  %v2492_v27 = vld [vmem:[%s5953_s29] sm:$0xff]  ;;  %2929 = vrot.lane.b32.xlu1 %v2916_v23, %s4782_s17 }
 0xaee   : > { %2500 = vrot.lane.b32.xlu0 %v2492_v27, %s4776_s15  ;;  %v2532_v8 = vsel %vm2530_vm5, %v2523_v25, %v2525_v28  ;;  %v2928_v27 = vsel %vm1672_vm9, %v2925_v15, %v2927_v11  ;;  %s4786_s15 = smov 20  }
 0xaef   : > { %4279 = vmatpush3.msra.mxu0 %v2532_v8  ;;  %v2894_v8 = vld [vmem:[%s6785_s11 + $0x250] sm:$0xff] }
 0xaf0   : > { %4280 = vmatprep.subr.mxu0 %v4768_v0 }
 0xaf1   : > { %v2521_v34 = vpop.permute.xlu1 %2520 }
 0xaf2   : > { %2695 = vrot.lane.b32.xlu0 %v2672_v30, %s4780_s23  ;;  %v2531_v36 = vsel %vm2530_vm5, %v2519_v5, %v2521_v34  ;;  %v2924_v30 = vsel %vm1672_vm9, %v2921_v20, %v2923_v13  ;;  %v2917_v5 = vrot.slane %v2894_v8, 5  ;;  %v3259_v8 = vld [vmem:[%s6784_s10 + $0x1d0] sm:$0xff] }
 0xaf3   : > { %4281 = vmatpush3.msra.mxu0 %v2531_v36 }
 0xaf4   : > { %4285 = vmatprep.subr.mxu0 %v4768_v0  ;;  %v2920_v9 = vsel %vm1672_vm9, %v2917_v5, %v2919_v19  ;;  %v2918_v10 = vsel %vm1672_vm9, %v2915_v21, %v2917_v5  ;;  %vm3034_vm9 = vcmask 884432   ;;  %v3257_v5 = vld [vmem:[%s6784_s10 + $0x1b0] sm:$0xf0] }
 0xaf5   : > { %v2698_v37 = vpop.permute.xlu1 %2697 }
 0xaf6   : > { %2691 = vrot.lane.b32.xlu0 %v2668_v38, %s4780_s23  ;;  %v3965_v38 = vld [vmem:[#allocation11] ss:$0 sm:$0xff] }
 0xaf9   : > { %v2694_v40 = vpop.permute.xlu1 %2693 }
 0xafa   : > { %2687 = vrot.lane.b32.xlu0 %v2664_v39, %s4780_s23 }
 0xafd   : > { %v2690_v42 = vpop.permute.xlu1 %2689 }
 0xafe   : > { %2683 = vrot.lane.b32.xlu0 %v2660_v41, %s4780_s23 }
 0xb01   : > { %v2686_v44 = vpop.permute.xlu1 %2685 }
 0xb02   : > { %2537 = vrot.lane.b32.xlu0 %v5907_v31, %s4778_s22  ;;  %s4783_s22 = smov 60  }
 0xb05   : > { %v2682_v46 = vpop.permute.xlu1 %2681 }
 0xb06   : > { %2679 = vrot.lane.b32.xlu0 %v2656_v33, %s4780_s23 }
 0xb09   : > { %v2540_v47 = vpop.permute.xlu1 %2539 }
 0xb0a   : > { %2675 = vrot.lane.b32.xlu0 %v2652_v35, %s4780_s23 }
 0xb0d   : > { %v2678_v58 = vpop.permute.xlu1 %2677 }
 0xb11   : > { %v2711_v61 = vpop.permute.xlu1 %2710 }
 0xb15   : > { %v2811_v31 = vpop.permute.xlu1 %2810 }
 0xb16   : > { %4313 = vmatpush3.msk.msra.mxu1 %vm1995_vm13, %v2811_v31  ;;  %v3133_v31 = vld [vmem:[%s6785_s11 + $0x2f0] sm:$0xf] }
 0xb17   : > { %4314 = vmatprep.subr.mxu1 %v4768_v0 }
 0xb19   : > { %v2807_v26 = vpop.permute.xlu1 %2806 }
 0xb1d   : > { %v2944_v11 = vpop.permute.xlu1 %2943 }
 0xb21   : > { %v2940_v50 = vpop.permute.xlu1 %2939 }
 0xb25   : > { %v2936_v17 = vpop.permute.xlu1 %2935 }
 0xb29   : > { %v2815_v20 = vpop.permute.xlu1 %2814 }
 0xb5f   : > { %v2930_v36 = vpop.permute.xlu1 %2929 }
 0xb60   : > { %v2501_v62 = vpop.permute.xlu0 %2500 }
 0xb61   : > { %4283 = vmatmul.mubr.msk.f32.vlgmr.msra.gmra.mxu0 %vm2031_vm2, %v2501_v62  ;;  %v3130_v62 = vld [vmem:[%s6785_s11 + $0x2c0] sm:$0xff] }
 0xb62   : > { %4286 = vmatpush3.msk.msra.mxu0 %vm2717_vm6, %v2698_v37  ;;  %4309 = vmatprep.mubr.msk.f32.mxu0 %vm4769_vm0, %v4768_v0 }
 0xb63   : > { %4287 = vmatprep.subr.mxu0 %v4768_v0 }
 0xb64   : > { %v2696_v63 = vpop.permute.xlu0 %2695 }
 0xb65   : > { %4288 = vmatpush3.msra.mxu0 %v2696_v63 }
 0xb66   : > { %4289 = vmatprep.subr.mxu0 %v4768_v0 }
 0xb67   : > { %4290 = vmatpush3.msra.mxu0 %v2694_v40 }
 0xb68   : > { %v2692_v1 = vpop.permute.xlu0 %2691  ;;  %4291 = vmatprep.subr.mxu0 %v4768_v0 }
 0xb69   : > { %4292 = vmatpush3.msra.mxu0 %v2692_v1 }
 0xb6a   : > { %4293 = vmatprep.subr.mxu0 %v4768_v0 }
 0xb6b   : > { %4294 = vmatpush3.msra.mxu0 %v2690_v42  ;;  %v3038_v42 = vld [vmem:[%s6784_s10 + $0x1b0] sm:$0xf] }
 0xb6c   : > { %v2688_v2 = vpop.permute.xlu0 %2687  ;;  %4295 = vmatprep.subr.mxu0 %v4768_v0 }
 0xb6d   : > { %4296 = vmatpush3.msra.mxu0 %v2688_v2  ;;  %v3155_v2 = vrot.slane %v3133_v31, 6 }
 0xb6e   : > { %4297 = vmatprep.subr.mxu0 %v4768_v0 }
 0xb6f   : > { %4298 = vmatpush3.msra.mxu0 %v2686_v44 }
 0xb70   : > { %v2684_v3 = vpop.permute.xlu0 %2683  ;;  %4299 = vmatprep.subr.mxu0 %v4768_v0 }
 0xb71   : > { %4300 = vmatpush3.msra.mxu0 %v2684_v3  ;;  %v3149_v3 = vrot.slane %v3130_v62, 6 }
 0xb72   : > { %4301 = vmatprep.subr.mxu0 %v4768_v0 }
 0xb73   : > { %4302 = vmatpush3.msra.mxu0 %v2682_v46  ;;  %v3037_v46 = vld [vmem:[%s6784_s10 + $0x190] sm:$0xff] }
 0xb74   : > { %v2538_v4 = vpop.permute.xlu0 %2537  ;;  %4303 = vmatprep.subr.mxu0 %v4768_v0 }
 0xb75   : > { %v2541_v49 = vsel %vm2530_vm5, %v2538_v4, %v2540_v47  ;;  %v3129_v4 = vld [vmem:[%s6785_s11 + $0x2b0] sm:$0xff] }
 0xb78   : > { %v2680_v48 = vpop.permute.xlu0 %2679 }
 0xb79   : > { %4304 = vmatpush3.msra.mxu0 %v2680_v48 }
 0xb7a   : > { %4305 = vmatprep.subr.mxu0 %v4768_v0 }
 0xb7b   : > { %4306 = vmatpush3.msra.mxu0 %v2678_v58  ;;  %v3132_v58 = vld [vmem:[%s6785_s11 + $0x2e0] sm:$0xff] }
 0xb7c   : > { %4307 = vmatprep.subr.mxu0 %v4768_v0  ;;  %v2676_v51 = vpop.permute.xlu0 %2675  ;;  %v3153_v63 = vrot.slane %v3132_v58, 6  ;;  %v3379_v58 = vld [vmem:[%s6785_s11 + $0x348] sm:$0x3] }
 0xb7d   : > { %4308 = vmatpush3.msra.mxu0 %v2676_v51 }
 0xb7e   : > { %4340 = vmatprep.subr.mxu0 %v4768_v0  ;;  %v3156_v51 = vsel %vm1995_vm13, %v3153_v63, %v3155_v2 }
 0xc21   : > { %v2613_v53 = vpop.f32.mrf.mxu0 }
 0xc22   : > { %v2614_v54 = vadd.f32 %v2613_v53, %v2541_v49 }
 0xc23   : > { %v4284_v55 = vpop.f32.mrf.mxu0 }
 0xc24   : > { %v2617_v56 = vmax.f32 %v2614_v54, 0.0  ;;  %v3147_v54 = vrot.slane %v3129_v4, 6 }
 0xc26   : > { %4310 = vmatmul.mubr.msk.f32.vlgmr.msra.gmra.mxu0 %vm2713_vm8, %v2617_v56  ;;  %v3128_v56 = vld [vmem:[%s6785_s11 + $0x2a0] sm:$0xc0] }
 0xc27   : > { %4344 = vmatprep.mubr.msk.f32.mxu0 %vm4769_vm0, %v4768_v0 }
 0xce6   : > { %v2786_v57 = vpop.f32.mrf.mxu0 }
 0xce7   : > { %v2787_v59 = vadd.f32 %v2786_v57, %v2711_v61  ;;  %v3131_v61 = vld [vmem:[%s6785_s11 + $0x2d0] sm:$0xff]  ;;  %v3150_v57 = vsel %vm1995_vm13, %v3147_v54, %v3149_v3 }
 0xce8   : > { %v4311_v60 = vpop.f32.mrf.mxu0  ;;  %v3151_v48 = vrot.slane %v3131_v61, 6 }
 0xce9   : > { %2791 = vrot.lane.b32.xlu0 %v2787_v59, %s4783_s22  ;;  %v3146_v59 = vrot.slane %v3128_v56, 6  ;;  %s3776_s22 = sshll.u32 %s5953_s29, 4  ;;  %s3777_s22 = int_to_ptr.vmem [resolvable:$true] %s3776_s22 }
 0xcea   : > { %v3152_v53 = vsel %vm1995_vm13, %v3149_v3, %v3151_v48  ;;  %v3154_v55 = vsel %vm1995_vm13, %v3151_v48, %v3153_v63  ;;  %v3422_v63 = vrot.slane %v3379_v58, 4  ;;  %s4680_s12 = scalar_lea.vmem %s3777_s22, 256 }
 0xceb   : > { %v3148_v60 = vsel %vm1995_vm13, %v3146_v59, %v3147_v54  ;;  %vm3254_vm13 = vcmask 982880   ;;  %v3368_v54 = vld [vmem:[%s6785_s11 + $0x2f0] sm:$0xf0]  ;;  %p4681_p5 = scmp.ne.s32.totalorder %s3777_s22, %s4680_s12 }
 0xcec   : > { %v3402_v56 = vrot.slane %v3368_v54, 4  ;;  %v3638_v54 = vld [vmem:[%s6785_s11 + $0x348] sm:$0xfc] }
 0xced   : > { %2808 = vrot.lane.b32.xlu0 %v2798_v6, %s4781_s27  ;;  %s4784_s27 = smov 56   ;;  %p4682_p12 = pnand %p4681_p5, %p6835_p11 }
 0xcef   : > { %p4683_p1 = pneg %p4682_p12 }
 0xd5b   : > { %v2792_v24 = vpop.permute.xlu0 %2791 }
 0xd5c   : > { %2795 = vst.msk [vmem:[%s5953_s29] sm:$0xff] %vm2794_vm10, %v2792_v24 }
 0xd5f   : > { %v2809_v25 = vpop.permute.xlu0 %2808 }
 0xd60   : > { %4315 = vmatpush3.msra.mxu1 %v2809_v25 }
 0xd61   : > { %4316 = vmatprep.subr.mxu1 %v4768_v0 }
 0xd62   : > { %4317 = vmatpush3.msra.mxu1 %v2807_v26 }
 0xd63   : > { %v2796_v28 = vld [vmem:[%s5953_s29] sm:$0xff]  ;;  %4321 = vmatprep.subr.mxu1 %v4768_v0 }
 0xd64   : > { %2801 = vrot.lane.b32.xlu0 %v2796_v28, %s4784_s27  ;;  %s4794_s27 = smov [#allocation13]  }
 0xd65   : > { %s4684_s20 = sshll.u32 %s4794_s27, 4  ;;  %s4685_s20 = int_to_ptr.vmem [resolvable:$false] %s4684_s20 }
 0xd66   : > { %p4687_p8 = scmp.lt.s32.totalorder %s3777_s22, %s4685_s20 }
 0xd68   : > { %2941 = vrot.lane.b32.xlu0 %v2928_v27, %s4782_s17 }
 0xd6c   : > { %2937 = vrot.lane.b32.xlu0 %v2924_v30, %s4782_s17  ;;  %v3269_v30 = vrot.slane %v3259_v8, 4 }
 0xd70   : > { %2933 = vrot.lane.b32.xlu0 %v2920_v9, %s4782_s17  ;;  %v3268_v9 = vrot.slane %v3257_v5, 4 }
 0xd74   : > { %2931 = vrot.lane.b32.xlu0 %v2918_v10, %s4782_s17  ;;  %v3270_v10 = vsel %vm2129_vm14, %v3268_v9, %v3269_v30 }
 0xd78   : > { %2952 = vrot.lane.b32.xlu0 %v3965_v38, %s4782_s17  ;;  %s4785_s17 = smov 90  }
 0xd7c   : > { %3046 = vrot.lane.b32.xlu0 %v3038_v42, %s4779_s4 }
 0xdd6   : > { %v2802_v15 = vpop.permute.xlu0 %2801 }
 0xdd7   : > { %4319 = vmatmul.mubr.msk.f32.vlgmr.msra.gmra.mxu1 %vm2031_vm2, %v2802_v15  ;;  %vm3539_vm2 = vcmask 1048512  }
 0xdd8   : > { %4322 = vmatpush3.msk.msra.mxu1 %vm1900_vm11, %v2944_v11  ;;  %4337 = vmatprep.mubr.msk.f32.mxu1 %vm4769_vm0, %v4768_v0  ;;  %vm3052_vm11 = vcmask 97280  }
 0xdd9   : > { %4323 = vmatprep.subr.mxu1 %v4768_v0 }
 0xdda   : > { %v2942_v13 = vpop.permute.xlu0 %2941 }
 0xddb   : > { %4324 = vmatpush3.msra.mxu1 %v2942_v13 }
 0xddc   : > { %4325 = vmatprep.subr.mxu1 %v4768_v0 }
 0xddd   : > { %4326 = vmatpush3.msra.mxu1 %v2940_v50  ;;  %v3260_v50 = vld [vmem:[%s6784_s10 + $0x1d8] sm:$0xff] }
 0xdde   : > { %v2938_v16 = vpop.permute.xlu0 %2937  ;;  %4327 = vmatprep.subr.mxu1 %v4768_v0 }
 0xddf   : > { %4328 = vmatpush3.msra.mxu1 %v2938_v16  ;;  %v3258_v16 = vld [vmem:[%s6784_s10 + $0x1b8] sm:$0xf0] }
 0xde0   : > { %4329 = vmatprep.subr.mxu1 %v4768_v0 }
 0xde1   : > { %4330 = vmatpush3.msra.mxu1 %v2936_v17 }
 0xde2   : > { %v2934_v19 = vpop.permute.xlu0 %2933  ;;  %4331 = vmatprep.subr.mxu1 %v4768_v0 }
 0xde3   : > { %4332 = vmatpush3.msra.mxu1 %v2934_v19  ;;  %v3272_v19 = vrot.slane %v3260_v50, 4 }
 0xde4   : > { %4333 = vmatprep.subr.mxu1 %v4768_v0 }
 0xde6   : > { %v2932_v34 = vpop.permute.xlu0 %2931 }
 0xde7   : > { %4334 = vmatpush3.msra.mxu1 %v2932_v34  ;;  %v3376_v34 = vld [vmem:[%s6785_s11 + $0x330] sm:$0xff] }
 0xde8   : > { %4335 = vmatprep.subr.mxu1 %v4768_v0 }
 0xde9   : > { %4336 = vmatpush3.msra.mxu1 %v2930_v36  ;;  %v3378_v36 = vld [vmem:[%s6785_s11 + $0x340] sm:$0x3] }
 0xdea   : > { %4360 = vmatprep.subr.mxu1 %v4768_v0  ;;  %v2953_v43 = vpop.permute.xlu0 %2952 }
 0xdee   : > { %v3047_v35 = vpop.permute.xlu0 %3046 }
 0xdef   : > { %4341 = vmatpush3.msk.msra.mxu0 %vm2129_vm14, %v3047_v35 }
 0xdf0   : > { %4342 = vmatprep.subr.mxu0 %v4768_v0 }
 0xe97   : > { %v2887_v37 = vpop.f32.mrf.mxu1 }
 0xe98   : > { %v2888_v39 = vadd.f32 %v2887_v37, %v2815_v20  ;;  %v3271_v20 = vrot.slane %v3258_v16, 4  ;;  %v3416_v37 = vrot.slane %v3376_v34, 4 }
 0xe99   : > { %v4320_v40 = vpop.f32.mrf.mxu1 }
 0xe9a   : > { %v2891_v41 = vmax.f32 %v2888_v39, 0.0  ;;  %v3420_v39 = vrot.slane %v3378_v36, 4  ;;  %v3374_v40 = vld [vmem:[%s6785_s11 + $0x320] sm:$0xff] }
 0xe9b   : > { %v3412_v42 = vrot.slane %v3374_v40, 4 }
 0xe9c   : > { %4338 = vmatmul.mubr.msk.f32.vlgmr.msra.gmra.mxu1 %vm1896_vm12, %v2891_v41  ;;  %vm3174_vm12 = vcmask 310272   ;;  %v3421_v41 = vsel %vm2129_vm14, %v3416_v37, %v3420_v39 }
 0xe9d   : > { %4364 = vmatprep.mubr.msk.f32.mxu1 %vm4769_vm0, %v4768_v0 }
 0xf5c   : > { %v3026_v44 = vpop.f32.mrf.mxu1 }
 0xf5d   : > { %v3027_v33 = vadd.f32 %v3026_v44, %v2953_v43  ;;  %v3372_v43 = vld [vmem:[%s6785_s11 + $0x310] sm:$0xff]  ;;  %v3417_v44 = vsel %vm2129_vm14, %v3412_v42, %v3416_v37  ;;  %v3380_v37 = vld [vmem:[#allocation11] sm:$0x3] }
 0xf5e   : > { %v4339_v45 = vpop.f32.mrf.mxu1  ;;  %v3385_v39 = vrot.slane %v3380_v37, %v1556_v12  ;;  %v3389_v40 = vrot.slane %v3380_v37, %v1560_v14 }
 0xf5f   : > { %3031 = vrot.lane.b32.xlu1 %v3027_v33, %s4785_s17  ;;  %s4787_s17 = smov 32   ;;  %v3408_v33 = vrot.slane %v3372_v43, 4 }
 0xf61   : > { %v3413_v45 = vsel %vm2129_vm14, %v3408_v33, %v3412_v42 }
 0xf63   : > { %3044 = vrot.lane.b32.xlu1 %v3037_v46, %s4779_s4 }
 0xf67   : > { %3165 = vrot.lane.b32.xlu1 %v3156_v51, %s4786_s15 }
 0xf6b   : > { %3161 = vrot.lane.b32.xlu1 %v3152_v53, %s4786_s15  ;;  %v3370_v53 = vld [vmem:[%s6785_s11 + $0x300] sm:$0xff] }
 0xf6f   : > { %3159 = vrot.lane.b32.xlu1 %v3150_v57, %s4786_s15 }
 0xf73   : > { %3171 = vrot.lane.b32.xlu1 %v3965_v38, %s4786_s15  ;;  %v3273_v38 = vsel %vm2129_vm14, %v3271_v20, %v3272_v19 }
 0xf77   : > { %3278 = vrot.lane.b32.xlu1 %v3269_v30, %s4788_s9 }
 0xf7b   : > { %3274 = vrot.lane.b32.xlu1 %v3270_v10, %s4788_s9 }
 0xfd1   : > { %v3032_v47 = vpop.permute.xlu1 %3031 }
 0xfd2   : > { %3035 = vst.msk [vmem:[%s5953_s29] sm:$0xff] %vm3034_vm9, %v3032_v47  ;;  %v3377_v47 = vld [vmem:[%s6785_s11 + $0x338] sm:$0xff] }
 0xfd3   : > { %v3418_v62 = vrot.slane %v3377_v47, 4 }
 0xfd5   : > { %v3045_v1 = vpop.permute.xlu1 %3044  ;;  %v3423_v48 = vsel %vm2129_vm14, %v3418_v62, %v3422_v63 }
 0xfd6   : > { %4343 = vmatpush3.msra.mxu0 %v3045_v1  ;;  %v3375_v1 = vld [vmem:[%s6785_s11 + $0x328] sm:$0xff] }
 0xfd7   : > { %4347 = vmatprep.subr.mxu0 %v4768_v0  ;;  %v3414_v51 = vrot.slane %v3375_v1, 4  ;;  %v3544_v1 = vld [vmem:[%s6784_s10 + $0x1f8] sm:$0xff] }
 0xfd9   : > { %v3036_v49 = vld [vmem:[%s5953_s29] sm:$0xff]  ;;  %v3166_v6 = vpop.permute.xlu1 %3165  ;;  %v3419_v57 = vsel %vm2129_vm14, %v3414_v51, %v3418_v62  ;;  %v3640_v62 = vld [vmem:[%s6785_s11 + $0x368] sm:$0xff] }
 0xfda   : > { %3040 = vrot.lane.b32.xlu0 %v3036_v49, %s4787_s17  ;;  %v3373_v49 = vld [vmem:[%s6785_s11 + $0x318] sm:$0xff]  ;;  %s4791_s17 = smov 94  }
 0xfdb   : > { %v3410_v59 = vrot.slane %v3373_v49, 4 }
 0xfdd   : > { %v3162_v21 = vpop.permute.xlu1 %3161 }
 0xfde   : > { %3163 = vrot.lane.b32.xlu0 %v3154_v55, %s4786_s15  ;;  %v3403_v55 = vrot.slane %v3370_v53, 4 }
 0xfe1   : > { %v3160_v23 = vpop.permute.xlu1 %3159 }
 0xfe2   : > { %3049 = vrot.lane.b32.xlu0 %v5905_v29, %s4779_s4 }
 0xfe5   : > { %v3172_v11 = vpop.permute.xlu1 %3171 }
 0xfe6   : > { %3157 = vrot.lane.b32.xlu0 %v3148_v60, %s4786_s15  ;;  %v3409_v60 = vsel %vm2129_vm14, %v3403_v55, %v3408_v33  ;;  %v3545_v33 = vld [vmem:[%s6784_s10 + $0x218] sm:$0xf] }
 0xfe9   : > { %v3279_v35 = vpop.permute.xlu1 %3278 }
0x104c   : > { %v3041_v7 = vpop.permute.xlu0 %3040 }
0x104d   : > { %4345 = vmatmul.mubr.msk.f32.vlgmr.msra.gmra.mxu0 %vm3052_vm11, %v3041_v7  ;;  %v3415_v7 = vsel %vm2129_vm14, %v3410_v59, %v3414_v51 }
0x104e   : > { %4348 = vmatpush3.msk.msra.mxu0 %vm1583_vm7, %v3166_v6  ;;  %4357 = vmatprep.mubr.msk.f32.mxu0 %vm4769_vm0, %v4768_v0  ;;  %v3404_v6 = vsel %vm2129_vm14, %v3402_v56, %v3403_v55  ;;  %v3654_v56 = vrot.slane %v3638_v54, 2 }
0x104f   : > { %4349 = vmatprep.subr.mxu0 %v4768_v0 }
0x1050   : > { %v3164_v18 = vpop.permute.xlu0 %3163 }
0x1051   : > { %4350 = vmatpush3.msra.mxu0 %v3164_v18  ;;  %v3371_v18 = vld [vmem:[%s6785_s11 + $0x308] sm:$0xff] }
0x1052   : > { %4351 = vmatprep.subr.mxu0 %v4768_v0 }
0x1053   : > { %4352 = vmatpush3.msra.mxu0 %v3162_v21  ;;  %v3406_v21 = vrot.slane %v3371_v18, 4 }
0x1054   : > { %4353 = vmatprep.subr.mxu0 %v4768_v0  ;;  %v3050_v22 = vpop.permute.xlu0 %3049 }
0x1055   : > { %4354 = vmatpush3.msra.mxu0 %v3160_v23  ;;  %v3411_v23 = vsel %vm2129_vm14, %v3406_v21, %v3410_v59 }
0x1056   : > { %4355 = vmatprep.subr.mxu0 %v4768_v0 }
0x1058   : > { %v3158_v24 = vpop.permute.xlu0 %3157 }
0x1059   : > { %4356 = vmatpush3.msra.mxu0 %v3158_v24 }
0x105a   : > { %4380 = vmatprep.subr.mxu0 %v4768_v0 }
0x110d   : > { %v3123_v25 = vpop.f32.mrf.mxu0 }
0x110e   : > { %v3124_v26 = vadd.f32 %v3123_v25, %v3050_v22  ;;  %v3369_v22 = vld [vmem:[%s6785_s11 + $0x2f8] sm:$0xf0] }
0x110f   : > { %v4346_v28 = vpop.f32.mrf.mxu0  ;;  %v3405_v24 = vrot.slane %v3369_v22, 4 }
0x1110   : > { %v3127_v27 = vmax.f32 %v3124_v26, 0.0 }
0x1111   : > { %v3407_v25 = vsel %vm2129_vm14, %v3405_v24, %v3406_v21 }
0x1112   : > { %4358 = vmatmul.mubr.msk.f32.vlgmr.msra.gmra.mxu0 %vm3174_vm12, %v3127_v27 }
0x1113   : > { %4384 = vmatprep.mubr.msk.f32.mxu0 %vm4769_vm0, %v4768_v0 }
0x11d2   : > { %v3246_v15 = vpop.f32.mrf.mxu0 }
0x11d3   : > { %v3247_v13 = vadd.f32 %v3246_v15, %v3172_v11 }
0x11d4   : > { %v4359_v17 = vpop.f32.mrf.mxu0 }
0x11d5   : > { %3251 = vrot.lane.b32.xlu0 %v3247_v13, %s4789_s0 }
0x11d9   : > { %3280 = vrot.lane.b32.xlu0 %v3272_v19, %s4788_s9 }
0x11dd   : > { %3276 = vrot.lane.b32.xlu0 %v3273_v38, %s4788_s9 }
0x11e1   : > { %3440 = vrot.lane.b32.xlu0 %v3421_v41, %s4790_s26 }
0x11e5   : > { %3436 = vrot.lane.b32.xlu0 %v3417_v44, %s4790_s26 }
0x11e9   : > { %3432 = vrot.lane.b32.xlu0 %v3413_v45, %s4790_s26 }
0x11ed   : > { %3287 = vrot.lane.b32.xlu0 %v5905_v29, %s4788_s9  ;;  %v3275_v29 = vpop.permute.xlu1 %3274 }
0x11f1   : > { %3428 = vrot.lane.b32.xlu0 %v3409_v60, %s4790_s26 }
0x11f5   : > { %3424 = vrot.lane.b32.xlu0 %v3404_v6, %s4790_s26 }
0x11f9   : > { %3454 = vrot.lane.b32.xlu0 %v3385_v39, %s4790_s26 }
0x1247   : > { %v3252_v46 = vpop.permute.xlu0 %3251 }
0x1248   : > { %3255 = vst.msk [vmem:[%s5953_s29] sm:$0xff] %vm3254_vm13, %v3252_v46 }
0x124b   : > { %v3281_v61 = vpop.permute.xlu0 %3280 }
0x124c   : > { %v3284_v31 = vsel %vm3282_vm15, %v3279_v35, %v3281_v61  ;;  %v3641_v61 = vld [vmem:[%s6785_s11 + $0x378] sm:$0xff] }
0x124d   : > { %4361 = vmatpush3.msk.msra.mxu1 %vm2129_vm14, %v3284_v31  ;;  %v3642_v31 = vld [vmem:[%s6785_s11 + $0x388] sm:$0xff] }
0x124e   : > { %4362 = vmatprep.subr.mxu1 %v4768_v0 }
0x124f   : > { %v3277_v2 = vpop.permute.xlu0 %3276  ;;  %v3256_v3 = vld [vmem:[%s5953_s29] sm:$0xff] }
0x1250   : > { %3262 = vrot.lane.b32.xlu1 %v3256_v3, %s4786_s15  ;;  %v3283_v4 = vsel %vm3282_vm15, %v3275_v29, %v3277_v2  ;;  %v3659_v2 = vrot.slane %v3641_v61, 2  ;;  %v3661_v3 = vrot.slane %v3642_v31, 2  ;;  %s3762_s15 = scalar_lea.sflag [#allocation4], %s5069_s18 }
0x1251   : > { %4363 = vmatpush3.msra.mxu1 %v3283_v4  ;;  %v3657_v4 = vrot.slane %v3640_v62, 2 }
0x1252   : > { %4367 = vmatprep.subr.mxu1 %v4768_v0  ;;  %v3662_v51 = vsel %vm1583_vm7, %v3659_v2, %v3661_v3 }
0x1253   : > { %v3441_v26 = vpop.permute.xlu0 %3440  ;;  %v3660_v49 = vsel %vm1583_vm7, %v3657_v4, %v3659_v2 }
0x1254   : > { %3442 = vrot.lane.b32.xlu1 %v3423_v48, %s4790_s26  ;;  %v3639_v48 = vld [vmem:[%s6785_s11 + $0x358] sm:$0xff] }
0x1255   : > { %v3655_v53 = vrot.slane %v3639_v48, 2 }
0x1257   : > { %v3437_v27 = vpop.permute.xlu0 %3436  ;;  %v3658_v55 = vsel %vm1583_vm7, %v3655_v53, %v3657_v4 }
0x1258   : > { %3438 = vrot.lane.b32.xlu1 %v3419_v57, %s4790_s26  ;;  %v3656_v57 = vsel %vm1583_vm7, %v3654_v56, %v3655_v53 }
0x125b   : > { %v3433_v5 = vpop.permute.xlu0 %3432 }
0x125c   : > { %3434 = vrot.lane.b32.xlu1 %v3415_v7, %s4790_s26 }
0x125f   : > { %v3288_v50 = vpop.permute.xlu0 %3287 }
0x1260   : > { %3289 = vrot.lane.b32.xlu1 %v5909_v32, %s4788_s9 }
0x1263   : > { %v3429_v17 = vpop.permute.xlu0 %3428 }
0x1264   : > { %3430 = vrot.lane.b32.xlu1 %v3411_v23, %s4790_s26 }
0x1267   : > { %v3425_v34 = vpop.permute.xlu0 %3424 }
0x1268   : > { %3426 = vrot.lane.b32.xlu1 %v3407_v25, %s4790_s26  ;;  %v3979_v25 = vld [vmem:[#allocation11 + $0x1] ss:$0 sm:$0xff] }
0x126b   : > { %v3455_v52 = vpop.permute.xlu0 %3454 }
0x126c   : > { %3456 = vrot.lane.b32.xlu1 %v3389_v40, %s4790_s26 }
0x1270   : > { %3557 = vrot.lane.b32.xlu1 %v3545_v33, %s4791_s17 }
0x12c2   : > { %v3263_v28 = vpop.permute.xlu1 %3262 }
0x12c3   : > { %4365 = vmatmul.mubr.msk.f32.vlgmr.msra.gmra.mxu1 %vm3052_vm11, %v3263_v28 }
0x12c4   : > { %4377 = vmatprep.mubr.msk.f32.mxu1 %vm4769_vm0, %v4768_v0 }
0x12c6   : > { %v3443_v8 = vpop.permute.xlu1 %3442 }
0x12c7   : > { %v3449_v30 = vsel %vm3444_vm1, %v3441_v26, %v3443_v8 }
0x12c8   : > { %4368 = vmatpush3.msk.msra.mxu1 %vm1583_vm7, %v3449_v30 }
0x12c9   : > { %4369 = vmatprep.subr.mxu1 %v4768_v0 }
0x12ca   : > { %v3439_v9 = vpop.permute.xlu1 %3438 }
0x12cb   : > { %v3448_v10 = vsel %vm3444_vm1, %v3437_v27, %v3439_v9 }
0x12cc   : > { %4370 = vmatpush3.msra.mxu1 %v3448_v10 }
0x12cd   : > { %4371 = vmatprep.subr.mxu1 %v4768_v0 }
0x12ce   : > { %v3435_v11 = vpop.permute.xlu1 %3434 }
0x12cf   : > { %v3447_v15 = vsel %vm3444_vm1, %v3433_v5, %v3435_v11 }
0x12d0   : > { %4372 = vmatpush3.msra.mxu1 %v3447_v15 }
0x12d1   : > { %4373 = vmatprep.subr.mxu1 %v4768_v0 }
0x12d2   : > { %v3290_v13 = vpop.permute.xlu1 %3289 }
0x12d3   : > { %v3291_v16 = vsel %vm3282_vm15, %v3288_v50, %v3290_v13 }
0x12d6   : > { %v3431_v19 = vpop.permute.xlu1 %3430 }
0x12d7   : > { %v3446_v20 = vsel %vm3444_vm1, %v3429_v17, %v3431_v19 }
0x12d8   : > { %4374 = vmatpush3.msra.mxu1 %v3446_v20 }
0x12d9   : > { %4375 = vmatprep.subr.mxu1 %v4768_v0 }
0x12da   : > { %v3427_v36 = vpop.permute.xlu1 %3426 }
0x12db   : > { %v3445_v38 = vsel %vm3444_vm1, %v3425_v34, %v3427_v36 }
0x12dc   : > { %4376 = vmatpush3.msra.mxu1 %v3445_v38 }
0x12de   : > { %v3457_v12 = vpop.permute.xlu1 %3456 }
0x12df   : > { %v3458_v14 = vsel %vm3444_vm1, %v3455_v52, %v3457_v12 }
0x12e2   : > { %v3558_v47 = vpop.permute.xlu1 %3557 }
0x12e3   : > { %4381 = vmatpush3.msk.msra.mxu0 %vm2129_vm14, %v3558_v47 }
0x12e4   : > { %4382 = vmatprep.subr.mxu0 %v4768_v0 }
0x1383   : > { %v3363_v41 = vpop.f32.mrf.mxu1 }
0x1384   : > { %v3364_v42 = vadd.f32 %v3363_v41, %v3291_v16 }
0x1385   : > { %v4366_v43 = vpop.f32.mrf.mxu1 }
0x1386   : > { %v3367_v44 = vmax.f32 %v3364_v42, 0.0 }
0x1388   : > { %4378 = vmatmul.mubr.msk.f32.vlgmr.msra.gmra.mxu1 %vm3174_vm12, %v3367_v44 }
0x1448   : > { %v3531_v45 = vpop.f32.mrf.mxu1 }
0x1449   : > { %v3532_v46 = vadd.f32 %v3531_v45, %v3458_v14 }
0x144a   : > { %v4379_v35 = vpop.f32.mrf.mxu1 }
0x144b   : > { %3536 = vrot.lane.b32.xlu0 %v3532_v46, %s4792_s30 }
0x14bd   : > { %v3537_v58 = vpop.permute.xlu0 %3536 }
0x14be   : > { %3540 = vst.msk [vmem:[%s5953_s29] sm:$0xff] %vm3539_vm2, %v3537_v58 }
0x14bf   : > { %3541 = vst.msk [vmem:[%s5953_s29 + $0x8] sm:$0xff] %vm3282_vm15, %v3537_v58 }
0x14c5   : > { %v3542_v29 = vld [vmem:[%s5953_s29] sm:$0xff] }
0x14c6   : > { %v3543_v63 = vld [vmem:[%s5953_s29 + $0x8] sm:$0xff]  ;;  %3548 = vrot.lane.b32.xlu0 %v3542_v29, %s4790_s26 }
0x14c7   : > { %3550 = vrot.lane.b32.xlu1 %v3543_v63, %s4790_s26 }
0x14ca   : > { %3555 = vrot.lane.b32.xlu0 %v3544_v1, %s4791_s17 }
0x14cb   : > { %3671 = vrot.lane.b32.xlu1 %v3661_v3, %s4793_s25 }
0x14ce   : > { %3669 = vrot.lane.b32.xlu0 %v3662_v51, %s4793_s25 }
0x14cf   : > { %3667 = vrot.lane.b32.xlu1 %v3660_v49, %s4793_s25 }
0x14d2   : > { %3560 = vrot.lane.b32.xlu0 %v5909_v32, %s4791_s17  ;;  %s3988_s17 = sshll.u32 %s4896_s24, 8  ;;  %s4686_s24 = scalar_lea.vmem %s4685_s20, 512 }
0x14d3   : > { %3665 = vrot.lane.b32.xlu1 %v3658_v55, %s4793_s25  ;;  %s6736_s28 = scalar_lea.hbm %s6834_s8, %s3988_s17  ;;  %p4688_p9 = scmp.lt.s32.totalorder %s4686_s24, %s4680_s12 }
0x14d5   : > { %p4689_p4 = por %p4688_p9, %p4687_p8 }
0x14d6   : > { %3663 = vrot.lane.b32.xlu0 %v3656_v57, %s4793_s25 }
0x14d7   : > { %3677 = vrot.lane.b32.xlu1 %v3979_v25, %s4793_s25  ;;  %p4690_p6 = pnand %p4689_p4, %p4683_p1 }
0x1538   : > { %v3549_v60 = vpop.permute.xlu0 %3548 }
0x1539   : > { %v3551_v59 = vpop.permute.xlu1 %3550 }
0x153a   : > { %v3552_v18 = vsel %vm3444_vm1, %v3549_v60, %v3551_v59 }
0x153c   : > { %v3556_v6 = vpop.permute.xlu0 %3555 }
0x153d   : > { %v3672_v7 = vpop.permute.xlu1 %3671  ;;  %4383 = vmatpush3.msra.mxu0 %v3556_v6 }
0x153e   : > { %4385 = vmatmul.mubr.msk.f32.vlgmr.msra.gmra.mxu0 %vm3052_vm11, %v3552_v18  ;;  %4387 = vmatprep.subr.mxu0 %v4768_v0 }
0x153f   : > { %4388 = vmatpush3.msk.msra.mxu0 %vm1583_vm7, %v3672_v7  ;;  %4397 = vmatprep.mubr.msk.f32.mxu0 %vm4769_vm0, %v4768_v0  ;;  %vm3759_vm0 = vcmask 130080  }
0x1540   : > { %v3670_v32 = vpop.permute.xlu0 %3669  ;;  %4389 = vmatprep.subr.mxu0 %v4768_v0 }
0x1541   : > { %v3668_v21 = vpop.permute.xlu1 %3667  ;;  %4390 = vmatpush3.msra.mxu0 %v3670_v32 }
0x1542   : > { %4391 = vmatprep.subr.mxu0 %v4768_v0 }
0x1543   : > { %4392 = vmatpush3.msra.mxu0 %v3668_v21 }
0x1544   : > { %4393 = vmatprep.subr.mxu0 %v4768_v0  ;;  %v3561_v22 = vpop.permute.xlu0 %3560 }
0x1545   : > { %v3666_v23 = vpop.permute.xlu1 %3665 }
0x1546   : > { %4394 = vmatpush3.msra.mxu0 %v3666_v23 }
0x1547   : > { %4395 = vmatprep.subr.mxu0 %v4768_v0 }
0x1548   : > { %v3664_v24 = vpop.permute.xlu0 %3663 }
0x1549   : > { %4396 = vmatpush3.msra.mxu0 %v3664_v24  ;;  %v3678_v30 = vpop.permute.xlu1 %3677 }
0x15fe   : > { %v3633_v26 = vpop.f32.mrf.mxu0 }
0x15ff   : > { %v3634_v28 = vadd.f32 %v3633_v26, %v3561_v22 }
0x1600   : > { %v4386_v27 = vpop.f32.mrf.mxu0 }
0x1601   : > { %v3637_v8 = vmax.f32 %v3634_v28, 0.0 }
0x1603   : > { %4398 = vmatmul.mubr.msk.f32.vlgmr.msra.gmra.mxu0 %vm3174_vm12, %v3637_v8 }
0x16c3   : > { %v3751_v5 = vpop.f32.mrf.mxu0 }
0x16c4   : > { %v3752_v9 = vadd.f32 %v3751_v5, %v3678_v30 }
0x16c5   : > { %v4399_v10 = vpop.f32.mrf.mxu0 }
0x16c6   : > { %3756 = vrot.lane.b32.xlu0 %v3752_v9, %s4788_s9 }
0x1738   : > { %v3757_v0 = vpop.permute.xlu0 %3756 }
0x1739   : > { %3760 = vst.msk [vmem:[%s5953_s29 + $0x8] sm:$0xff] %vm3759_vm0, %v3757_v0 }
0x173a   : > { %4693 = shalt.err (!%p4690_p6)
}
0x173b   : > { %s4694_s29 = scalar_lea.hbm %s6736_s28, 256  ;;  %s4698_s0 = scalar_lea.hbm %s6834_s8, 512 }
0x173c   : > { %p4695_p10 = scmp.ne.s32.totalorder %s6736_s28, %s4694_s29  ;;  %p4699_p13 = scmp.lt.s32.totalorder %s6736_s28, %s6834_s8 }
0x173d   : > { %p4700_p0 = scmp.lt.s32.totalorder %s4698_s0, %s4694_s29 }
0x173e   : > { %p4696_p7 = pnand %p4695_p10, %p6835_p11 }
0x173f   : > { %p4701_p2 = por %p4700_p0, %p4699_p13 }
0x1740   : > { %p4697_p3 = pneg %p4696_p7 }
0x1742   : > { %p4702_p5 = pnand %p4701_p2, %p4697_p3 }
0x1744   : > { %4705 = shalt.err (!%p4702_p5)
}
0x1745   : > { %4420 = dma.vmem_to_hbm [thread:$0]  (%p6835_p11), %s3777_s22, 256, %s6736_s28, %s3762_s15  }
0x1746 PF: > { %s6836_s30 = sld [smem:[#allocation20_spill]]  ;;  %p6839_p1 = scmp.ge.s32.totalorder %s4760_s21, 2 }
0x1747   : > { %s6837_s17 = sld [smem:[#allocation24_spill]] }
0x174c   : > { %s3788_s4 = sand.u32 1, %s6836_s30  }
0x174d   : > { %p6838_p12 = scmp.ne.s32.totalorder %s6837_s17, 0  ;;  %s3789_s23 = scalar_lea.sflag [#allocation4], %s3788_s4 }
0x174f   : > { %p4443_p8 = pnand %p6839_p1, %p6838_p12 }
0x1751   : > { %p4444_p9 = pneg %p4443_p8 }
0x1753   : > { %4743 = dma.done.wait (%p4444_p9), %s3789_s23, 256  }
0x1754   : > { %4745 = vsyncadd (%p4444_p9), %s3789_s23, 4294967040  ;;  %s6840_s21 = sld [smem:[#allocation22_spill]]  ;;  %s6843_s18 = smov %s4752_s19 }
0x1755   : > { %s6841_s12 = sld [smem:[#allocation21_spill]] }
0x1756   : > { %s6842_s20 = sld [smem:[#allocation23_spill]] }
0x175a   : > { %p33_p4 = scmp.ge.s32.totalorder %s6840_s21, 4  }
0x175b   : > { %s6844_s19 = smov %s6841_s12 }
0x175c   :  { %35 = sbr.rel (!%p33_p4) target bundleno = 16 (0x10), region = 154 }
0x1761   :  { %3794 = vsyncpa [#allocation3], 1 }
0x1762   :  { %3796 = vsyncpa [#allocation3 + $0x1], 1 }
0x1763   :  { %3797 = vsyncpa [#allocation6], 1 }
0x1764   :  { %3799 = vsyncpa [#allocation6 + $0x1], 1 }
0x1765   :  { %3800 = vsyncpa [#allocation9], 1 }
0x1766   :  { %3801 = vsyncpa [#allocation12], 1 }
0x1767   :  { %3802 = vsyncpa [#allocation4], 1 }
0x1768   :  { %3804 = vsyncpa [#allocation4 + $0x1], 1 }

</bundles_post_ra>
